<compile_context>
chip_gen: v5e
topology: v5e:2x2
jax: 0.10.0
libtpu: 0.0.40
codegen_flags: <defaults>
</compile_context>

<pallas_src>
from functools import partial

import jax
import jax.numpy as jnp
from jax.experimental import pallas as pl
from jax.experimental.pallas import tpu as pltpu

MATMUL_DTYPE = jnp.bfloat16   # MXU operand dtype (f32 accumulation everywhere)
H_PAD = 128                   # fc_shared hidden 100 -> 128 (lane dense)
OUT_PAD = 128                 # pad the NC*50 output columns up to a multiple of this


# ----------------------------------------------------------------------------
# In-kernel building block: Conv1d(k=5, pad=2) + folded eval-BN + ReLU +
# MaxPool1d(2,2), as ONE matmul per layer (im2col via pltpu.roll + masks).
# ----------------------------------------------------------------------------
def _conv_bn_relu_pool(a, w_ref, scale_ref, bias_ref, t_len):
    # a:         (m, cin) f32, rows ordered (sample, time); per-sample time length t_len
    # w_ref:     (5*cin, cout) bf16, taps packed along K (row = k*cin + ci)
    # scale_ref, bias_ref: (1, cout) f32 (conv bias + eval BatchNorm folded)
    m, cin = a.shape
    cout = w_ref.shape[-1]
    # Per-row time index (t_len is a power of two, so mod == bitwise AND).
    t_idx = jax.lax.broadcasted_iota(jnp.int32, (m, 1), 0) & (t_len - 1)
    cols = []
    for s in (-2, -1, 0, 1, 2):                      # tap k = s + 2
        if s == 0:
            cols.append(a)
        else:
            # row i <- row i+s (sublane rotate on the XLU; wrapped/cross-sample rows masked)
            shifted = pltpu.roll(a, shift=(-s) % m, axis=0)
            if s < 0:
                mask = t_idx >= (-s)                 # zero-padding at the start of each sample
            else:
                mask = t_idx < (t_len - s)           # zero-padding at the end of each sample
            cols.append(jnp.where(mask, shifted, 0.0))
    # im2col: (m, 5*cin); single bf16 cast per layer, single MXU matmul per layer.
    im2col = jnp.concatenate(cols, axis=-1).astype(MATMUL_DTYPE)
    y = jnp.dot(im2col, w_ref[...], preferred_element_type=jnp.float32)
    y = jnp.maximum(y * scale_ref[...] + bias_ref[...], 0.0)     # BN + ReLU (f32, v5e-safe)
    # MaxPool1d(2,2): adjacent (even, odd) time rows; never crosses samples (t_len even).
    return jnp.max(y.reshape(m // 2, 2, cout), axis=1)           # (m//2, cout)


# ----------------------------------------------------------------------------
# Fused whole-network kernel (single invocation, no grid).
# ----------------------------------------------------------------------------
def siamese_kernel(x_ref,
                   cw0, cs0, cb0, cw1, cs1, cb1,
                   cw2, cs2, cb2, cw3, cs3, cb3,
                   fw1, fb1, fw2, fb2, o_ref):
    rows = o_ref.shape[0]                            # 2*B samples (both branches folded into M)
    t_len = x_ref.shape[0] // rows                   # initial time length T
    a = x_ref[...]                                   # (rows*T, Cin) f32

    for w, s, b in ((cw0, cs0, cb0), (cw1, cs1, cb1),
                    (cw2, cs2, cb2), (cw3, cs3, cb3)):
        a = _conv_bn_relu_pool(a, w, s, b, t_len)
        t_len //= 2

    # a: (rows * Tf, 128) f32, Tf = T//16.  PyTorch's channel-major flatten
    # (x.view(B,-1) on NCL) is folded into fw1's layout offline; here we just
    # lane-concat the Tf time slices -> one K = Tf*128 matmul for fc_shared.
    cf = a.shape[-1]
    a3 = a.reshape(rows, t_len, cf)                  # leading-dim split only (cheap)
    a2 = jnp.concatenate([a3[:, t, :] for t in range(t_len)], axis=-1)  # (rows, Tf*128)
    h = jnp.dot(a2.astype(MATMUL_DTYPE), fw1[...],
                preferred_element_type=jnp.float32) + fb1[...]
    h = jnp.maximum(h, 0.0)                          # fc_shared + ReLU
    # TODO(synk): nn.Dropout(p=0.25) is identity in eval mode; not applied.
    z = jnp.dot(h.astype(MATMUL_DTYPE), fw2[...],
                preferred_element_type=jnp.float32) + fb2[...]
    o_ref[...] = z                                   # (rows, padded NC*50): lane-dense store


def fused_forward(kp, x, rows):
    # x: (rows*T, C) f32 — branches, batch and time all folded into matmul rows.
    out_cols = kp["fc2_b"].shape[-1]
    vmem = pl.BlockSpec(memory_space=pltpu.MemorySpace.VMEM)
    args = [x]
    for i in range(4):
        args += [kp[f"w{i}"], kp[f"scale{i}"], kp[f"bias{i}"]]
    args += [kp["fc1_w"], kp["fc1_b"], kp["fc2_w"], kp["fc2_b"]]
    return pl.pallas_call(
        siamese_kernel,
        out_shape=jax.ShapeDtypeStruct((rows, out_cols), jnp.float32),
        in_specs=[vmem] * len(args),
        out_specs=vmem,
    )(*args)


# ----------------------------------------------------------------------------
# Parameters: synthetic PyTorch-convention params + offline kernel-layout prep.
# ----------------------------------------------------------------------------
def init_params(key, num_channels=3, num_classes=5, num_timesteps=128):
    chans = [num_channels, 16, 32, 64, 128]
    keys = iter(jax.random.split(key, 32))
    p = {}
    for i in range(4):
        cin, cout = chans[i], chans[i + 1]
        p[f"conv{i}_w"] = jax.random.normal(next(keys), (cout, cin, 5),
                                            jnp.float32) / jnp.sqrt(cin * 5.0)
        p[f"conv{i}_b"] = 0.05 * jax.random.normal(next(keys), (cout,), jnp.float32)
        p[f"bn{i}_gamma"] = 1.0 + 0.05 * jax.random.normal(next(keys), (cout,), jnp.float32)
        p[f"bn{i}_beta"] = 0.05 * jax.random.normal(next(keys), (cout,), jnp.float32)
        p[f"bn{i}_mean"] = jnp.zeros((cout,), jnp.float32)     # PyTorch eval defaults
        p[f"bn{i}_var"] = jnp.ones((cout,), jnp.float32)
    feat = num_timesteps * 8
    p["fc1_w"] = jax.random.normal(next(keys), (100, feat), jnp.float32) / jnp.sqrt(float(feat))
    p["fc1_b"] = 0.05 * jax.random.normal(next(keys), (100,), jnp.float32)
    p["fc2_w"] = jax.random.normal(next(keys), (50 * num_classes, 100), jnp.float32) / 10.0
    p["fc2_b"] = 0.05 * jax.random.normal(next(keys), (50 * num_classes,), jnp.float32)
    return p


def prepare_params(p, num_timesteps, num_classes):
    """One-time offline relayout: fold BN, pack conv taps along K, permute/pad FC weights."""
    assert num_timesteps % 16 == 0 and (num_timesteps & (num_timesteps - 1)) == 0, \
        "num_timesteps must be a power of two and a multiple of 16"
    eps = 1e-5
    kp = {}
    for i in range(4):
        w_pt = p[f"conv{i}_w"]                                   # (Cout, Cin, 5)
        cout, cin, _ = w_pt.shape
        # Pack taps along K: row index = k*Cin + ci  ->  single matmul per conv layer.
        wk = jnp.transpose(w_pt, (2, 1, 0)).reshape(5 * cin, cout)
        kp[f"w{i}"] = wk.astype(MATMUL_DTYPE)
        scale = p[f"bn{i}_gamma"] / jnp.sqrt(p[f"bn{i}_var"] + eps)
        bias = (p[f"conv{i}_b"] - p[f"bn{i}_mean"]) * scale + p[f"bn{i}_beta"]
        kp[f"scale{i}"] = scale.reshape(1, cout).astype(jnp.float32)
        kp[f"bias{i}"] = bias.reshape(1, cout).astype(jnp.float32)

    tf = num_timesteps // 16
    cf = 128
    hid = p["fc1_b"].shape[0]                                    # 100
    # Fold PyTorch channel-major flatten (view(B,-1) on NCL) into fc1_w:
    #   W1[t*128 + c, j] = fc1_w[j, c*tf + t]
    w1 = p["fc1_w"].reshape(hid, cf, tf)                         # [j, c, t]
    w1 = jnp.transpose(w1, (2, 1, 0)).reshape(tf * cf, hid)      # row = t*128 + c
    w1 = jnp.pad(w1, ((0, 0), (0, H_PAD - hid)))                 # hidden 100 -> 128
    kp["fc1_w"] = w1.astype(MATMUL_DTYPE)
    kp["fc1_b"] = jnp.pad(p["fc1_b"], (0, H_PAD - hid)).reshape(1, H_PAD).astype(jnp.float32)

    ncols = 50 * num_classes
    out_pad = (-ncols) % OUT_PAD                                 # 250 -> 256 (lane-dense stores)
    w2 = jnp.transpose(p["fc2_w"], (1, 0))                       # (100, NC*50)
    w2 = jnp.pad(w2, ((0, H_PAD - hid), (0, out_pad)))           # padded rows/cols = 0
    kp["fc2_w"] = w2.astype(MATMUL_DTYPE)
    kp["fc2_b"] = jnp.pad(p["fc2_b"], (0, out_pad)).reshape(1, ncols + out_pad).astype(jnp.float32)
    return kp


# ----------------------------------------------------------------------------
# Forward: one pallas_call for everything; class-branch select in the wrapper.
# ----------------------------------------------------------------------------
@partial(jax.jit, static_argnames=("num_classes",))
def forward(kp, input1, input2, class_id1, class_id2, *, num_classes):
    B, C, T = input1.shape
    assert T % 16 == 0 and (T & (T - 1)) == 0
    # NCL -> rows=(branch, batch, time) x channels; fuses into one small XLA copy.
    x = jnp.concatenate(
        [jnp.swapaxes(input1, 1, 2), jnp.swapaxes(input2, 1, 2)], axis=0
    ).reshape(2 * B * T, C).astype(jnp.float32)
    z = fused_forward(kp, x, rows=2 * B)                         # (2B, padded NC*50)
    z = z[:, : num_classes * 50].reshape(2, B, num_classes, 50)
    cid = jnp.stack([class_id1, class_id2], axis=0).astype(jnp.int32)
    out = jnp.take_along_axis(z, cid[:, :, None, None], axis=2)[:, :, 0, :]
    return out[0], out[1]                                        # each (B, 50)


if __name__ == "__main__":
    B, C, T, NC = 2, 3, 32, 5        # num_channels=3, num_timesteps=32, num_classes=5
    key = jax.random.PRNGKey(0)
    k_p, k_x1, k_x2, k_c1, k_c2 = jax.random.split(key, 5)
    raw_params = init_params(k_p, num_channels=C, num_classes=NC, num_timesteps=T)
    kparams = prepare_params(raw_params, num_timesteps=T, num_classes=NC)
    x1 = jax.random.normal(k_x1, (B, C, T), jnp.float32)
    x2 = jax.random.normal(k_x2, (B, C, T), jnp.float32)
    cid1 = jax.random.randint(k_c1, (B,), 0, NC)
    cid2 = jax.random.randint(k_c2, (B,), 0, NC)

    out1, out2 = forward(kparams, x1, x2, cid1, cid2, num_classes=NC)
    jax.block_until_ready((out1, out2))
    assert out1.shape == (B, 50) and out2.shape == (B, 50)
    assert bool(jnp.all(jnp.isfinite(out1))) and bool(jnp.all(jnp.isfinite(out2)))
    print("KERNEL_OK")
</pallas_src>

<mosaic_0001>
module attributes {stable_mosaic.version = 11 : i64} {
  func.func @siamese_kernel(%arg0: memref<128x3xf32, #tpu.memory_space<vmem>>, %arg1: memref<15x16xbf16, #tpu.memory_space<vmem>>, %arg2: memref<1x16xf32, #tpu.memory_space<vmem>>, %arg3: memref<1x16xf32, #tpu.memory_space<vmem>>, %arg4: memref<80x32xbf16, #tpu.memory_space<vmem>>, %arg5: memref<1x32xf32, #tpu.memory_space<vmem>>, %arg6: memref<1x32xf32, #tpu.memory_space<vmem>>, %arg7: memref<160x64xbf16, #tpu.memory_space<vmem>>, %arg8: memref<1x64xf32, #tpu.memory_space<vmem>>, %arg9: memref<1x64xf32, #tpu.memory_space<vmem>>, %arg10: memref<320x128xbf16, #tpu.memory_space<vmem>>, %arg11: memref<1x128xf32, #tpu.memory_space<vmem>>, %arg12: memref<1x128xf32, #tpu.memory_space<vmem>>, %arg13: memref<256x128xbf16, #tpu.memory_space<vmem>>, %arg14: memref<1x128xf32, #tpu.memory_space<vmem>>, %arg15: memref<128x256xbf16, #tpu.memory_space<vmem>>, %arg16: memref<1x256xf32, #tpu.memory_space<vmem>>, %arg17: memref<4x256xf32, #tpu.memory_space<vmem>>) attributes {dimension_semantics = [], scalar_prefetch = 0 : i64, scratch_operands = 0 : i64, tpu.core_type = #tpu.core_type<tc>} {
    %c0 = arith.constant 0 : index
    %c0_0 = arith.constant 0 : index
    %0 = vector.load %arg0[%c0, %c0_0] : memref<128x3xf32, #tpu.memory_space<vmem>>, vector<128x3xf32>
    %1 = tpu.iota {dimensions = array<i32: 0>} : vector<128x1xi32>
    %c31_i32 = arith.constant 31 : i32
    %2 = vector.broadcast %c31_i32 : i32 to vector<128x1xi32>
    %3 = arith.andi %1, %2 : vector<128x1xi32>
    %c2_i32 = arith.constant 2 : i32
    %4 = tpu.dynamic_rotate %0 by %c2_i32 dim 0 : vector<128x3xf32>, i32 -> vector<128x3xf32>
    %c2_i32_1 = arith.constant 2 : i32
    %5 = vector.broadcast %c2_i32_1 : i32 to vector<128x1xi32>
    %6 = arith.cmpi sge, %3, %5 : vector<128x1xi32>
    %cst = arith.constant 0.000000e+00 : f32
    %7 = vector.shape_cast %6 : vector<128x1xi1> to vector<128x1xi1>
    %8 = vector.broadcast %7 : vector<128x1xi1> to vector<128x3xi1>
    %9 = vector.broadcast %cst : f32 to vector<128x3xf32>
    %10 = arith.select %8, %4, %9 : vector<128x3xi1>, vector<128x3xf32>
    %c1_i32 = arith.constant 1 : i32
    %11 = tpu.dynamic_rotate %0 by %c1_i32 dim 0 : vector<128x3xf32>, i32 -> vector<128x3xf32>
    %c1_i32_2 = arith.constant 1 : i32
    %12 = vector.broadcast %c1_i32_2 : i32 to vector<128x1xi32>
    %13 = arith.cmpi sge, %3, %12 : vector<128x1xi32>
    %cst_3 = arith.constant 0.000000e+00 : f32
    %14 = vector.shape_cast %13 : vector<128x1xi1> to vector<128x1xi1>
    %15 = vector.broadcast %14 : vector<128x1xi1> to vector<128x3xi1>
    %16 = vector.broadcast %cst_3 : f32 to vector<128x3xf32>
    %17 = arith.select %15, %11, %16 : vector<128x3xi1>, vector<128x3xf32>
    %c127_i32 = arith.constant 127 : i32
    %18 = tpu.dynamic_rotate %0 by %c127_i32 dim 0 : vector<128x3xf32>, i32 -> vector<128x3xf32>
    %c31_i32_4 = arith.constant 31 : i32
    %19 = vector.broadcast %c31_i32_4 : i32 to vector<128x1xi32>
    %20 = arith.cmpi slt, %3, %19 : vector<128x1xi32>
    %cst_5 = arith.constant 0.000000e+00 : f32
    %21 = vector.shape_cast %20 : vector<128x1xi1> to vector<128x1xi1>
    %22 = vector.broadcast %21 : vector<128x1xi1> to vector<128x3xi1>
    %23 = vector.broadcast %cst_5 : f32 to vector<128x3xf32>
    %24 = arith.select %22, %18, %23 : vector<128x3xi1>, vector<128x3xf32>
    %c126_i32 = arith.constant 126 : i32
    %25 = tpu.dynamic_rotate %0 by %c126_i32 dim 0 : vector<128x3xf32>, i32 -> vector<128x3xf32>
    %c30_i32 = arith.constant 30 : i32
    %26 = vector.broadcast %c30_i32 : i32 to vector<128x1xi32>
    %27 = arith.cmpi slt, %3, %26 : vector<128x1xi32>
    %cst_6 = arith.constant 0.000000e+00 : f32
    %28 = vector.shape_cast %27 : vector<128x1xi1> to vector<128x1xi1>
    %29 = vector.broadcast %28 : vector<128x1xi1> to vector<128x3xi1>
    %30 = vector.broadcast %cst_6 : f32 to vector<128x3xf32>
    %31 = arith.select %29, %25, %30 : vector<128x3xi1>, vector<128x3xf32>
    %32 = tpu.concatenate %10, %17, %0, %24, %31 in 1 : vector<128x3xf32>, vector<128x3xf32>, vector<128x3xf32>, vector<128x3xf32>, vector<128x3xf32> -> vector<128x15xf32>
    %33 = arith.truncf %32 : vector<128x15xf32> to vector<128x15xbf16>
    %c0_7 = arith.constant 0 : index
    %c0_8 = arith.constant 0 : index
    %34 = vector.load %arg1[%c0_7, %c0_8] : memref<15x16xbf16, #tpu.memory_space<vmem>>, vector<15x16xbf16>
    %cst_9 = arith.constant dense<0.000000e+00> : vector<128x16xf32>
    %35 = tpu.matmul %33, %34, %cst_9 {dimension_numbers = #tpu.dot_dimension_numbers<[1], [0], [0], [1], [0, 0, 1, 1], [], []>} : vector<128x15xbf16>, vector<15x16xbf16>, vector<128x16xf32> -> vector<128x16xf32>
    %c0_10 = arith.constant 0 : index
    %c0_11 = arith.constant 0 : index
    %36 = vector.load %arg2[%c0_10, %c0_11] : memref<1x16xf32, #tpu.memory_space<vmem>>, vector<1x16xf32>
    %37 = vector.broadcast %36 : vector<1x16xf32> to vector<128x16xf32>
    %38 = arith.mulf %35, %37 : vector<128x16xf32>
    %c0_12 = arith.constant 0 : index
    %c0_13 = arith.constant 0 : index
    %39 = vector.load %arg3[%c0_12, %c0_13] : memref<1x16xf32, #tpu.memory_space<vmem>>, vector<1x16xf32>
    %40 = vector.broadcast %39 : vector<1x16xf32> to vector<128x16xf32>
    %41 = arith.addf %38, %40 : vector<128x16xf32>
    %cst_14 = arith.constant 0.000000e+00 : f32
    %42 = vector.broadcast %cst_14 : f32 to vector<128x16xf32>
    %43 = arith.maximumf %41, %42 : vector<128x16xf32>
    %44 = vector.shape_cast %43 : vector<128x16xf32> to vector<64x2x16xf32>
    %cst_15 = arith.constant dense<0xFF800000> : vector<64x16xf32>
    %45 = vector.multi_reduction <maximumf>, %44, %cst_15 [1] : vector<64x2x16xf32> to vector<64x16xf32>
    %46 = tpu.iota {dimensions = array<i32: 0>} : vector<64x1xi32>
    %c15_i32 = arith.constant 15 : i32
    %47 = vector.broadcast %c15_i32 : i32 to vector<64x1xi32>
    %48 = arith.andi %46, %47 : vector<64x1xi32>
    %c2_i32_16 = arith.constant 2 : i32
    %49 = tpu.dynamic_rotate %45 by %c2_i32_16 dim 0 : vector<64x16xf32>, i32 -> vector<64x16xf32>
    %c2_i32_17 = arith.constant 2 : i32
    %50 = vector.broadcast %c2_i32_17 : i32 to vector<64x1xi32>
    %51 = arith.cmpi sge, %48, %50 : vector<64x1xi32>
    %cst_18 = arith.constant 0.000000e+00 : f32
    %52 = vector.shape_cast %51 : vector<64x1xi1> to vector<64x1xi1>
    %53 = vector.broadcast %52 : vector<64x1xi1> to vector<64x16xi1>
    %54 = vector.broadcast %cst_18 : f32 to vector<64x16xf32>
    %55 = arith.select %53, %49, %54 : vector<64x16xi1>, vector<64x16xf32>
    %c1_i32_19 = arith.constant 1 : i32
    %56 = tpu.dynamic_rotate %45 by %c1_i32_19 dim 0 : vector<64x16xf32>, i32 -> vector<64x16xf32>
    %c1_i32_20 = arith.constant 1 : i32
    %57 = vector.broadcast %c1_i32_20 : i32 to vector<64x1xi32>
    %58 = arith.cmpi sge, %48, %57 : vector<64x1xi32>
    %cst_21 = arith.constant 0.000000e+00 : f32
    %59 = vector.shape_cast %58 : vector<64x1xi1> to vector<64x1xi1>
    %60 = vector.broadcast %59 : vector<64x1xi1> to vector<64x16xi1>
    %61 = vector.broadcast %cst_21 : f32 to vector<64x16xf32>
    %62 = arith.select %60, %56, %61 : vector<64x16xi1>, vector<64x16xf32>
    %c63_i32 = arith.constant 63 : i32
    %63 = tpu.dynamic_rotate %45 by %c63_i32 dim 0 : vector<64x16xf32>, i32 -> vector<64x16xf32>
    %c15_i32_22 = arith.constant 15 : i32
    %64 = vector.broadcast %c15_i32_22 : i32 to vector<64x1xi32>
    %65 = arith.cmpi slt, %48, %64 : vector<64x1xi32>
    %cst_23 = arith.constant 0.000000e+00 : f32
    %66 = vector.shape_cast %65 : vector<64x1xi1> to vector<64x1xi1>
    %67 = vector.broadcast %66 : vector<64x1xi1> to vector<64x16xi1>
    %68 = vector.broadcast %cst_23 : f32 to vector<64x16xf32>
    %69 = arith.select %67, %63, %68 : vector<64x16xi1>, vector<64x16xf32>
    %c62_i32 = arith.constant 62 : i32
    %70 = tpu.dynamic_rotate %45 by %c62_i32 dim 0 : vector<64x16xf32>, i32 -> vector<64x16xf32>
    %c14_i32 = arith.constant 14 : i32
    %71 = vector.broadcast %c14_i32 : i32 to vector<64x1xi32>
    %72 = arith.cmpi slt, %48, %71 : vector<64x1xi32>
    %cst_24 = arith.constant 0.000000e+00 : f32
    %73 = vector.shape_cast %72 : vector<64x1xi1> to vector<64x1xi1>
    %74 = vector.broadcast %73 : vector<64x1xi1> to vector<64x16xi1>
    %75 = vector.broadcast %cst_24 : f32 to vector<64x16xf32>
    %76 = arith.select %74, %70, %75 : vector<64x16xi1>, vector<64x16xf32>
    %77 = tpu.concatenate %55, %62, %45, %69, %76 in 1 : vector<64x16xf32>, vector<64x16xf32>, vector<64x16xf32>, vector<64x16xf32>, vector<64x16xf32> -> vector<64x80xf32>
    %78 = arith.truncf %77 : vector<64x80xf32> to vector<64x80xbf16>
    %c0_25 = arith.constant 0 : index
    %c0_26 = arith.constant 0 : index
    %79 = vector.load %arg4[%c0_25, %c0_26] : memref<80x32xbf16, #tpu.memory_space<vmem>>, vector<80x32xbf16>
    %cst_27 = arith.constant dense<0.000000e+00> : vector<64x32xf32>
    %80 = tpu.matmul %78, %79, %cst_27 {dimension_numbers = #tpu.dot_dimension_numbers<[1], [0], [0], [1], [0, 0, 1, 1], [], []>} : vector<64x80xbf16>, vector<80x32xbf16>, vector<64x32xf32> -> vector<64x32xf32>
    %c0_28 = arith.constant 0 : index
    %c0_29 = arith.constant 0 : index
    %81 = vector.load %arg5[%c0_28, %c0_29] : memref<1x32xf32, #tpu.memory_space<vmem>>, vector<1x32xf32>
    %82 = vector.broadcast %81 : vector<1x32xf32> to vector<64x32xf32>
    %83 = arith.mulf %80, %82 : vector<64x32xf32>
    %c0_30 = arith.constant 0 : index
    %c0_31 = arith.constant 0 : index
    %84 = vector.load %arg6[%c0_30, %c0_31] : memref<1x32xf32, #tpu.memory_space<vmem>>, vector<1x32xf32>
    %85 = vector.broadcast %84 : vector<1x32xf32> to vector<64x32xf32>
    %86 = arith.addf %83, %85 : vector<64x32xf32>
    %cst_32 = arith.constant 0.000000e+00 : f32
    %87 = vector.broadcast %cst_32 : f32 to vector<64x32xf32>
    %88 = arith.maximumf %86, %87 : vector<64x32xf32>
    %89 = vector.shape_cast %88 : vector<64x32xf32> to vector<32x2x32xf32>
    %cst_33 = arith.constant dense<0xFF800000> : vector<32x32xf32>
    %90 = vector.multi_reduction <maximumf>, %89, %cst_33 [1] : vector<32x2x32xf32> to vector<32x32xf32>
    %91 = tpu.iota {dimensions = array<i32: 0>} : vector<32x1xi32>
    %c7_i32 = arith.constant 7 : i32
    %92 = vector.broadcast %c7_i32 : i32 to vector<32x1xi32>
    %93 = arith.andi %91, %92 : vector<32x1xi32>
    %c2_i32_34 = arith.constant 2 : i32
    %94 = tpu.dynamic_rotate %90 by %c2_i32_34 dim 0 : vector<32x32xf32>, i32 -> vector<32x32xf32>
    %c2_i32_35 = arith.constant 2 : i32
    %95 = vector.broadcast %c2_i32_35 : i32 to vector<32x1xi32>
    %96 = arith.cmpi sge, %93, %95 : vector<32x1xi32>
    %cst_36 = arith.constant 0.000000e+00 : f32
    %97 = vector.shape_cast %96 : vector<32x1xi1> to vector<32x1xi1>
    %98 = vector.broadcast %97 : vector<32x1xi1> to vector<32x32xi1>
    %99 = vector.broadcast %cst_36 : f32 to vector<32x32xf32>
    %100 = arith.select %98, %94, %99 : vector<32x32xi1>, vector<32x32xf32>
    %c1_i32_37 = arith.constant 1 : i32
    %101 = tpu.dynamic_rotate %90 by %c1_i32_37 dim 0 : vector<32x32xf32>, i32 -> vector<32x32xf32>
    %c1_i32_38 = arith.constant 1 : i32
    %102 = vector.broadcast %c1_i32_38 : i32 to vector<32x1xi32>
    %103 = arith.cmpi sge, %93, %102 : vector<32x1xi32>
    %cst_39 = arith.constant 0.000000e+00 : f32
    %104 = vector.shape_cast %103 : vector<32x1xi1> to vector<32x1xi1>
    %105 = vector.broadcast %104 : vector<32x1xi1> to vector<32x32xi1>
    %106 = vector.broadcast %cst_39 : f32 to vector<32x32xf32>
    %107 = arith.select %105, %101, %106 : vector<32x32xi1>, vector<32x32xf32>
    %c31_i32_40 = arith.constant 31 : i32
    %108 = tpu.dynamic_rotate %90 by %c31_i32_40 dim 0 : vector<32x32xf32>, i32 -> vector<32x32xf32>
    %c7_i32_41 = arith.constant 7 : i32
    %109 = vector.broadcast %c7_i32_41 : i32 to vector<32x1xi32>
    %110 = arith.cmpi slt, %93, %109 : vector<32x1xi32>
    %cst_42 = arith.constant 0.000000e+00 : f32
    %111 = vector.shape_cast %110 : vector<32x1xi1> to vector<32x1xi1>
    %112 = vector.broadcast %111 : vector<32x1xi1> to vector<32x32xi1>
    %113 = vector.broadcast %cst_42 : f32 to vector<32x32xf32>
    %114 = arith.select %112, %108, %113 : vector<32x32xi1>, vector<32x32xf32>
    %c30_i32_43 = arith.constant 30 : i32
    %115 = tpu.dynamic_rotate %90 by %c30_i32_43 dim 0 : vector<32x32xf32>, i32 -> vector<32x32xf32>
    %c6_i32 = arith.constant 6 : i32
    %116 = vector.broadcast %c6_i32 : i32 to vector<32x1xi32>
    %117 = arith.cmpi slt, %93, %116 : vector<32x1xi32>
    %cst_44 = arith.constant 0.000000e+00 : f32
    %118 = vector.shape_cast %117 : vector<32x1xi1> to vector<32x1xi1>
    %119 = vector.broadcast %118 : vector<32x1xi1> to vector<32x32xi1>
    %120 = vector.broadcast %cst_44 : f32 to vector<32x32xf32>
    %121 = arith.select %119, %115, %120 : vector<32x32xi1>, vector<32x32xf32>
    %122 = tpu.concatenate %100, %107, %90, %114, %121 in 1 : vector<32x32xf32>, vector<32x32xf32>, vector<32x32xf32>, vector<32x32xf32>, vector<32x32xf32> -> vector<32x160xf32>
    %123 = arith.truncf %122 : vector<32x160xf32> to vector<32x160xbf16>
    %c0_45 = arith.constant 0 : index
    %c0_46 = arith.constant 0 : index
    %124 = vector.load %arg7[%c0_45, %c0_46] : memref<160x64xbf16, #tpu.memory_space<vmem>>, vector<160x64xbf16>
    %cst_47 = arith.constant dense<0.000000e+00> : vector<32x64xf32>
    %125 = tpu.matmul %123, %124, %cst_47 {dimension_numbers = #tpu.dot_dimension_numbers<[1], [0], [0], [1], [0, 0, 1, 1], [], []>} : vector<32x160xbf16>, vector<160x64xbf16>, vector<32x64xf32> -> vector<32x64xf32>
    %c0_48 = arith.constant 0 : index
    %c0_49 = arith.constant 0 : index
    %126 = vector.load %arg8[%c0_48, %c0_49] : memref<1x64xf32, #tpu.memory_space<vmem>>, vector<1x64xf32>
    %127 = vector.broadcast %126 : vector<1x64xf32> to vector<32x64xf32>
    %128 = arith.mulf %125, %127 : vector<32x64xf32>
    %c0_50 = arith.constant 0 : index
    %c0_51 = arith.constant 0 : index
    %129 = vector.load %arg9[%c0_50, %c0_51] : memref<1x64xf32, #tpu.memory_space<vmem>>, vector<1x64xf32>
    %130 = vector.broadcast %129 : vector<1x64xf32> to vector<32x64xf32>
    %131 = arith.addf %128, %130 : vector<32x64xf32>
    %cst_52 = arith.constant 0.000000e+00 : f32
    %132 = vector.broadcast %cst_52 : f32 to vector<32x64xf32>
    %133 = arith.maximumf %131, %132 : vector<32x64xf32>
    %134 = vector.shape_cast %133 : vector<32x64xf32> to vector<16x2x64xf32>
    %cst_53 = arith.constant dense<0xFF800000> : vector<16x64xf32>
    %135 = vector.multi_reduction <maximumf>, %134, %cst_53 [1] : vector<16x2x64xf32> to vector<16x64xf32>
    %136 = tpu.iota {dimensions = array<i32: 0>} : vector<16x1xi32>
    %c3_i32 = arith.constant 3 : i32
    %137 = vector.broadcast %c3_i32 : i32 to vector<16x1xi32>
    %138 = arith.andi %136, %137 : vector<16x1xi32>
    %c2_i32_54 = arith.constant 2 : i32
    %139 = tpu.dynamic_rotate %135 by %c2_i32_54 dim 0 : vector<16x64xf32>, i32 -> vector<16x64xf32>
    %c2_i32_55 = arith.constant 2 : i32
    %140 = vector.broadcast %c2_i32_55 : i32 to vector<16x1xi32>
    %141 = arith.cmpi sge, %138, %140 : vector<16x1xi32>
    %cst_56 = arith.constant 0.000000e+00 : f32
    %142 = vector.shape_cast %141 : vector<16x1xi1> to vector<16x1xi1>
    %143 = vector.broadcast %142 : vector<16x1xi1> to vector<16x64xi1>
    %144 = vector.broadcast %cst_56 : f32 to vector<16x64xf32>
    %145 = arith.select %143, %139, %144 : vector<16x64xi1>, vector<16x64xf32>
    %c1_i32_57 = arith.constant 1 : i32
    %146 = tpu.dynamic_rotate %135 by %c1_i32_57 dim 0 : vector<16x64xf32>, i32 -> vector<16x64xf32>
    %c1_i32_58 = arith.constant 1 : i32
    %147 = vector.broadcast %c1_i32_58 : i32 to vector<16x1xi32>
    %148 = arith.cmpi sge, %138, %147 : vector<16x1xi32>
    %cst_59 = arith.constant 0.000000e+00 : f32
    %149 = vector.shape_cast %148 : vector<16x1xi1> to vector<16x1xi1>
    %150 = vector.broadcast %149 : vector<16x1xi1> to vector<16x64xi1>
    %151 = vector.broadcast %cst_59 : f32 to vector<16x64xf32>
    %152 = arith.select %150, %146, %151 : vector<16x64xi1>, vector<16x64xf32>
    %c15_i32_60 = arith.constant 15 : i32
    %153 = tpu.dynamic_rotate %135 by %c15_i32_60 dim 0 : vector<16x64xf32>, i32 -> vector<16x64xf32>
    %c3_i32_61 = arith.constant 3 : i32
    %154 = vector.broadcast %c3_i32_61 : i32 to vector<16x1xi32>
    %155 = arith.cmpi slt, %138, %154 : vector<16x1xi32>
    %cst_62 = arith.constant 0.000000e+00 : f32
    %156 = vector.shape_cast %155 : vector<16x1xi1> to vector<16x1xi1>
    %157 = vector.broadcast %156 : vector<16x1xi1> to vector<16x64xi1>
    %158 = vector.broadcast %cst_62 : f32 to vector<16x64xf32>
    %159 = arith.select %157, %153, %158 : vector<16x64xi1>, vector<16x64xf32>
    %c14_i32_63 = arith.constant 14 : i32
    %160 = tpu.dynamic_rotate %135 by %c14_i32_63 dim 0 : vector<16x64xf32>, i32 -> vector<16x64xf32>
    %c2_i32_64 = arith.constant 2 : i32
    %161 = vector.broadcast %c2_i32_64 : i32 to vector<16x1xi32>
    %162 = arith.cmpi slt, %138, %161 : vector<16x1xi32>
    %cst_65 = arith.constant 0.000000e+00 : f32
    %163 = vector.shape_cast %162 : vector<16x1xi1> to vector<16x1xi1>
    %164 = vector.broadcast %163 : vector<16x1xi1> to vector<16x64xi1>
    %165 = vector.broadcast %cst_65 : f32 to vector<16x64xf32>
    %166 = arith.select %164, %160, %165 : vector<16x64xi1>, vector<16x64xf32>
    %167 = tpu.concatenate %145, %152, %135, %159, %166 in 1 : vector<16x64xf32>, vector<16x64xf32>, vector<16x64xf32>, vector<16x64xf32>, vector<16x64xf32> -> vector<16x320xf32>
    %168 = arith.truncf %167 : vector<16x320xf32> to vector<16x320xbf16>
    %c0_66 = arith.constant 0 : index
    %c0_67 = arith.constant 0 : index
    %169 = vector.load %arg10[%c0_66, %c0_67] : memref<320x128xbf16, #tpu.memory_space<vmem>>, vector<320x128xbf16>
    %cst_68 = arith.constant dense<0.000000e+00> : vector<16x128xf32>
    %170 = tpu.matmul %168, %169, %cst_68 {dimension_numbers = #tpu.dot_dimension_numbers<[1], [0], [0], [1], [0, 0, 1, 1], [], []>} : vector<16x320xbf16>, vector<320x128xbf16>, vector<16x128xf32> -> vector<16x128xf32>
    %c0_69 = arith.constant 0 : index
    %c0_70 = arith.constant 0 : index
    %171 = vector.load %arg11[%c0_69, %c0_70] : memref<1x128xf32, #tpu.memory_space<vmem>>, vector<1x128xf32>
    %172 = vector.broadcast %171 : vector<1x128xf32> to vector<16x128xf32>
    %173 = arith.mulf %170, %172 : vector<16x128xf32>
    %c0_71 = arith.constant 0 : index
    %c0_72 = arith.constant 0 : index
    %174 = vector.load %arg12[%c0_71, %c0_72] : memref<1x128xf32, #tpu.memory_space<vmem>>, vector<1x128xf32>
    %175 = vector.broadcast %174 : vector<1x128xf32> to vector<16x128xf32>
    %176 = arith.addf %173, %175 : vector<16x128xf32>
    %cst_73 = arith.constant 0.000000e+00 : f32
    %177 = vector.broadcast %cst_73 : f32 to vector<16x128xf32>
    %178 = arith.maximumf %176, %177 : vector<16x128xf32>
    %179 = vector.shape_cast %178 : vector<16x128xf32> to vector<8x2x128xf32>
    %cst_74 = arith.constant dense<0xFF800000> : vector<8x128xf32>
    %180 = vector.multi_reduction <maximumf>, %179, %cst_74 [1] : vector<8x2x128xf32> to vector<8x128xf32>
    %181 = vector.shape_cast %180 : vector<8x128xf32> to vector<4x2x128xf32>
    %182 = vector.extract_strided_slice %181 {offsets = [0, 0, 0], sizes = [4, 1, 128], strides = [1, 1, 1]} : vector<4x2x128xf32> to vector<4x1x128xf32>
    %183 = vector.shape_cast %182 : vector<4x1x128xf32> to vector<4x128xf32>
    %184 = vector.extract_strided_slice %181 {offsets = [0, 1, 0], sizes = [4, 1, 128], strides = [1, 1, 1]} : vector<4x2x128xf32> to vector<4x1x128xf32>
    %185 = vector.shape_cast %184 : vector<4x1x128xf32> to vector<4x128xf32>
    %186 = tpu.concatenate %183, %185 in 1 : vector<4x128xf32>, vector<4x128xf32> -> vector<4x256xf32>
    %187 = arith.truncf %186 : vector<4x256xf32> to vector<4x256xbf16>
    %c0_75 = arith.constant 0 : index
    %c0_76 = arith.constant 0 : index
    %188 = vector.load %arg13[%c0_75, %c0_76] : memref<256x128xbf16, #tpu.memory_space<vmem>>, vector<256x128xbf16>
    %cst_77 = arith.constant dense<0.000000e+00> : vector<4x128xf32>
    %189 = tpu.matmul %187, %188, %cst_77 {dimension_numbers = #tpu.dot_dimension_numbers<[1], [0], [0], [1], [0, 0, 1, 1], [], []>} : vector<4x256xbf16>, vector<256x128xbf16>, vector<4x128xf32> -> vector<4x128xf32>
    %c0_78 = arith.constant 0 : index
    %c0_79 = arith.constant 0 : index
    %190 = vector.load %arg14[%c0_78, %c0_79] : memref<1x128xf32, #tpu.memory_space<vmem>>, vector<1x128xf32>
    %191 = vector.broadcast %190 : vector<1x128xf32> to vector<4x128xf32>
    %192 = arith.addf %189, %191 : vector<4x128xf32>
    %cst_80 = arith.constant 0.000000e+00 : f32
    %193 = vector.broadcast %cst_80 : f32 to vector<4x128xf32>
    %194 = arith.maximumf %192, %193 : vector<4x128xf32>
    %195 = arith.truncf %194 : vector<4x128xf32> to vector<4x128xbf16>
    %c0_81 = arith.constant 0 : index
    %c0_82 = arith.constant 0 : index
    %196 = vector.load %arg15[%c0_81, %c0_82] : memref<128x256xbf16, #tpu.memory_space<vmem>>, vector<128x256xbf16>
    %cst_83 = arith.constant dense<0.000000e+00> : vector<4x256xf32>
    %197 = tpu.matmul %195, %196, %cst_83 {dimension_numbers = #tpu.dot_dimension_numbers<[1], [0], [0], [1], [0, 0, 1, 1], [], []>} : vector<4x128xbf16>, vector<128x256xbf16>, vector<4x256xf32> -> vector<4x256xf32>
    %c0_84 = arith.constant 0 : index
    %c0_85 = arith.constant 0 : index
    %198 = vector.load %arg16[%c0_84, %c0_85] : memref<1x256xf32, #tpu.memory_space<vmem>>, vector<1x256xf32>
    %199 = vector.broadcast %198 : vector<1x256xf32> to vector<4x256xf32>
    %200 = arith.addf %197, %199 : vector<4x256xf32>
    %c0_86 = arith.constant 0 : index
    %c0_87 = arith.constant 0 : index
    %201 = vector.load %arg17[%c0_86, %c0_87] : memref<4x256xf32, #tpu.memory_space<vmem>>, vector<4x256xf32>
    tpu.vector_store %arg17[%c0_86, %c0_87], %200 {strides = array<i32>} : memref<4x256xf32, #tpu.memory_space<vmem>>, vector<4x256xf32>,
    return
  }
}

</mosaic_0001>

<bundles_post_ra>
// kernel: forward.1
= control target key start
LH: loop header
LB: loop body
LE: loop exit
PB: predicated region body
PF: predicated region fallthrough
CT: control target
= control target key end

     0   :  { %s6043_s0 = inlined_call_operand.vmem [shape: f32[128,3], index: 0, kind: input, shape index: {}]   ;;  %s6044_s1 = inlined_call_operand.vmem [shape: bf16[15,16], index: 1, kind: input, shape index: {}]   ;;  %s6045_s2 = inlined_call_operand.vmem [shape: f32[1,16], index: 2, kind: input, shape index: {}]   ;;  %s6046_s3 = inlined_call_operand.vmem [shape: f32[1,16], index: 3, kind: input, shape index: {}]   ;;  %s6047_s4 = inlined_call_operand.vmem [shape: bf16[80,32], index: 4, kind: input, shape index: {}]   ;;  %s6048_s5 = inlined_call_operand.vmem [shape: f32[1,32], index: 5, kind: input, shape index: {}]   ;;  %s6049_s6 = inlined_call_operand.vmem [shape: f32[1,32], index: 6, kind: input, shape index: {}]   ;;  %s6050_s7 = inlined_call_operand.vmem [shape: bf16[160,64], index: 7, kind: input, shape index: {}]   ;;  %s6051_s8 = inlined_call_operand.vmem [shape: f32[1,64], index: 8, kind: input, shape index: {}]   ;;  %s6052_s9 = inlined_call_operand.vmem [shape: f32[1,64], index: 9, kind: input, shape index: {}]   ;;  %s6053_s10 = inlined_call_operand.vmem [shape: bf16[320,128], index: 10, kind: input, shape index: {}]   ;;  %s6054_s11 = inlined_call_operand.vmem [shape: f32[1,128], index: 11, kind: input, shape index: {}]   ;;  %s6055_s12 = inlined_call_operand.vmem [shape: f32[1,128], index: 12, kind: input, shape index: {}]   ;;  %s6056_s13 = inlined_call_operand.hbm [shape: bf16[256,128], index: 13, kind: input, shape index: {}]   ;;  %s6057_s14 = inlined_call_operand.vmem [shape: f32[1,128], index: 14, kind: input, shape index: {}]   ;;  %s6058_s15 = inlined_call_operand.hbm [shape: bf16[128,256], index: 15, kind: input, shape index: {}]   ;;  %s6059_s16 = inlined_call_operand.vmem [shape: f32[1,256], index: 16, kind: input, shape index: {}]   ;;  %s6060_s17 = inlined_call_operand.vmem [shape: f32[4,256], index: 17, kind: output, shape index: {}]  }
   0x1   :  { %6066 = sst [smem:[#allocation8_spill]] %s6043_s0 }
   0x2   :  { %6067 = sst [smem:[#allocation9_spill]] %s6044_s1 }
   0x3   :  { %22 = vsyncpa [#allocation3], 0  ;;  %s54_s26 = sshll.u32 %s6056_s13, 4  ;;  %s55_s26 = int_to_ptr.hbm [resolvable:$true] %s54_s26 }
   0x4   :  { %23 = vsyncpa [#allocation5], 0  ;;  %s4390_s27 = smov [#allocation2]   ;;  %s69_s30 = sshll.u32 %s6058_s15, 4  ;;  %s70_s30 = int_to_ptr.hbm [resolvable:$true] %s69_s30 }
   0x5   :  { %s56_s28 = sshll.u32 %s4390_s27, 4  ;;  %s4391_s18 = smov 64   ;;  %s57_s28 = int_to_ptr.vmem [resolvable:$true] %s56_s28 }
   0x6   :  { %s4392_s19 = smov 4   ;;  %s4393_s1 = smov [#allocation4]  }
   0x7   :  { %62 = dma.hbm_to_vmem [thread:$0]  %s55_s26, 2048, %s57_s28, [#allocation3], %s4391_s18, %s4391_s18, %s4392_s19  }
   0x8   :  { %s71_s20 = sshll.u32 %s4393_s1, 4  ;;  %s4394_s21 = smov 128   ;;  %s72_s20 = int_to_ptr.vmem [resolvable:$true] %s71_s20 }
   0x9   :  { %s4395_s13 = smov 8  }
   0xa   :  { %77 = dma.hbm_to_vmem [thread:$0]  %s70_s30, 2048, %s72_s20, [#allocation5], %s4394_s21, %s4394_s21, %s4395_s13  }
   0xb   :  { %4386 = dma.done.wait [#allocation3], 2048  }
   0xc   :  { %4387 = vsyncadd [#allocation3], 4294965248 }
   0xd   :  { %4388 = dma.done.wait [#allocation5], 2048  }
   0xe   :  { %4389 = vsyncadd [#allocation5], 4294965248  ;;  %v105_v0 = vlaneseq  ;;  %s6068_s23 = sld [smem:[#allocation8_spill]]  ;;  %s4396_s20 = smov 3   ;;  %vm890_vm15 = vcmask 1046528  }
   0xf   :  { %s4397_s21 = smov 9   ;;  %s4398_s13 = smov 6  }
  0x10   :  { %v4503_v1 = vshrl.u32 %v105_v0, 7  ;;  %s4399_s15 = smov 12   ;;  %s6079_s19 = sld [smem:[#allocation9_spill]] }
  0x11   :  { %s4401_s22 = smov 32   ;;  %s4402_s24 = smov 48  }
  0x12   :  { %v122_v2 = vand.u32 31, %v4503_v1  ;;  %vm6062_vm0 = vcmp.lt.s32.totalorder %v4503_v1, 1  ;;  %vm348_vm2 = vcmp.lt.s32.totalorder %v4503_v1, 7  ;;  %vm445_vm3 = vcmp.lt.s32.totalorder %v4503_v1, 6  ;;  %s4403_s25 = smov 16   ;;  %s4404_s28 = smov 96  }
  0x13   :  { %v4542_v14 = vadd.s32 24, %v4503_v1  ;;  %v4606_v45 = vadd.s32 32, %v4503_v1 }
  0x14   :  { %v4509_v3 = vld [vmem:[%s6068_s23] sm:$0xff]  ;;  %v4514_v4 = vld [vmem:[%s6068_s23 + $0x8] sm:$0xff]  ;;  %v4519_v5 = vld [vmem:[%s6068_s23 + $0x78] sm:$0xff]  ;;  %vm4524_vm1 = vcmp.ge.s32.totalorder %v122_v2, 1 }
  0x15   :  { %v235_v7 = vrot.slane %v4509_v3, 7  ;;  %v236_v8 = vrot.slane %v4514_v4, 7  ;;  %v250_v9 = vrot.slane %v4519_v5, 7  ;;  %v4535_v10 = vld [vmem:[%s6068_s23 + $0x10] sm:$0xff]  ;;  %v332_v11 = vrot.slane %v4509_v3, 1  ;;  %v4555_v19 = vld [vmem:[%s6068_s23 + $0x18] sm:$0xff] }
  0x16   :  { %v333_v12 = vrot.slane %v4514_v4, 1  ;;  %v334_v13 = vrot.slane %v4535_v10, 1  ;;  %v429_v17 = vrot.slane %v4509_v3, 2  ;;  %v430_v18 = vrot.slane %v4514_v4, 2  ;;  %v4569_v26 = vld [vmem:[%s6068_s23 + $0x20] sm:$0xff]  ;;  %v4623_v52 = vld [vmem:[%s6068_s23 + $0x28] sm:$0xff] }
  0x17   :  { %v266_v15 = vsel %vm6062_vm0, %v235_v7, %v236_v8  ;;  %v267_v16 = vsel %vm6062_vm0, %v250_v9, %v235_v7  ;;  %v431_v23 = vrot.slane %v4535_v10, 2  ;;  %v125_v27 = vand.u32 31, %v4542_v14  ;;  %v4628_v53 = vld [vmem:[%s6068_s23 + $0x30] sm:$0xff]  ;;  %v4651_v6 = vld [vmem:[%s6068_s23 + $0x38] sm:$0xff] }
  0x18   :  { %v316_v20 = vsel %vm4524_vm1, %v267_v16, 0.0  ;;  %v362_v21 = vsel %vm348_vm2, %v333_v12, %v334_v13  ;;  %v363_v22 = vsel %vm348_vm2, %v332_v11, %v333_v12  ;;  %v237_v28 = vrot.slane %v4535_v10, 7 }
  0x19   :  { %v4047_v24 = vpack.i.bf16 %v266_v15, %v316_v20  ;;  %v4057_v25 = vpack.i.bf16 %v362_v21, %v363_v22  ;;  %v459_v29 = vsel %vm445_vm3, %v430_v18, %v431_v23  ;;  %v460_v30 = vsel %vm445_vm3, %v429_v17, %v430_v18  ;;  %v4666_v21 = vld [vmem:[%s6068_s23 + $0x40] sm:$0xff] }
  0x1a   :  { %v335_v31 = vrot.slane %v4555_v19, 1  ;;  %v238_v32 = vrot.slane %v4555_v19, 7  ;;  %v336_v33 = vrot.slane %v4569_v26, 1  ;;  %v432_v34 = vrot.slane %v4555_v19, 2 }
  0x1b   :  { %4048 = vrot.lane.b32.xlu0 %v4047_v24, %s4396_s20  ;;  %4058 = vrot.lane.b32.xlu1 %v4057_v25, %s4397_s21  ;;  %v433_v35 = vrot.slane %v4569_v26, 2  ;;  %v265_v36 = vsel %vm6062_vm0, %v236_v8, %v237_v28  ;;  %v4052_v38 = vpack.i.bf16 %v4514_v4, %v4509_v3  ;;  %v4062_v39 = vpack.i.bf16 %v459_v29, %v460_v30 }
  0x1c   :  { %v264_v37 = vsel %vm6062_vm0, %v237_v28, %v238_v32  ;;  %vm4592_vm4 = vcmp.lt.s32.totalorder %v125_v27, 31  ;;  %v360_v42 = vsel %vm348_vm2, %v335_v31, %v336_v33  ;;  %vm4600_vm5 = vcmp.lt.s32.totalorder %v125_v27, 30 }
  0x1d   :  { %v4067_v40 = vpack.i.bf16 %v264_v37, %v265_v36  ;;  %v457_v43 = vsel %vm445_vm3, %v432_v34, %v433_v35  ;;  %v126_v46 = vand.u32 31, %v4606_v45  ;;  %v239_v47 = vrot.slane %v4569_v26, 7 }
  0x1e   :  { %v361_v48 = vsel %vm348_vm2, %v334_v13, %v335_v31  ;;  %v416_v49 = vsel %vm4592_vm4, %v360_v42, 0.0  ;;  %v458_v50 = vsel %vm445_vm3, %v431_v23, %v432_v34  ;;  %v513_v51 = vsel %vm4600_vm5, %v457_v43, 0.0 }
  0x1f   :  { %4068 = vrot.lane.b32.xlu2 %v4067_v40, %s4396_s20  ;;  %v4072_v54 = vpack.i.bf16 %v4555_v19, %v4535_v10  ;;  %v4077_v55 = vpack.i.bf16 %v416_v49, %v361_v48  ;;  %v4082_v56 = vpack.i.bf16 %v513_v51, %v458_v50  ;;  %v263_v57 = vsel %vm6062_vm0, %v238_v32, %v239_v47 }
  0x20   :  { %vm272_vm6 = vcmp.ge.s32.totalorder %v126_v46, 1  ;;  %v337_v58 = vrot.slane %v4623_v52, 1  ;;  %v338_v59 = vrot.slane %v4628_v53, 1  ;;  %v240_v60 = vrot.slane %v4623_v52, 7 }
  0x21   :  { %v320_v62 = vsel %vm272_vm6, %v263_v57, 0.0  ;;  %v434_v8 = vrot.slane %v4623_v52, 2  ;;  %v4092_v12 = vpack.i.bf16 %v4623_v52, %v4569_v26  ;;  %v241_v15 = vrot.slane %v4628_v53, 7 }
  0x22   :  { %v262_v61 = vsel %vm6062_vm0, %v239_v47, %v240_v60  ;;  %v358_v63 = vsel %vm348_vm2, %v337_v58, %v338_v59  ;;  %v359_v0 = vsel %vm348_vm2, %v336_v33, %v337_v58  ;;  %v242_v16 = vrot.slane %v4651_v6, 7  ;;  %v4688_v33 = vld [vmem:[%s6068_s23 + $0x48] sm:$0xff] }
  0x23   :  { %4053 = vrot.lane.b32.xlu0 %v4052_v38, %s4398_s13  ;;  %4063 = vrot.lane.b32.xlu1 %v4062_v39, %s4399_s15  ;;  %v4087_v7 = vpack.i.bf16 %v262_v61, %v320_v62  ;;  %v4097_v13 = vpack.i.bf16 %v358_v63, %v359_v0  ;;  %v4659_v18 = vadd.s32 56, %v4503_v1  ;;  %v435_v20 = vrot.slane %v4628_v53, 2  ;;  %v4733_v63 = vld [vmem:[%s6068_s23 + $0x58] sm:$0xff]  ;;  %v4738_v0 = vld [vmem:[%s6068_s23 + $0x60] sm:$0xff] }
  0x24   :  { %v4669_v22 = vadd.s32 64, %v4503_v1  ;;  %v456_v24 = vsel %vm445_vm3, %v433_v35, %v434_v8  ;;  %v260_v25 = vsel %vm6062_vm0, %v241_v15, %v242_v16  ;;  %v339_v27 = vrot.slane %v4651_v6, 1 }
  0x25   :  { %v455_v23 = vsel %vm445_vm3, %v434_v8, %v435_v20  ;;  %v261_v28 = vsel %vm6062_vm0, %v240_v60, %v241_v15  ;;  %v129_v29 = vand.u32 31, %v4659_v18  ;;  %v436_v30 = vrot.slane %v4651_v6, 2 }
  0x26   :  { %v437_v31 = vrot.slane %v4666_v21, 2  ;;  %v4102_v32 = vpack.i.bf16 %v455_v23, %v456_v24  ;;  %v130_v34 = vand.u32 31, %v4669_v22  ;;  %v243_v35 = vrot.slane %v4666_v21, 7 }
  0x27   :  { %4073 = vrot.lane.b32.xlu2 %v4072_v54, %s4398_s13  ;;  %v340_v36 = vrot.slane %v4666_v21, 1  ;;  %v4107_v37 = vpack.i.bf16 %v260_v25, %v261_v28  ;;  %v4112_v38 = vpack.i.bf16 %v4651_v6, %v4628_v53  ;;  %vm4697_vm7 = vcmp.lt.s32.totalorder %v129_v29, 31  ;;  %v4722_v54 = vld [vmem:[%s6068_s23 + $0x50] sm:$0xff] }
  0x28   :  { %v244_v41 = vrot.slane %v4688_v33, 7  ;;  %v453_v42 = vsel %vm445_vm3, %v436_v30, %v437_v31  ;;  %vm469_vm8 = vcmp.lt.s32.totalorder %v129_v29, 30  ;;  %v259_v43 = vsel %vm6062_vm0, %v242_v16, %v243_v35 }
  0x29   :  { %v356_v39 = vsel %vm348_vm2, %v339_v27, %v340_v36  ;;  %vm276_vm9 = vcmp.ge.s32.totalorder %v130_v34, 1  ;;  %v357_v44 = vsel %vm348_vm2, %v338_v59, %v339_v27  ;;  %v454_v48 = vsel %vm445_vm3, %v435_v20, %v436_v30 }
  0x2a   :  { %v420_v47 = vsel %vm4697_vm7, %v356_v39, 0.0  ;;  %v517_v49 = vsel %vm469_vm8, %v453_v42, 0.0  ;;  %v258_v50 = vsel %vm6062_vm0, %v243_v35, %v244_v41  ;;  %v324_v51 = vsel %vm276_vm9, %v259_v43, 0.0  ;;  %v4782_v39 = vld [vmem:[%s6068_s23 + $0x68] sm:$0xff] }
  0x2b   :  { %4078 = vrot.lane.b32.xlu0 %v4077_v55, %s4397_s21  ;;  %4083 = vrot.lane.b32.xlu1 %v4082_v56, %s4399_s15  ;;  %v4117_v55 = vpack.i.bf16 %v420_v47, %v357_v44  ;;  %v4122_v56 = vpack.i.bf16 %v517_v49, %v454_v48  ;;  %v4127_v57 = vpack.i.bf16 %v258_v50, %v324_v51  ;;  %v341_v58 = vrot.slane %v4688_v33, 1 }
  0x2c   :  { %v342_v59 = vrot.slane %v4722_v54, 1  ;;  %v438_v60 = vrot.slane %v4688_v33, 2  ;;  %v439_v61 = vrot.slane %v4722_v54, 2  ;;  %v117_v62 = vadd.s32 88, %v4503_v1 }
  0x2d   :  { %v355_v8 = vsel %vm348_vm2, %v340_v36, %v341_v58  ;;  %v343_v16 = vrot.slane %v4733_v63, 1  ;;  %v344_v20 = vrot.slane %v4738_v0, 1  ;;  %v4132_v23 = vpack.i.bf16 %v4688_v33, %v4666_v21 }
  0x2e   :  { %v133_v15 = vand.u32 31, %v117_v62  ;;  %v245_v24 = vrot.slane %v4722_v54, 7  ;;  %v246_v28 = vrot.slane %v4733_v63, 7  ;;  %v440_v36 = vrot.slane %v4733_v63, 2 }
  0x2f   :  { %4088 = vrot.lane.b32.xlu2 %v4087_v7, %s4396_s20  ;;  %v354_v7 = vsel %vm348_vm2, %v341_v58, %v342_v59  ;;  %v352_v29 = vsel %vm348_vm2, %v343_v16, %v344_v20  ;;  %v441_v43 = vrot.slane %v4738_v0, 2  ;;  %v4152_v44 = vpack.i.bf16 %v4733_v63, %v4722_v54  ;;  %v4806_v58 = vld [vmem:[%s6068_s23 + $0x70] sm:$0xff] }
  0x30   :  { %v4137_v25 = vpack.i.bf16 %v354_v7, %v355_v8  ;;  %vm4760_vm10 = vcmp.lt.s32.totalorder %v133_v15, 31  ;;  %v257_v35 = vsel %vm6062_vm0, %v244_v41, %v245_v24  ;;  %v247_v41 = vrot.slane %v4738_v0, 7 }
  0x31   :  { %v449_v48 = vsel %vm445_vm3, %v440_v36, %v441_v43  ;;  %vm473_vm11 = vcmp.lt.s32.totalorder %v133_v15, 30  ;;  %v248_v49 = vrot.slane %v4782_v39, 7  ;;  %v450_v51 = vsel %vm445_vm3, %v439_v61, %v440_v36 }
  0x32   :  { %v255_v50 = vsel %vm6062_vm0, %v246_v28, %v247_v41  ;;  %v4172_v62 = vpack.i.bf16 %v4782_v39, %v4738_v0  ;;  %v443_v7 = vrot.slane %v4806_v58, 2  ;;  %v249_v8 = vrot.slane %v4806_v58, 7 }
  0x33   :  { %4093 = vrot.lane.b32.xlu0 %v4092_v12, %s4398_s13  ;;  %4098 = vrot.lane.b32.xlu1 %v4097_v13, %s4397_s21  ;;  %v451_v12 = vsel %vm445_vm3, %v438_v60, %v439_v61  ;;  %v452_v13 = vsel %vm445_vm3, %v437_v31, %v438_v60  ;;  %v4766_v31 = vadd.s32 96, %v4503_v1  ;;  %v442_v61 = vrot.slane %v4782_v39, 2 }
  0x34   :  { %v4142_v27 = vpack.i.bf16 %v451_v12, %v452_v13  ;;  %v252_v15 = vsel %vm6062_vm0, %v249_v8, %v250_v9  ;;  %v444_v30 = vrot.slane %v4519_v5, 2  ;;  %vm891_vm1 = vcmask 1047552  }
  0x35   :  { %v134_v40 = vand.u32 31, %v4766_v31  ;;  %v447_v12 = vsel %vm445_vm3, %v442_v61, %v443_v7  ;;  %v448_v13 = vsel %vm445_vm3, %v441_v43, %v442_v61  ;;  %vm154_vm4 = vcmp.lt.s32.totalorder %v4503_v1, 2 }
  0x36   :  { %v461_v36 = vsel %vm445_vm3, %v444_v30, %v429_v17  ;;  %vm4866_vm5 = vcmp.ge.s32.totalorder %v122_v2, 2  ;;  %vm782_vm6 = vcmask 23552   ;;  %vm799_vm7 = vcmask 48128  }
  0x37   :  { %4103 = vrot.lane.b32.xlu2 %v4102_v32, %s4399_s15  ;;  %v256_v32 = vsel %vm6062_vm0, %v245_v24, %v246_v28  ;;  %vm280_vm12 = vcmp.ge.s32.totalorder %v134_v40, 1  ;;  %v347_v28 = vrot.slane %v4519_v5, 1  ;;  %vm816_vm8 = vcmask 72704  }
  0x38   :  { %v4147_v42 = vpack.i.bf16 %v256_v32, %v257_v35  ;;  %vm833_vm9 = vcmask 97280  }
  0x39   :  { %v364_v9 = vsel %vm348_vm2, %v347_v28, %v332_v11  ;;  %v345_v11 = vrot.slane %v4782_v39, 1 }
  0x3b   :  { %4108 = vrot.lane.b32.xlu0 %v4107_v37, %s4396_s20  ;;  %4113 = vrot.lane.b32.xlu1 %v4112_v38, %s4398_s13  ;;  %v353_v37 = vsel %vm348_vm2, %v342_v59, %v343_v16  ;;  %v424_v38 = vsel %vm4760_vm10, %v352_v29, 0.0  ;;  %v253_v16 = vsel %vm6062_vm0, %v248_v49, %v249_v8  ;;  %v346_v29 = vrot.slane %v4806_v58, 1 }
  0x3c   :  { %v4157_v47 = vpack.i.bf16 %v424_v38, %v353_v37  ;;  %v4187_v24 = vpack.i.bf16 %v252_v15, %v253_v16  ;;  %v446_v38 = vsel %vm445_vm3, %v443_v7, %v444_v30  ;;  %v351_v17 = vsel %vm348_vm2, %v344_v20, %v345_v11 }
  0x3d   :  { %v349_v32 = vsel %vm348_vm2, %v346_v29, %v347_v28  ;;  %v350_v43 = vsel %vm348_vm2, %v345_v11, %v346_v29  ;;  %v153_v20 = vrot.slane %v4519_v5, 6  ;;  %vm865_vm10 = vcmask 121856  }
  0x3f   :  { %4118 = vrot.lane.b32.xlu2 %v4117_v55, %s4397_s21  ;;  %v521_v55 = vsel %vm473_vm11, %v449_v48, 0.0  ;;  %v4400_v48 = vmov 65535   ;;  %vm175_vm11 = vcmp.ge.s32.totalorder %v126_v46, 2 }
  0x40   :  { %v4162_v59 = vpack.i.bf16 %v521_v55, %v450_v51  ;;  %v4192_v55 = vpack.i.bf16 %v4519_v5, %v4806_v58 }
  0x43   :  { %4123 = vrot.lane.b32.xlu0 %v4122_v56, %s4399_s15  ;;  %4128 = vrot.lane.b32.xlu1 %v4127_v57, %s4396_s20  ;;  %v254_v56 = vsel %vm6062_vm0, %v247_v41, %v248_v49  ;;  %v328_v57 = vsel %vm280_vm12, %v255_v50, 0.0  ;;  %v892_v49 = vsel %vm890_vm15, 4294967295, %v4400_v48  ;;  %vm179_vm12 = vcmp.ge.s32.totalorder %v130_v34, 2 }
  0x44   :  { %v4167_v60 = vpack.i.bf16 %v254_v56, %v328_v57  ;;  %v893_v50 = vsel %vm891_vm1, %v892_v49, 0  ;;  %v138_v57 = vrot.slane %v4509_v3, 6  ;;  %vm1635_vm15 = vcmask 1041409  }
  0x45   :  { %vm1637_vm1 = vcmask 1042434  }
  0x46   :  { %v170_v61 = vsel %vm154_vm4, %v153_v20, %v138_v57 }
  0x47   :  { %4133 = vrot.lane.b32.xlu2 %v4132_v23, %s4398_s13  ;;  %v4182_v23 = vpack.i.bf16 %v447_v12, %v448_v13 }
  0x4b   :  { %4138 = vrot.lane.b32.xlu0 %v4137_v25, %s4397_s21  ;;  %4143 = vrot.lane.b32.xlu1 %v4142_v27, %s4399_s15  ;;  %v121_v25 = vadd.s32 120, %v4503_v1 }
  0x4d   :  { %v137_v27 = vand.u32 31, %v121_v25 }
  0x4f   :  { %4148 = vrot.lane.b32.xlu2 %v4147_v42, %s4396_s20  ;;  %vm380_vm13 = vcmp.lt.s32.totalorder %v137_v27, 31  ;;  %vm477_vm14 = vcmp.lt.s32.totalorder %v137_v27, 30 }
  0x50   :  { %v428_v35 = vsel %vm380_vm13, %v364_v9, 0.0  ;;  %v525_v41 = vsel %vm477_vm14, %v461_v36, 0.0  ;;  %vm183_vm13 = vcmp.ge.s32.totalorder %v134_v40, 2  ;;  %vm1114_vm14 = vcmask 123904  }
  0x51   :  { %v4197_v37 = vpack.i.bf16 %v428_v35, %v349_v32  ;;  %v4202_v42 = vpack.i.bf16 %v525_v41, %v446_v38  ;;  %v140_v32 = vrot.slane %v4535_v10, 6  ;;  %v141_v35 = vrot.slane %v4555_v19, 6 }
  0x53   :  { %4153 = vrot.lane.b32.xlu0 %v4152_v44, %s4398_s13  ;;  %4158 = vrot.lane.b32.xlu1 %v4157_v47, %s4397_s21  ;;  %v4177_v44 = vpack.i.bf16 %v350_v43, %v351_v17  ;;  %v3964_v47 = vld [vmem:[%s6079_s19] sm:$0xff] }
  0x54   :  { %v895_v51 = vand.u32 %v3964_v47, %v893_v50 }
  0x56   :  { %904 = vmatpush.bf16.msra.mxu0 %v895_v51 }
  0x57   :  { %4163 = vrot.lane.b32.xlu2 %v4162_v59, %s4399_s15 }
  0x5b   :  { %4168 = vrot.lane.b32.xlu0 %v4167_v60, %s4396_s20  ;;  %4173 = vrot.lane.b32.xlu1 %v4172_v62, %s4398_s13  ;;  %v139_v60 = vrot.slane %v4514_v4, 6  ;;  %v219_v4 = vsel %vm4866_vm5, %v170_v61, 0.0  ;;  %vm1639_vm5 = vcmask 1043459  }
  0x5d   :  { %v169_v3 = vsel %vm154_vm4, %v138_v57, %v139_v60  ;;  %v168_v10 = vsel %vm154_vm4, %v139_v60, %v140_v32 }
  0x5f   :  { %4178 = vrot.lane.b32.xlu2 %v4177_v44, %s4397_s21  ;;  %v167_v44 = vsel %vm154_vm4, %v140_v32, %v141_v35 }
  0x63   :  { %4183 = vrot.lane.b32.xlu0 %v4182_v23, %s4399_s15  ;;  %4188 = vrot.lane.b32.xlu1 %v4187_v24, %s4396_s20 }
  0x67   :  { %4193 = vrot.lane.b32.xlu2 %v4192_v55, %s4398_s13 }
  0x6b   :  { %4198 = vrot.lane.b32.xlu0 %v4197_v37, %s4397_s21  ;;  %4203 = vrot.lane.b32.xlu1 %v4202_v42, %s4399_s15 }
  0x79   :  { %v4069_v7 = vpop.permute.xlu2 %4068 }
  0x7a   :  { %v4071_v42 = vunpack.i.h.bf16 %v4069_v7  ;;  %v4070_v11 = vunpack.i.l.bf16 %v4069_v7 }
  0x7c   :  { %v786_v49 = vsel %vm782_vm6, %v167_v44, %v4071_v42  ;;  %v785_v50 = vsel %vm782_vm6, %v168_v10, %v4070_v11 }
  0x81   :  { %v4074_v17 = vpop.permute.xlu2 %4073 }
  0x82   :  { %v4076_v19 = vunpack.i.h.bf16 %v4074_v17  ;;  %v4075_v47 = vunpack.i.l.bf16 %v4074_v17  ;;  %v145_v17 = vrot.slane %v4651_v6, 6 }
  0x84   :  { %v802_v57 = vsel %vm799_vm7, %v785_v50, %v4075_v47 }
  0x8d   :  { %v4049_v56 = vpop.permute.xlu0 %4048  ;;  %v4059_v59 = vpop.permute.xlu1 %4058 }
  0x8e   :  { %v4051_v8 = vunpack.i.h.bf16 %v4049_v56  ;;  %v4050_v12 = vunpack.i.l.bf16 %v4049_v56  ;;  %v4061_v28 = vunpack.i.h.bf16 %v4059_v59  ;;  %v4060_v29 = vunpack.i.l.bf16 %v4059_v59 }
  0x8f   :  { %v803_v59 = vsel %vm799_vm7, %v786_v49, %v4076_v19 }
  0x90   :  { %v783_v25 = vsel %vm782_vm6, %v219_v4, %v4050_v12  ;;  %v784_v27 = vsel %vm782_vm6, %v169_v3, %v4051_v8  ;;  %v142_v8 = vrot.slane %v4569_v26, 6  ;;  %v4089_v12 = vpop.permute.xlu2 %4088  ;;  %v143_v3 = vrot.slane %v4623_v52, 6 }
  0x92   :  { %v165_v26 = vsel %vm154_vm4, %v142_v8, %v143_v3 }
  0x95   :  { %v4054_v2 = vpop.permute.xlu0 %4053  ;;  %v4064_v13 = vpop.permute.xlu1 %4063 }
  0x96   :  { %v4056_v15 = vunpack.i.h.bf16 %v4054_v2  ;;  %v4055_v16 = vunpack.i.l.bf16 %v4054_v2  ;;  %v4066_v23 = vunpack.i.h.bf16 %v4064_v13  ;;  %v4065_v24 = vunpack.i.l.bf16 %v4064_v13 }
  0x97   :  { %v166_v13 = vsel %vm154_vm4, %v141_v35, %v142_v8 }
  0x98   :  { %v800_v30 = vsel %vm799_vm7, %v783_v25, %v4055_v16  ;;  %v801_v9 = vsel %vm799_vm7, %v784_v27, %v4056_v15  ;;  %v4091_v15 = vunpack.i.h.bf16 %v4089_v12  ;;  %v4090_v16 = vunpack.i.l.bf16 %v4089_v12  ;;  %v4104_v46 = vpop.permute.xlu2 %4103 }
  0x99   :  { %v817_v36 = vsel %vm816_vm8, %v800_v30, %v4060_v29  ;;  %v818_v37 = vsel %vm816_vm8, %v801_v9, %v4061_v28  ;;  %v223_v25 = vsel %vm175_vm11, %v166_v13, 0.0 }
  0x9a   :  { %v834_v38 = vsel %vm833_vm9, %v817_v36, %v4065_v24  ;;  %v835_v41 = vsel %vm833_vm9, %v818_v37, %v4066_v23  ;;  %v788_v29 = vsel %vm782_vm6, %v165_v26, %v4091_v15  ;;  %v787_v30 = vsel %vm782_vm6, %v223_v25, %v4090_v16 }
  0x9b   :  { %v850_v43 = vpack.c.bf16 %v835_v41, %v834_v38  ;;  %v4106_v37 = vunpack.i.h.bf16 %v4104_v46  ;;  %v4105_v38 = vunpack.i.l.bf16 %v4104_v46  ;;  %v147_v15 = vrot.slane %v4688_v33, 6 }
  0x9d   :  { %3681 = vmatmul.msk.bf16.vlgmr.msra.gmra.mxu0 %vm865_vm10, %v850_v43  ;;  %v4079_v48 = vpop.permute.xlu0 %4078  ;;  %v4084_v56 = vpop.permute.xlu1 %4083  ;;  %v144_v43 = vrot.slane %v4628_v53, 6 }
  0x9e   :  { %v4081_v51 = vunpack.i.h.bf16 %v4079_v48  ;;  %v4080_v55 = vunpack.i.l.bf16 %v4079_v48  ;;  %v4086_v62 = vunpack.i.h.bf16 %v4084_v56  ;;  %v4085_v61 = vunpack.i.l.bf16 %v4084_v56 }
  0x9f   :  { %v163_v50 = vsel %vm154_vm4, %v144_v43, %v145_v17 }
  0xa0   :  { %v820_v60 = vsel %vm816_vm8, %v803_v59, %v4081_v51  ;;  %v819_v7 = vsel %vm816_vm8, %v802_v57, %v4080_v55  ;;  %v164_v51 = vsel %vm154_vm4, %v143_v3, %v144_v43  ;;  %v4119_v56 = vpop.permute.xlu2 %4118  ;;  %v148_v43 = vrot.slane %v4722_v54, 6 }
  0xa1   :  { %v836_v4 = vsel %vm833_vm9, %v819_v7, %v4085_v61  ;;  %v837_v2 = vsel %vm833_vm9, %v820_v60, %v4086_v62  ;;  %v4121_v59 = vunpack.i.h.bf16 %v4119_v56  ;;  %v4120_v62 = vunpack.i.l.bf16 %v4119_v56 }
  0xa2   :  { %v851_v23 = vpack.c.bf16 %v837_v2, %v836_v4  ;;  %v146_v2 = vrot.slane %v4666_v21, 6 }
  0xa4   :  { %v161_v21 = vsel %vm154_vm4, %v146_v2, %v147_v15 }
  0xa5   :  { %v4094_v24 = vpop.permute.xlu0 %4093  ;;  %v4099_v28 = vpop.permute.xlu1 %4098 }
  0xa6   :  { %v4096_v52 = vunpack.i.h.bf16 %v4094_v24  ;;  %v4095_v27 = vunpack.i.l.bf16 %v4094_v24  ;;  %v4101_v9 = vunpack.i.h.bf16 %v4099_v28  ;;  %v4100_v32 = vunpack.i.l.bf16 %v4099_v28 }
  0xa7   :  { %v162_v24 = vsel %vm154_vm4, %v145_v17, %v146_v2  ;;  %v149_v17 = vrot.slane %v4733_v63, 6  ;;  %v151_v2 = vrot.slane %v4782_v39, 6 }
  0xa8   :  { %v805_v35 = vsel %vm799_vm7, %v788_v29, %v4096_v52  ;;  %v804_v36 = vsel %vm799_vm7, %v787_v30, %v4095_v27  ;;  %v4134_v27 = vpop.permute.xlu2 %4133  ;;  %v227_v28 = vsel %vm179_vm12, %v162_v24, 0.0 }
  0xa9   :  { %v821_v41 = vsel %vm816_vm8, %v804_v36, %v4100_v32  ;;  %v822_v42 = vsel %vm816_vm8, %v805_v35, %v4101_v9  ;;  %v4136_v33 = vunpack.i.h.bf16 %v4134_v27  ;;  %v4135_v29 = vunpack.i.l.bf16 %v4134_v27 }
  0xaa   :  { %v838_v44 = vsel %vm833_vm9, %v821_v41, %v4105_v38  ;;  %v839_v10 = vsel %vm833_vm9, %v822_v42, %v4106_v37 }
  0xab   :  { %v852_v48 = vpack.c.bf16 %v839_v10, %v838_v44 }
  0xad   :  { %3682 = vmatmul.msk.bf16.gmra.mxu0 %vm865_vm10, %v851_v23  ;;  %v4109_v11 = vpop.permute.xlu0 %4108  ;;  %v4114_v49 = vpop.permute.xlu1 %4113 }
  0xae   :  { %v4111_v19 = vunpack.i.h.bf16 %v4109_v11  ;;  %v4110_v47 = vunpack.i.l.bf16 %v4109_v11  ;;  %v4116_v55 = vunpack.i.h.bf16 %v4114_v49  ;;  %v4115_v53 = vunpack.i.l.bf16 %v4114_v49 }
  0xb0   :  { %v790_v6 = vsel %vm782_vm6, %v163_v50, %v4111_v19  ;;  %v789_v57 = vsel %vm782_vm6, %v164_v51, %v4110_v47  ;;  %v4149_v11 = vpop.permute.xlu2 %4148  ;;  %v159_v50 = vsel %vm154_vm4, %v148_v43, %v149_v17  ;;  %v160_v51 = vsel %vm154_vm4, %v147_v15, %v148_v43 }
  0xb1   :  { %v806_v60 = vsel %vm799_vm7, %v789_v57, %v4115_v53  ;;  %v807_v7 = vsel %vm799_vm7, %v790_v6, %v4116_v55  ;;  %v4151_v19 = vunpack.i.h.bf16 %v4149_v11  ;;  %v4150_v47 = vunpack.i.l.bf16 %v4149_v11 }
  0xb2   :  { %v823_v3 = vsel %vm816_vm8, %v806_v60, %v4120_v62  ;;  %v824_v4 = vsel %vm816_vm8, %v807_v7, %v4121_v59 }
  0xb3   :  { %v794_v63 = vsel %vm782_vm6, %v159_v50, %v4151_v19  ;;  %v793_v56 = vsel %vm782_vm6, %v160_v51, %v4150_v47 }
  0xb5   :  { %v4124_v61 = vpop.permute.xlu0 %4123  ;;  %v4129_v13 = vpop.permute.xlu1 %4128 }
  0xb6   :  { %v4126_v8 = vunpack.i.h.bf16 %v4124_v61  ;;  %v4125_v12 = vunpack.i.l.bf16 %v4124_v61  ;;  %v4131_v26 = vunpack.i.h.bf16 %v4129_v13  ;;  %v4130_v25 = vunpack.i.l.bf16 %v4129_v13 }
  0xb8   :  { %v840_v16 = vsel %vm833_vm9, %v823_v3, %v4125_v12  ;;  %v841_v23 = vsel %vm833_vm9, %v824_v4, %v4126_v8  ;;  %v792_v9 = vsel %vm782_vm6, %v161_v21, %v4131_v26  ;;  %v791_v32 = vsel %vm782_vm6, %v227_v28, %v4130_v25  ;;  %v4164_v59 = vpop.permute.xlu2 %4163 }
  0xb9   :  { %v853_v52 = vpack.c.bf16 %v841_v23, %v840_v16  ;;  %v808_v35 = vsel %vm799_vm7, %v791_v32, %v4135_v29  ;;  %v809_v36 = vsel %vm799_vm7, %v792_v9, %v4136_v33  ;;  %v4166_v60 = vunpack.i.h.bf16 %v4164_v59 }
  0xba   :  { %v4165_v7 = vunpack.i.l.bf16 %v4164_v59  ;;  %v150_v3 = vrot.slane %v4738_v0, 6  ;;  %v5002_v59 = vld [vmem:[%s6045_s2] ss:$0 sm:$0xff] }
  0xbc   :  { %v158_v16 = vsel %vm154_vm4, %v149_v17, %v150_v3  ;;  %v157_v0 = vsel %vm154_vm4, %v150_v3, %v151_v2 }
  0xbd   :  { %3683 = vmatmul.msk.bf16.gmra.mxu0 %vm865_vm10, %v852_v48  ;;  %v4139_v30 = vpop.permute.xlu0 %4138  ;;  %v4144_v34 = vpop.permute.xlu1 %4143 }
  0xbe   :  { %v4141_v46 = vunpack.i.h.bf16 %v4139_v30  ;;  %v4140_v22 = vunpack.i.l.bf16 %v4139_v30  ;;  %v4146_v37 = vunpack.i.h.bf16 %v4144_v34  ;;  %v4145_v38 = vunpack.i.l.bf16 %v4144_v34 }
  0xc0   :  { %v826_v41 = vsel %vm816_vm8, %v809_v36, %v4141_v46  ;;  %v825_v42 = vsel %vm816_vm8, %v808_v35, %v4140_v22  ;;  %v4179_v21 = vpop.permute.xlu2 %4178  ;;  %v152_v36 = vrot.slane %v4806_v58, 6 }
  0xc1   :  { %v842_v44 = vsel %vm833_vm9, %v825_v42, %v4145_v38  ;;  %v843_v10 = vsel %vm833_vm9, %v826_v41, %v4146_v37  ;;  %v4181_v29 = vunpack.i.h.bf16 %v4179_v21  ;;  %v4180_v31 = vunpack.i.l.bf16 %v4179_v21 }
  0xc2   :  { %v854_v48 = vpack.c.bf16 %v843_v10, %v842_v44  ;;  %v155_v17 = vsel %vm154_vm4, %v152_v36, %v153_v20  ;;  %v156_v44 = vsel %vm154_vm4, %v151_v2, %v152_v36 }
  0xc5   :  { %v4154_v49 = vpop.permute.xlu0 %4153  ;;  %v4159_v53 = vpop.permute.xlu1 %4158 }
  0xc6   :  { %v4156_v55 = vunpack.i.h.bf16 %v4154_v49  ;;  %v4155_v54 = vunpack.i.l.bf16 %v4154_v49  ;;  %v4161_v6 = vunpack.i.h.bf16 %v4159_v53  ;;  %v4160_v57 = vunpack.i.l.bf16 %v4159_v53 }
  0xc8   :  { %v811_v62 = vsel %vm799_vm7, %v794_v63, %v4156_v55  ;;  %v810_v61 = vsel %vm799_vm7, %v793_v56, %v4155_v54  ;;  %v4194_v43 = vpop.permute.xlu2 %4193 }
  0xc9   :  { %v827_v8 = vsel %vm816_vm8, %v810_v61, %v4160_v57  ;;  %v828_v12 = vsel %vm816_vm8, %v811_v62, %v4161_v6  ;;  %v4196_v10 = vunpack.i.h.bf16 %v4194_v43  ;;  %v4195_v58 = vunpack.i.l.bf16 %v4194_v43  ;;  %v5007_v62 = vld [vmem:[%s6046_s3] ss:$0 sm:$0xff] }
  0xca   :  { %v844_v13 = vsel %vm833_vm9, %v827_v8, %v4165_v7  ;;  %v845_v15 = vsel %vm833_vm9, %v828_v12, %v4166_v60 }
  0xcb   :  { %v855_v26 = vpack.c.bf16 %v845_v15, %v844_v13 }
  0xcd   :  { %3684 = vmatmul.msk.bf16.gmra.mxu0 %vm865_vm10, %v853_v52  ;;  %v4169_v4 = vpop.permute.xlu0 %4168  ;;  %v4174_v25 = vpop.permute.xlu1 %4173  ;;  %v231_v52 = vsel %vm183_vm13, %v158_v16, 0.0 }
  0xce   :  { %v4171_v23 = vunpack.i.h.bf16 %v4169_v4  ;;  %v4170_v24 = vunpack.i.l.bf16 %v4169_v4  ;;  %v4176_v39 = vunpack.i.h.bf16 %v4174_v25  ;;  %v4175_v27 = vunpack.i.l.bf16 %v4174_v25 }
  0xd0   :  { %v796_v28 = vsel %vm782_vm6, %v157_v0, %v4171_v23  ;;  %v795_v33 = vsel %vm782_vm6, %v231_v52, %v4170_v24 }
  0xd1   :  { %v812_v30 = vsel %vm799_vm7, %v795_v33, %v4175_v27  ;;  %v813_v9 = vsel %vm799_vm7, %v796_v28, %v4176_v39 }
  0xd2   :  { %v829_v22 = vsel %vm816_vm8, %v812_v30, %v4180_v31  ;;  %v830_v34 = vsel %vm816_vm8, %v813_v9, %v4181_v29 }
  0xd5   :  { %v4184_v40 = vpop.permute.xlu0 %4183  ;;  %v4189_v35 = vpop.permute.xlu1 %4188 }
  0xd6   :  { %v4186_v32 = vunpack.i.h.bf16 %v4184_v40  ;;  %v4185_v46 = vunpack.i.l.bf16 %v4184_v40  ;;  %v4191_v41 = vunpack.i.h.bf16 %v4189_v35  ;;  %v4190_v42 = vunpack.i.l.bf16 %v4189_v35 }
  0xd8   :  { %v846_v37 = vsel %vm833_vm9, %v829_v22, %v4185_v46  ;;  %v847_v38 = vsel %vm833_vm9, %v830_v34, %v4186_v32  ;;  %v798_v47 = vsel %vm782_vm6, %v155_v17, %v4191_v41 }
  0xd9   :  { %v856_v11 = vpack.c.bf16 %v847_v38, %v846_v37  ;;  %v815_v55 = vsel %vm799_vm7, %v798_v47, %v4196_v10 }
  0xdd   :  { %3685 = vmatmul.msk.bf16.gmra.mxu0 %vm865_vm10, %v854_v48  ;;  %v4199_v19 = vpop.permute.xlu0 %4198  ;;  %v797_v48 = vsel %vm782_vm6, %v156_v44, %v4190_v42  ;;  %v4204_v51 = vpop.permute.xlu1 %4203  ;;  %vm1641_vm6 = vcmask 1044484  }
  0xde   :  { %v4201_v49 = vunpack.i.h.bf16 %v4199_v19  ;;  %v4200_v50 = vunpack.i.l.bf16 %v4199_v19  ;;  %v814_v5 = vsel %vm799_vm7, %v797_v48, %v4195_v58  ;;  %v4206_v20 = vunpack.i.h.bf16 %v4204_v51 }
  0xdf   :  { %v4205_v54 = vunpack.i.l.bf16 %v4204_v51  ;;  %vm6065_vm7 = vcmask 1045509  }
  0xe0   :  { %v832_v53 = vsel %vm816_vm8, %v815_v55, %v4201_v49  ;;  %v831_v63 = vsel %vm816_vm8, %v814_v5, %v4200_v50  ;;  %vm6063_vm8 = vcmask 1046534  }
  0xe1   :  { %v848_v56 = vsel %vm833_vm9, %v831_v63, %v4205_v54  ;;  %v849_v6 = vsel %vm833_vm9, %v832_v53, %v4206_v20  ;;  %vm6064_vm9 = vcmask 1047559  }
  0xe2   :  { %v857_v57 = vpack.c.bf16 %v849_v6, %v848_v56 }
  0xed   :  { %3686 = vmatmul.msk.bf16.gmra.mxu0 %vm865_vm10, %v855_v26 }
  0xfd   :  { %3687 = vmatmul.msk.bf16.gmra.mxu0 %vm865_vm10, %v856_v11 }
 0x10d   :  { %3688 = vmatmul.msk.bf16.gmra.mxu0 %vm865_vm10, %v857_v57 }
 0x11a   :  { %v906_v61 = vpop.f32.mrf.mxu0 }
 0x11b   :  { %v950_v60 = vmul.f32 %v5002_v59, %v906_v61 }
 0x11d   :  { %v970_v7 = vadd.f32 %v5007_v62, %v950_v60 }
 0x11f   :  { %v986_v8 = vmax.f32 %v970_v7, 0.0 }
 0x121   :  { %v1018_v12 = vrot.slane %v986_v8, 2  ;;  %v1019_v3 = vrot.slane %v986_v8, 4  ;;  %v1020_v4 = vrot.slane %v986_v8, 6  ;;  %v1115_v2 = vsel %vm1114_vm14, %v986_v8, -inf }
 0x122   :  { %v1116_v13 = vrot.slane %v1115_v2, 4  ;;  %v908_v15 = vpop.f32.mrf.mxu0 }
 0x123   :  { %v1122_v16 = vsel %vm1114_vm14, %v1018_v12, -inf  ;;  %v1129_v23 = vsel %vm1114_vm14, %v1019_v3, -inf  ;;  %v1136_v24 = vsel %vm1114_vm14, %v1020_v4, -inf  ;;  %v951_v26 = vmul.f32 %v5002_v59, %v908_v15 }
 0x124   :  { %v1117_v25 = vmax.f32 %v1115_v2, %v1116_v13  ;;  %v1123_v0 = vrot.slane %v1122_v16, 4  ;;  %v1130_v52 = vrot.slane %v1129_v23, 4  ;;  %v1137_v39 = vrot.slane %v1136_v24, 4 }
 0x125   :  { %v971_v27 = vadd.f32 %v5007_v62, %v951_v26 }
 0x126   :  { %v1118_v21 = vrot.slane %v1117_v25, 2  ;;  %v1124_v28 = vmax.f32 %v1122_v16, %v1123_v0  ;;  %v1131_v33 = vmax.f32 %v1129_v23, %v1130_v52  ;;  %v1138_v29 = vmax.f32 %v1136_v24, %v1137_v39 }
 0x127   :  { %v987_v31 = vmax.f32 %v971_v27, 0.0 }
 0x128   :  { %v1119_v40 = vmax.f32 %v1117_v25, %v1118_v21  ;;  %v1125_v30 = vrot.slane %v1124_v28, 2  ;;  %v1132_v9 = vrot.slane %v1131_v33, 2  ;;  %v1139_v37 = vrot.slane %v1138_v29, 2 }
 0x129   :  { %v1021_v32 = vrot.slane %v987_v31, 2  ;;  %v1022_v46 = vrot.slane %v987_v31, 4  ;;  %v1023_v22 = vrot.slane %v987_v31, 6  ;;  %v1143_v34 = vsel %vm1114_vm14, %v987_v31, -inf }
 0x12a   :  { %v1126_v35 = vmax.f32 %v1124_v28, %v1125_v30  ;;  %v1133_v36 = vmax.f32 %v1131_v33, %v1132_v9  ;;  %v911_v38 = vpop.f32.mrf.mxu0  ;;  %v1144_v41 = vrot.slane %v1143_v34, 4  ;;  %v1120_v17 = vrot.slane %v1119_v40, 1 }
 0x12b   :  { %v1150_v42 = vsel %vm1114_vm14, %v1021_v32, -inf  ;;  %v1157_v11 = vsel %vm1114_vm14, %v1022_v46, -inf  ;;  %v1164_v43 = vsel %vm1114_vm14, %v1023_v22, -inf  ;;  %v1140_v50 = vmax.f32 %v1138_v29, %v1139_v37 }
 0x12c   :  { %v1127_v44 = vrot.slane %v1126_v35, 1  ;;  %v1145_v10 = vmax.f32 %v1143_v34, %v1144_v41  ;;  %v1151_v58 = vrot.slane %v1150_v42, 4  ;;  %v1158_v19 = vrot.slane %v1157_v11, 4 }
 0x12d   :  { %v1165_v47 = vrot.slane %v1164_v43, 4  ;;  %v1134_v49 = vrot.slane %v1133_v36, 1  ;;  %v952_v51 = vmul.f32 %v5002_v59, %v911_v38  ;;  %v1121_v53 = vmax.f32 %v1119_v40, %v1120_v17 }
 0x12e   :  { %v1128_v48 = vmax.f32 %v1126_v35, %v1127_v44  ;;  %v1146_v5 = vrot.slane %v1145_v10, 2  ;;  %v1152_v55 = vmax.f32 %v1150_v42, %v1151_v58  ;;  %v1159_v20 = vmax.f32 %v1157_v11, %v1158_v19 }
 0x12f   :  { %v1166_v54 = vmax.f32 %v1164_v43, %v1165_v47  ;;  %v972_v63 = vadd.f32 %v5007_v62, %v952_v51  ;;  %v1135_v60 = vmax.f32 %v1133_v36, %v1134_v49  ;;  %v1141_v7 = vrot.slane %v1140_v50, 1 }
 0x130   :  { %v1147_v56 = vmax.f32 %v1145_v10, %v1146_v5  ;;  %v1153_v6 = vrot.slane %v1152_v55, 2  ;;  %v1160_v57 = vrot.slane %v1159_v20, 2  ;;  %v1636_v3 = vsel %vm1635_vm15, %v1128_v48, %v1121_v53 }
 0x131   :  { %v1167_v61 = vrot.slane %v1166_v54, 2  ;;  %v988_v8 = vmax.f32 %v972_v63, 0.0  ;;  %v1142_v33 = vmax.f32 %v1140_v50, %v1141_v7  ;;  %v1638_v46 = vsel %vm1637_vm1, %v1135_v60, %v1636_v3 }
 0x132   :  { %v913_v12 = vpop.f32.mrf.mxu0  ;;  %v1148_v4 = vrot.slane %v1147_v56, 1  ;;  %v1154_v2 = vmax.f32 %v1152_v55, %v1153_v6  ;;  %v1161_v13 = vmax.f32 %v1159_v20, %v1160_v57 }
 0x133   :  { %v1024_v15 = vrot.slane %v988_v8, 2  ;;  %v1025_v16 = vrot.slane %v988_v8, 4  ;;  %v1026_v23 = vrot.slane %v988_v8, 6  ;;  %v1171_v24 = vsel %vm1114_vm14, %v988_v8, -inf }
 0x134   :  { %v1155_v26 = vrot.slane %v1154_v2, 1  ;;  %v1162_v25 = vrot.slane %v1161_v13, 1  ;;  %v1168_v0 = vmax.f32 %v1166_v54, %v1167_v61  ;;  %v1172_v52 = vrot.slane %v1171_v24, 4 }
 0x135   :  { %v1178_v39 = vsel %vm1114_vm14, %v1024_v15, -inf  ;;  %v1185_v27 = vsel %vm1114_vm14, %v1025_v16, -inf  ;;  %v1192_v21 = vsel %vm1114_vm14, %v1026_v23, -inf  ;;  %v953_v28 = vmul.f32 %v5002_v59, %v913_v12 }
 0x136   :  { %v1173_v29 = vmax.f32 %v1171_v24, %v1172_v52  ;;  %v1179_v31 = vrot.slane %v1178_v39, 4  ;;  %v1186_v40 = vrot.slane %v1185_v27, 4  ;;  %v1149_v30 = vmax.f32 %v1147_v56, %v1148_v4 }
 0x137   :  { %v1193_v9 = vrot.slane %v1192_v21, 4  ;;  %v973_v32 = vadd.f32 %v5007_v62, %v953_v28  ;;  %v1156_v22 = vmax.f32 %v1154_v2, %v1155_v26  ;;  %v1163_v42 = vmax.f32 %v1161_v13, %v1162_v25 }
 0x138   :  { %v1174_v34 = vrot.slane %v1173_v29, 2  ;;  %v1180_v35 = vmax.f32 %v1178_v39, %v1179_v31  ;;  %v1187_v36 = vmax.f32 %v1185_v27, %v1186_v40  ;;  %v1169_v11 = vrot.slane %v1168_v0, 1 }
 0x139   :  { %v1194_v37 = vmax.f32 %v1192_v21, %v1193_v9  ;;  %v989_v38 = vmax.f32 %v973_v32, 0.0  ;;  %v1640_v10 = vsel %vm1639_vm5, %v1142_v33, %v1638_v46 }
 0x13a   :  { %v916_v41 = vpop.f32.mrf.mxu0  ;;  %v1175_v43 = vmax.f32 %v1173_v29, %v1174_v34  ;;  %v1181_v17 = vrot.slane %v1180_v35, 2  ;;  %v1188_v44 = vrot.slane %v1187_v36, 2  ;;  %v5036_v57 = vmax.f32 %v1168_v0, %v1169_v11 }
 0x13b   :  { %v1195_v58 = vrot.slane %v1194_v37, 2  ;;  %v1027_v19 = vrot.slane %v989_v38, 2  ;;  %v1028_v47 = vrot.slane %v989_v38, 4  ;;  %v1029_v48 = vrot.slane %v989_v38, 6 }
 0x13c   :  { %v1182_v49 = vmax.f32 %v1180_v35, %v1181_v17  ;;  %v1189_v50 = vmax.f32 %v1187_v36, %v1188_v44  ;;  %v1199_v51 = vsel %vm1114_vm14, %v989_v38, -inf  ;;  %v954_v5 = vmul.f32 %v5002_v59, %v916_v41 }
 0x13d   :  { %v1196_v55 = vmax.f32 %v1194_v37, %v1195_v58  ;;  %v1200_v20 = vrot.slane %v1199_v51, 4  ;;  %v1206_v54 = vsel %vm1114_vm14, %v1027_v19, -inf  ;;  %v1213_v53 = vsel %vm1114_vm14, %v1028_v47, -inf }
 0x13e   :  { %v1176_v63 = vrot.slane %v1175_v43, 1  ;;  %v1183_v56 = vrot.slane %v1182_v49, 1  ;;  %v1207_v6 = vrot.slane %v1206_v54, 4  ;;  %v1190_v61 = vrot.slane %v1189_v50, 1 }
 0x13f   :  { %v1201_v60 = vmax.f32 %v1199_v51, %v1200_v20  ;;  %v1214_v7 = vrot.slane %v1213_v53, 4  ;;  %v1220_v8 = vsel %vm1114_vm14, %v1029_v48, -inf  ;;  %v1197_v12 = vrot.slane %v1196_v55, 1 }
 0x140   :  { %v1208_v3 = vmax.f32 %v1206_v54, %v1207_v6  ;;  %v1221_v4 = vrot.slane %v1220_v8, 4  ;;  %v1642_v2 = vsel %vm1641_vm6, %v1149_v30, %v1640_v10  ;;  %v1184_v13 = vmax.f32 %v1182_v49, %v1183_v56 }
 0x141   :  { %v1202_v15 = vrot.slane %v1201_v60, 2  ;;  %v1215_v16 = vmax.f32 %v1213_v53, %v1214_v7  ;;  %v974_v23 = vadd.f32 %v5007_v62, %v954_v5  ;;  %v1177_v26 = vmax.f32 %v1175_v43, %v1176_v63 }
 0x142   :  { %v918_v24 = vpop.f32.mrf.mxu0  ;;  %v1209_v25 = vrot.slane %v1208_v3, 2  ;;  %v1222_v0 = vmax.f32 %v1220_v8, %v1221_v4  ;;  %v5042_v39 = vmax.f32 %v1189_v50, %v1190_v61  ;;  %v5044_v33 = vmax.f32 %v1196_v55, %v1197_v12 }
 0x143   :  { %v955_v52 = vmul.f32 %v5002_v59, %v918_v24  ;;  %v1203_v27 = vmax.f32 %v1201_v60, %v1202_v15  ;;  %v1216_v21 = vrot.slane %v1215_v16, 2  ;;  %v990_v28 = vmax.f32 %v974_v23, 0.0 }
 0x144   :  { %v5046_v29 = vmax.f32 %v1208_v3, %v1209_v25  ;;  %v1223_v31 = vrot.slane %v1222_v0, 2  ;;  %v1644_v40 = vsel %vm6065_vm7, %v1156_v22, %v1642_v2  ;;  %v5050_v30 = vsel %vm1635_vm15, %v1184_v13, %v1177_v26 }
 0x145   :  { %v1030_v9 = vrot.slane %v990_v28, 2  ;;  %v1031_v32 = vrot.slane %v990_v28, 4  ;;  %v975_v46 = vadd.f32 %v5007_v62, %v955_v52  ;;  %v1204_v34 = vrot.slane %v1203_v27, 1 }
 0x146   :  { %v5053_v35 = vmax.f32 %v1215_v16, %v1216_v21  ;;  %v1032_v36 = vrot.slane %v990_v28, 6  ;;  %v1227_v37 = vsel %vm1114_vm14, %v990_v28, -inf  ;;  %v1211_v38 = vrot.slane %v5046_v29, 1 }
 0x147   :  { %v1228_v41 = vrot.slane %v1227_v37, 4  ;;  %v1234_v11 = vsel %vm1114_vm14, %v1030_v9, -inf  ;;  %v5059_v22 = vsel %vm6063_vm8, %v1163_v42, %v1644_v40  ;;  %v5061_v43 = vmax.f32 %v1222_v0, %v1223_v31 }
 0x148   :  { %v1235_v17 = vrot.slane %v1234_v11, 4  ;;  %v1241_v44 = vsel %vm1114_vm14, %v1031_v32, -inf  ;;  %v1248_v10 = vsel %vm1114_vm14, %v1032_v36, -inf  ;;  %v991_v48 = vmax.f32 %v975_v46, 0.0 }
 0x149   :  { %v1229_v58 = vmax.f32 %v1227_v37, %v1228_v41  ;;  %v1242_v19 = vrot.slane %v1241_v44, 4  ;;  %v1249_v47 = vrot.slane %v1248_v10, 4  ;;  %v5065_v50 = vmax.f32 %v1203_v27, %v1204_v34 }
 0x14a   :  { %v921_v49 = vpop.f32.mrf.mxu0  ;;  %v1218_v51 = vrot.slane %v5053_v35, 1  ;;  %v1236_v5 = vmax.f32 %v1234_v11, %v1235_v17  ;;  %v1033_v53 = vrot.slane %v991_v48, 2  ;;  %v1034_v56 = vrot.slane %v991_v48, 4 }
 0x14b   :  { %v956_v42 = vmul.f32 %v5002_v59, %v921_v49  ;;  %v1230_v55 = vrot.slane %v1229_v58, 2  ;;  %v1243_v20 = vmax.f32 %v1241_v44, %v1242_v19  ;;  %v1250_v54 = vmax.f32 %v1248_v10, %v1249_v47 }
 0x14c   :  { %v1237_v63 = vrot.slane %v1236_v5, 2  ;;  %v1035_v6 = vrot.slane %v991_v48, 6  ;;  %v1255_v61 = vsel %vm1114_vm14, %v991_v48, -inf  ;;  %v1262_v4 = vsel %vm1114_vm14, %v1033_v53, -inf }
 0x14d   :  { %v1231_v60 = vmax.f32 %v1229_v58, %v1230_v55  ;;  %v1244_v7 = vrot.slane %v1243_v20, 2  ;;  %v1251_v8 = vrot.slane %v1250_v54, 2  ;;  %v1256_v12 = vrot.slane %v1255_v61, 4 }
 0x14e   :  { %v1238_v3 = vmax.f32 %v1236_v5, %v1237_v63  ;;  %v1269_v2 = vsel %vm1114_vm14, %v1034_v56, -inf  ;;  %v1276_v13 = vsel %vm1114_vm14, %v1035_v6, -inf  ;;  %v1263_v25 = vrot.slane %v1262_v4, 4 }
 0x14f   :  { %v1232_v15 = vrot.slane %v1231_v60, 1  ;;  %v1245_v16 = vmax.f32 %v1243_v20, %v1244_v7  ;;  %v1252_v23 = vmax.f32 %v1250_v54, %v1251_v8  ;;  %v1257_v24 = vmax.f32 %v1255_v61, %v1256_v12 }
 0x150   :  { %v1239_v26 = vrot.slane %v1238_v3, 1  ;;  %v1270_v0 = vrot.slane %v1269_v2, 4  ;;  %v1277_v52 = vrot.slane %v1276_v13, 4  ;;  %v1264_v32 = vmax.f32 %v1262_v4, %v1263_v25 }
 0x151   :  { %v1233_v27 = vmax.f32 %v1231_v60, %v1232_v15  ;;  %v1246_v21 = vrot.slane %v1245_v16, 1  ;;  %v1253_v28 = vrot.slane %v1252_v23, 1  ;;  %v1258_v31 = vrot.slane %v1257_v24, 2 }
 0x152   :  { %v923_v40 = vpop.f32.mrf.mxu0  ;;  %v1240_v9 = vmax.f32 %v1238_v3, %v1239_v26  ;;  %v1271_v46 = vmax.f32 %v1269_v2, %v1270_v0  ;;  %v1278_v34 = vmax.f32 %v1276_v13, %v1277_v52  ;;  %v976_v41 = vadd.f32 %v5007_v62, %v956_v42 }
 0x153   :  { %v1247_v36 = vmax.f32 %v1245_v16, %v1246_v21  ;;  %v1259_v37 = vmax.f32 %v1257_v24, %v1258_v31  ;;  %v1225_v11 = vrot.slane %v5061_v43, 1  ;;  %v1265_v44 = vrot.slane %v1264_v32, 2 }
 0x154   :  { %v1656_v17 = vsel %vm1635_vm15, %v1240_v9, %v1233_v27  ;;  %v1272_v10 = vrot.slane %v1271_v46, 2  ;;  %v1279_v58 = vrot.slane %v1278_v34, 2  ;;  %v1212_v19 = vmax.f32 %v5046_v29, %v1211_v38 }
 0x155   :  { %v1254_v47 = vmax.f32 %v1252_v23, %v1253_v28  ;;  %v1260_v48 = vrot.slane %v1259_v37, 1  ;;  %v992_v49 = vmax.f32 %v976_v41, 0.0  ;;  %v1657_v5 = vsel %vm1637_vm1, %v1247_v36, %v1656_v17 }
 0x156   :  { %v1266_v55 = vmax.f32 %v1264_v32, %v1265_v44  ;;  %v1273_v20 = vmax.f32 %v1271_v46, %v1272_v10  ;;  %v1280_v54 = vmax.f32 %v1278_v34, %v1279_v58  ;;  %v1219_v60 = vmax.f32 %v5053_v35, %v1218_v51 }
 0x157   :  { %v1261_v53 = vmax.f32 %v1259_v37, %v1260_v48  ;;  %v1036_v42 = vrot.slane %v992_v49, 2  ;;  %v1037_v63 = vrot.slane %v992_v49, 4  ;;  %v1038_v56 = vrot.slane %v992_v49, 6 }
 0x158   :  { %v1267_v6 = vrot.slane %v1266_v55, 1  ;;  %v1283_v61 = vsel %vm1114_vm14, %v992_v49, -inf  ;;  %v1226_v29 = vmax.f32 %v5061_v43, %v1225_v11  ;;  %v1658_v38 = vsel %vm1639_vm5, %v1254_v47, %v1657_v5 }
 0x159   :  { %v1284_v7 = vrot.slane %v1283_v61, 4  ;;  %v1290_v8 = vsel %vm1114_vm14, %v1036_v42, -inf  ;;  %v1297_v12 = vsel %vm1114_vm14, %v1037_v63, -inf  ;;  %v1274_v3 = vrot.slane %v1273_v20, 1 }
 0x15a   :  { %v1281_v4 = vrot.slane %v1280_v54, 1  ;;  %v5085_v2 = vsel %vm1641_vm6, %v1261_v53, %v1658_v38  ;;  %v1291_v13 = vrot.slane %v1290_v8, 4  ;;  %v926_v15 = vpop.f32.mrf.mxu0  ;;  %v5087_v16 = vmax.f32 %v1266_v55, %v1267_v6 }
 0x15b   :  { %v1285_v23 = vmax.f32 %v1283_v61, %v1284_v7  ;;  %v1298_v35 = vrot.slane %v1297_v12, 4  ;;  %v1304_v43 = vsel %vm1114_vm14, %v1038_v56, -inf  ;;  %v1650_v26 = vsel %vm1637_vm1, %v5042_v39, %v5050_v30 }
 0x15c   :  { %v1292_v51 = vmax.f32 %v1290_v8, %v1291_v13  ;;  %v1305_v24 = vrot.slane %v1304_v43, 4  ;;  %v957_v25 = vmul.f32 %v5002_v59, %v923_v40  ;;  %v1651_v27 = vsel %vm1639_vm5, %v5044_v33, %v1650_v26 }
 0x15d   :  { %v1286_v0 = vrot.slane %v1285_v23, 2  ;;  %v1299_v52 = vmax.f32 %v1297_v12, %v1298_v35  ;;  %v958_v21 = vmul.f32 %v5002_v59, %v926_v15  ;;  %v1652_v9 = vsel %vm1641_vm6, %v5065_v50, %v1651_v27 }
 0x15e   :  { %v1293_v28 = vrot.slane %v1292_v51, 2  ;;  %v1306_v31 = vmax.f32 %v1304_v43, %v1305_v24  ;;  %v977_v32 = vadd.f32 %v5007_v62, %v957_v25  ;;  %v1653_v39 = vsel %vm6065_vm7, %v1212_v19, %v1652_v9 }
 0x15f   :  { %v1287_v46 = vmax.f32 %v1285_v23, %v1286_v0  ;;  %v1300_v34 = vrot.slane %v1299_v52, 2  ;;  %v978_v30 = vadd.f32 %v5007_v62, %v958_v21  ;;  %v1654_v37 = vsel %vm6063_vm8, %v1219_v60, %v1653_v39 }
 0x160   :  { %v1294_v40 = vmax.f32 %v1292_v51, %v1293_v28  ;;  %v1307_v36 = vrot.slane %v1306_v31, 2  ;;  %v993_v33 = vmax.f32 %v977_v32, 0.0  ;;  %v5106_v17 = vsel %vm6064_vm9, %v5036_v57, %v5059_v22 }
 0x161   :  { %v1288_v41 = vrot.slane %v1287_v46, 1  ;;  %v1301_v11 = vmax.f32 %v1299_v52, %v1300_v34  ;;  %v5109_v50 = vsel %vm6064_vm9, %v1226_v29, %v1654_v37  ;;  %v5113_v47 = vmax.f32 %v1273_v20, %v1274_v3 }
 0x162   :  { %v1295_v44 = vrot.slane %v1294_v40, 1  ;;  %v1308_v10 = vmax.f32 %v1306_v31, %v1307_v36  ;;  %v4207_v58 = vpack.i.bf16 %v5109_v50, %v5106_v17  ;;  %v1039_v19 = vrot.slane %v993_v33, 2  ;;  %v928_v12 = vpop.f32.mrf.mxu0 }
 0x163   :  { %v1040_v48 = vrot.slane %v993_v33, 4  ;;  %v1041_v49 = vrot.slane %v993_v33, 6  ;;  %v994_v5 = vmax.f32 %v978_v30, 0.0  ;;  %v5115_v55 = vmax.f32 %v1280_v54, %v1281_v4 }
 0x164   :  { %v1289_v53 = vmax.f32 %v1287_v46, %v1288_v41  ;;  %4208 = vrot.lane.b32.xlu0 %v4207_v58, %s4401_s22  ;;  %v1311_v57 = vsel %vm1114_vm14, %v993_v33, -inf  ;;  %v1318_v22 = vsel %vm1114_vm14, %v1039_v19, -inf  ;;  %v1302_v42 = vrot.slane %v1301_v11, 1 }
 0x165   :  { %v1312_v63 = vrot.slane %v1311_v57, 4  ;;  %v1319_v56 = vrot.slane %v1318_v22, 4  ;;  %v1325_v6 = vsel %vm1114_vm14, %v1040_v48, -inf  ;;  %v1296_v20 = vmax.f32 %v1294_v40, %v1295_v44 }
 0x166   :  { %v1309_v61 = vrot.slane %v1308_v10, 1  ;;  %v1326_v60 = vrot.slane %v1325_v6, 4  ;;  %v1332_v29 = vsel %vm1114_vm14, %v1041_v49, -inf  ;;  %v1042_v8 = vrot.slane %v994_v5, 2 }
 0x167   :  { %v1313_v54 = vmax.f32 %v1311_v57, %v1312_v63  ;;  %v1320_v38 = vmax.f32 %v1318_v22, %v1319_v56  ;;  %v1333_v7 = vrot.slane %v1332_v29, 4  ;;  %v1043_v4 = vrot.slane %v994_v5, 4 }
 0x168   :  { %v1327_v3 = vmax.f32 %v1325_v6, %v1326_v60  ;;  %v1044_v13 = vrot.slane %v994_v5, 6  ;;  %v1339_v15 = vsel %vm1114_vm14, %v994_v5, -inf  ;;  %v1346_v26 = vsel %vm1114_vm14, %v1042_v8, -inf }
 0x169   :  { %v1314_v23 = vrot.slane %v1313_v54, 2  ;;  %v1321_v35 = vrot.slane %v1320_v38, 2  ;;  %v1334_v43 = vmax.f32 %v1332_v29, %v1333_v7  ;;  %v1340_v51 = vrot.slane %v1339_v15, 4 }
 0x16a   :  { %v1328_v24 = vrot.slane %v1327_v3, 2  ;;  %v1353_v25 = vsel %vm1114_vm14, %v1043_v4, -inf  ;;  %v1360_v0 = vsel %vm1114_vm14, %v1044_v13, -inf  ;;  %v1303_v31 = vmax.f32 %v1301_v11, %v1302_v42  ;;  %v931_v63 = vpop.f32.mrf.mxu0 }
 0x16b   :  { %v1315_v52 = vmax.f32 %v1313_v54, %v1314_v23  ;;  %v1322_v27 = vmax.f32 %v1320_v38, %v1321_v35  ;;  %v1335_v21 = vrot.slane %v1334_v43, 2  ;;  %v1341_v28 = vmax.f32 %v1339_v15, %v1340_v51 }
 0x16c   :  { %v1347_v9 = vrot.slane %v1346_v26, 4  ;;  %v1354_v32 = vrot.slane %v1353_v25, 4  ;;  %v1361_v46 = vrot.slane %v1360_v0, 4  ;;  %v5126_v34 = vmax.f32 %v1308_v10, %v1309_v61 }
 0x16d   :  { %v1663_v39 = vsel %vm1635_vm15, %v1296_v20, %v1289_v53  ;;  %v1329_v30 = vmax.f32 %v1327_v3, %v1328_v24  ;;  %v1342_v40 = vrot.slane %v1341_v28, 2  ;;  %v1316_v36 = vrot.slane %v1315_v52, 1 }
 0x16e   :  { %v1348_v37 = vmax.f32 %v1346_v26, %v1347_v9  ;;  %v1355_v33 = vmax.f32 %v1353_v25, %v1354_v32  ;;  %v1362_v41 = vmax.f32 %v1360_v0, %v1361_v46  ;;  %v1323_v44 = vrot.slane %v1322_v27, 1 }
 0x16f   :  { %v1336_v58 = vmax.f32 %v1334_v43, %v1335_v21  ;;  %v1343_v19 = vmax.f32 %v1341_v28, %v1342_v40  ;;  %v5130_v48 = vadd.s32 8, %v4503_v1  ;;  %v1660_v10 = vsel %vm6065_vm7, %v5087_v16, %v5085_v2 }
 0x170   :  { %v1349_v11 = vrot.slane %v1348_v37, 2  ;;  %v1356_v49 = vrot.slane %v1355_v33, 2  ;;  %v1363_v5 = vrot.slane %v1362_v41, 2  ;;  %v1330_v53 = vrot.slane %v1329_v30, 1 }
 0x171   :  { %v1344_v57 = vrot.slane %v1343_v19, 1  ;;  %v1564_v22 = vand.u32 15, %v5130_v48  ;;  %v1661_v42 = vsel %vm6063_vm8, %v5113_v47, %v1660_v10  ;;  %v1802_v60 = vrot.slane %v5106_v17, 1 }
 0x172   :  { %v1350_v56 = vmax.f32 %v1348_v37, %v1349_v11  ;;  %v1357_v6 = vmax.f32 %v1355_v33, %v1356_v49  ;;  %v1364_v20 = vmax.f32 %v1362_v41, %v1363_v5  ;;  %v5140_v61 = vsel %vm6064_vm9, %v5115_v55, %v1661_v42  ;;  %v5181_v41 = vpop.f32.mrf.mxu0 }
 0x173   :  { %v1803_v29 = vrot.slane %v5109_v50, 1  ;;  %v1804_v2 = vrot.slane %v5140_v61, 1  ;;  %vm1819_vm10 = vcmp.lt.s32.totalorder %v1564_v22, 15  ;;  %v959_v38 = vmul.f32 %v5002_v59, %v928_v12 }
 0x174   :  { %v1351_v16 = vrot.slane %v1350_v56, 1  ;;  %v1358_v54 = vrot.slane %v1357_v6, 1  ;;  %v1365_v47 = vrot.slane %v1364_v20, 1  ;;  %v5148_v7 = vmax.f32 %v1315_v52, %v1316_v36 }
 0x175   :  { %v1345_v8 = vmax.f32 %v1343_v19, %v1344_v57  ;;  %v1815_v55 = vsel %vm348_vm2, %v1803_v29, %v1804_v2  ;;  %v960_v3 = vmul.f32 %v5002_v59, %v931_v63  ;;  %v1816_v15 = vsel %vm348_vm2, %v1802_v60, %v1803_v29 }
 0x176   :  { %v1352_v4 = vmax.f32 %v1350_v56, %v1351_v16  ;;  %v1359_v13 = vmax.f32 %v1357_v6, %v1358_v54  ;;  %v1843_v23 = vsel %vm1819_vm10, %v1815_v55, 0.0  ;;  %v979_v12 = vadd.f32 %v5007_v62, %v959_v38 }
 0x177   :  { %v4212_v35 = vpack.i.bf16 %v1843_v23, %v1816_v15  ;;  %v980_v43 = vadd.f32 %v5007_v62, %v960_v3  ;;  %v1337_v51 = vrot.slane %v1336_v58, 1  ;;  %v5161_v24 = vmax.f32 %v1322_v27, %v1323_v44 }
 0x178   :  { %v5163_v26 = vmax.f32 %v1364_v20, %v1365_v47  ;;  %v1670_v25 = vsel %vm1635_vm15, %v1352_v4, %v1345_v8  ;;  %v5166_v0 = vmax.f32 %v1329_v30, %v1330_v53  ;;  %v995_v52 = vmax.f32 %v979_v12, 0.0 }
 0x179   :  { %4213 = vrot.lane.b32.xlu1 %v4212_v35, %s4402_s24  ;;  %v996_v21 = vmax.f32 %v980_v43, 0.0  ;;  %v5170_v28 = vsel %vm1637_vm1, %v1303_v31, %v1663_v39  ;;  %v5173_v9 = vadd.s32 16, %v4503_v1  ;;  %v1671_v27 = vsel %vm1637_vm1, %v1359_v13, %v1670_v25 }
 0x17a   :  { %v5176_v32 = vmax.f32 %v1336_v58, %v1337_v51  ;;  %v1755_v46 = vrot.slane %v5109_v50, 7  ;;  %v1756_v30 = vrot.slane %v5140_v61, 7  ;;  %v1045_v40 = vrot.slane %v995_v52, 2 }
 0x17b   :  { %v1046_v36 = vrot.slane %v995_v52, 4  ;;  %v1047_v37 = vrot.slane %v995_v52, 6  ;;  %v1367_v33 = vsel %vm1114_vm14, %v995_v52, -inf  ;;  %v1048_v39 = vrot.slane %v996_v21, 2 }
 0x17c   :  { %v1368_v31 = vrot.slane %v1367_v33, 4  ;;  %v1049_v44 = vrot.slane %v996_v21, 4  ;;  %v1050_v19 = vrot.slane %v996_v21, 6  ;;  %v1374_v11 = vsel %vm1114_vm14, %v1045_v40, -inf }
 0x17d   :  { %v1381_v58 = vsel %vm1114_vm14, %v1046_v36, -inf  ;;  %v1388_v49 = vsel %vm1114_vm14, %v1047_v37, -inf  ;;  %v1395_v5 = vsel %vm1114_vm14, %v996_v21, -inf  ;;  %v1375_v53 = vrot.slane %v1374_v11, 4 }
 0x17e   :  { %v1369_v10 = vmax.f32 %v1367_v33, %v1368_v31  ;;  %v1382_v57 = vrot.slane %v1381_v58, 4  ;;  %v1389_v42 = vrot.slane %v1388_v49, 4  ;;  %v1396_v63 = vrot.slane %v1395_v5, 4 }
 0x17f   :  { %v1402_v56 = vsel %vm1114_vm14, %v1048_v39, -inf  ;;  %v1409_v6 = vsel %vm1114_vm14, %v1049_v44, -inf  ;;  %v1416_v20 = vsel %vm1114_vm14, %v1050_v19, -inf  ;;  %v1376_v16 = vmax.f32 %v1374_v11, %v1375_v53  ;;  %v936_v39 = vpop.f32.mrf.mxu0 }
 0x180   :  { %v1370_v29 = vrot.slane %v1369_v10, 2  ;;  %v1383_v54 = vmax.f32 %v1381_v58, %v1382_v57  ;;  %v1390_v47 = vmax.f32 %v1388_v49, %v1389_v42  ;;  %v1397_v38 = vmax.f32 %v1395_v5, %v1396_v63 }
 0x181   :  { %v1403_v8 = vrot.slane %v1402_v56, 4  ;;  %v1410_v55 = vrot.slane %v1409_v6, 4  ;;  %v1417_v3 = vrot.slane %v1416_v20, 4  ;;  %v1377_v13 = vrot.slane %v1376_v16, 2 }
 0x182   :  { %v1371_v4 = vmax.f32 %v1369_v10, %v1370_v29  ;;  %v1384_v15 = vrot.slane %v1383_v54, 2  ;;  %v1391_v23 = vrot.slane %v1390_v47, 2  ;;  %v1398_v35 = vrot.slane %v1397_v38, 2 }
 0x183   :  { %v1404_v12 = vmax.f32 %v1402_v56, %v1403_v8  ;;  %v1411_v43 = vmax.f32 %v1409_v6, %v1410_v55  ;;  %v1418_v51 = vmax.f32 %v1416_v20, %v1417_v3  ;;  %v1378_v52 = vmax.f32 %v1376_v16, %v1377_v13 }
 0x184   :  { %v1372_v25 = vrot.slane %v1371_v4, 1  ;;  %v1385_v21 = vmax.f32 %v1383_v54, %v1384_v15  ;;  %v1392_v40 = vmax.f32 %v1390_v47, %v1391_v23  ;;  %v1399_v36 = vmax.f32 %v1397_v38, %v1398_v35 }
 0x185   :  { %v1405_v37 = vrot.slane %v1404_v12, 2  ;;  %v1412_v33 = vrot.slane %v1411_v43, 2  ;;  %v1419_v31 = vrot.slane %v1418_v51, 2  ;;  %v1379_v19 = vrot.slane %v1378_v52, 1 }
 0x186   :  { %v1373_v44 = vmax.f32 %v1371_v4, %v1372_v25  ;;  %v1386_v11 = vrot.slane %v1385_v21, 1  ;;  %v1393_v58 = vrot.slane %v1392_v40, 1  ;;  %v1400_v49 = vrot.slane %v1399_v36, 1 }
 0x187   :  { %v1406_v5 = vmax.f32 %v1404_v12, %v1405_v37  ;;  %v1413_v10 = vmax.f32 %v1411_v43, %v1412_v33  ;;  %v1420_v53 = vmax.f32 %v1418_v51, %v1419_v31  ;;  %v1672_v57 = vsel %vm1639_vm5, %v5163_v26, %v1671_v27  ;;  %v5234_v25 = vpop.f32.mrf.mxu0 }
 0x188   :  { %v1380_v42 = vmax.f32 %v1378_v52, %v1379_v19  ;;  %v1665_v63 = vsel %vm1639_vm5, %v5126_v34, %v5170_v28  ;;  %v1565_v56 = vand.u32 15, %v5173_v9  ;;  %v1387_v6 = vmax.f32 %v1385_v21, %v1386_v11 }
 0x189   :  { %v1407_v20 = vrot.slane %v1406_v5, 1  ;;  %v1414_v29 = vrot.slane %v1413_v10, 1  ;;  %v1421_v16 = vrot.slane %v1420_v53, 1  ;;  %v1394_v54 = vmax.f32 %v1392_v40, %v1393_v58 }
 0x18a   :  { %v1673_v47 = vsel %vm1641_vm6, %v1373_v44, %v1672_v57  ;;  %v1401_v38 = vmax.f32 %v1399_v36, %v1400_v49  ;;  %v1666_v8 = vsel %vm1641_vm6, %v5148_v7, %v1665_v63  ;;  %v1767_v34 = vsel %vm6062_vm0, %v1755_v46, %v1756_v30 }
 0x18b   :  { %v1408_v55 = vmax.f32 %v1406_v5, %v1407_v20  ;;  %v1415_v26 = vmax.f32 %v1413_v10, %v1414_v29  ;;  %v1667_v27 = vsel %vm6065_vm7, %v5161_v24, %v1666_v8  ;;  %vm5211_vm11 = vcmp.ge.s32.totalorder %v1565_v56, 1 }
 0x18c   :  { %v1668_v28 = vsel %vm6063_vm8, %v5166_v0, %v1667_v27  ;;  %v961_v7 = vmul.f32 %v5002_v59, %v5181_v41  ;;  %v962_v24 = vmul.f32 %v5002_v59, %v936_v39  ;;  %v1422_v4 = vmax.f32 %v1420_v53, %v1421_v16 }
 0x18d   :  { %v1677_v13 = vsel %vm1635_vm15, %v1408_v55, %v1401_v38  ;;  %v5221_v15 = vsel %vm6064_vm9, %v5176_v32, %v1668_v28  ;;  %v1674_v0 = vsel %vm6065_vm7, %v1380_v42, %v1673_v47  ;;  %v1796_v59 = vsel %vm5211_vm11, %v1767_v34, 0.0 }
 0x18e   :  { %v1678_v23 = vsel %vm1637_vm1, %v1415_v26, %v1677_v13  ;;  %v4232_v35 = vpack.i.bf16 %v5221_v15, %v5140_v61  ;;  %v1757_v12 = vrot.slane %v5221_v15, 7  ;;  %v981_v41 = vadd.f32 %v5007_v62, %v961_v7 }
 0x18f   :  { %v982_v43 = vadd.f32 %v5007_v62, %v962_v24  ;;  %v1566_v51 = vand.u32 15, %v4542_v14  ;;  %v1675_v32 = vsel %vm6063_vm8, %v1387_v6, %v1674_v0  ;;  %v5237_v52 = vsel %vm1639_vm5, %v1422_v4, %v1678_v23  ;;  %v941_v23 = vpop.f32.mrf.mxu0 }
 0x190   :  { %4233 = vrot.lane.b32.xlu1 %v4232_v35, %s4401_s22  ;;  %v1766_v21 = vsel %vm6062_vm0, %v1756_v30, %v1757_v12  ;;  %v997_v40 = vmax.f32 %v981_v41, 0.0  ;;  %v1852_v62 = vrot.slane %v5140_v61, 2  ;;  %v5248_v33 = vsel %vm6064_vm9, %v1394_v54, %v1675_v32 }
 0x191   :  { %v4227_v36 = vpack.i.bf16 %v1766_v21, %v1796_v59  ;;  %v998_v37 = vmax.f32 %v982_v43, 0.0  ;;  %v1853_v31 = vrot.slane %v5221_v15, 2  ;;  %vm1869_vm12 = vcmp.lt.s32.totalorder %v1566_v51, 14 }
 0x192   :  { %v1051_v39 = vrot.slane %v997_v40, 2  ;;  %v1052_v44 = vrot.slane %v997_v40, 4  ;;  %v1053_v19 = vrot.slane %v997_v40, 6  ;;  %v1423_v11 = vsel %vm1114_vm14, %v997_v40, -inf }
 0x193   :  { %4228 = vrot.lane.b32.xlu0 %v4227_v36, %s4403_s25  ;;  %v1424_v58 = vrot.slane %v1423_v11, 4  ;;  %v1054_v30 = vrot.slane %v998_v37, 2  ;;  %v1055_v49 = vrot.slane %v998_v37, 4  ;;  %v1056_v5 = vrot.slane %v998_v37, 6 }
 0x194   :  { %v1430_v10 = vsel %vm1114_vm14, %v1051_v39, -inf  ;;  %v1437_v53 = vsel %vm1114_vm14, %v1052_v44, -inf  ;;  %v1444_v57 = vsel %vm1114_vm14, %v1053_v19, -inf  ;;  %v1451_v42 = vsel %vm1114_vm14, %v998_v37, -inf }
 0x195   :  { %v1425_v63 = vmax.f32 %v1423_v11, %v1424_v58  ;;  %v1431_v6 = vrot.slane %v1430_v10, 4  ;;  %v1438_v20 = vrot.slane %v1437_v53, 4  ;;  %v1445_v29 = vrot.slane %v1444_v57, 4 }
 0x196   :  { %v1452_v16 = vrot.slane %v1451_v42, 4  ;;  %v1458_v54 = vsel %vm1114_vm14, %v1054_v30, -inf  ;;  %v1465_v47 = vsel %vm1114_vm14, %v1055_v49, -inf  ;;  %v1472_v38 = vsel %vm1114_vm14, %v1056_v5, -inf }
 0x197   :  { %v1426_v8 = vrot.slane %v1425_v63, 2  ;;  %v1432_v55 = vmax.f32 %v1430_v10, %v1431_v6  ;;  %v1439_v26 = vmax.f32 %v1437_v53, %v1438_v20  ;;  %v1446_v27 = vmax.f32 %v1444_v57, %v1445_v29 }
 0x198   :  { %v1453_v34 = vmax.f32 %v1451_v42, %v1452_v16  ;;  %v1459_v28 = vrot.slane %v1458_v54, 4  ;;  %v1466_v3 = vrot.slane %v1465_v47, 4  ;;  %v1473_v7 = vrot.slane %v1472_v38, 4 }
 0x199   :  { %v1427_v24 = vmax.f32 %v1425_v63, %v1426_v8  ;;  %v1433_v4 = vrot.slane %v1432_v55, 2  ;;  %v1440_v13 = vrot.slane %v1439_v26, 2  ;;  %v1447_v0 = vrot.slane %v1446_v27, 2  ;;  %v4336_v8 = vld [vmem:[%s6045_s2] ss:$0 sm:$0xff] }
 0x19a   :  { %v1454_v35 = vrot.slane %v1453_v34, 2  ;;  %v1460_v41 = vmax.f32 %v1458_v54, %v1459_v28  ;;  %v1467_v59 = vmax.f32 %v1465_v47, %v1466_v3  ;;  %v1474_v43 = vmax.f32 %v1472_v38, %v1473_v7 }
 0x19b   :  { %v1428_v32 = vrot.slane %v1427_v24, 1  ;;  %v1434_v21 = vmax.f32 %v1432_v55, %v1433_v4  ;;  %v1441_v40 = vmax.f32 %v1439_v26, %v1440_v13  ;;  %v1448_v36 = vmax.f32 %v1446_v27, %v1447_v0  ;;  %v943_v13 = vpop.f32.mrf.mxu0 }
 0x19c   :  { %v1455_v37 = vmax.f32 %v1453_v34, %v1454_v35  ;;  %v1461_v39 = vrot.slane %v1460_v41, 2  ;;  %v1468_v44 = vrot.slane %v1467_v59, 2  ;;  %v1475_v19 = vrot.slane %v1474_v43, 2 }
 0x19d   :  { %v1429_v11 = vmax.f32 %v1427_v24, %v1428_v32  ;;  %v1435_v58 = vrot.slane %v1434_v21, 1  ;;  %v1442_v30 = vrot.slane %v1441_v40, 1  ;;  %v1854_v49 = vrot.slane %v5248_v33, 2  ;;  %v5284_v24 = vld [vmem:[%s6046_s3] ss:$0 sm:$0xff] }
 0x19e   :  { %v1456_v5 = vrot.slane %v1455_v37, 1  ;;  %v1462_v10 = vmax.f32 %v1460_v41, %v1461_v39  ;;  %v1469_v53 = vmax.f32 %v1467_v59, %v1468_v44  ;;  %v1476_v57 = vmax.f32 %v1474_v43, %v1475_v19 }
 0x19f   :  { %v1436_v42 = vmax.f32 %v1434_v21, %v1435_v58  ;;  %v1443_v63 = vmax.f32 %v1441_v40, %v1442_v30  ;;  %v1449_v6 = vrot.slane %v1448_v36, 1  ;;  %v1680_v20 = vsel %vm1641_vm6, %v1429_v11, %v5237_v52 }
 0x1a0   :  { %v1463_v29 = vrot.slane %v1462_v10, 1  ;;  %v1470_v16 = vrot.slane %v1469_v53, 1  ;;  %v1477_v54 = vrot.slane %v1476_v57, 1  ;;  %v1457_v47 = vmax.f32 %v1455_v37, %v1456_v5 }
 0x1a1   :  { %v1861_v38 = vsel %vm445_vm3, %v1853_v31, %v1854_v49  ;;  %v963_v55 = vmul.f32 %v4336_v8, %v5234_v25  ;;  %v964_v26 = vmul.f32 %v4336_v8, %v941_v23  ;;  %v1862_v34 = vsel %vm445_vm3, %v1852_v62, %v1853_v31 }
 0x1a2   :  { %v1464_v27 = vmax.f32 %v1462_v10, %v1463_v29  ;;  %v1471_v52 = vmax.f32 %v1469_v53, %v1470_v16  ;;  %v1893_v28 = vsel %vm1869_vm12, %v1861_v38, 0.0  ;;  %v1450_v3 = vmax.f32 %v1448_v36, %v1449_v6 }
 0x1a3   :  { %v4242_v7 = vpack.i.bf16 %v1893_v28, %v1862_v34  ;;  %v983_v25 = vadd.f32 %v5284_v24, %v963_v55  ;;  %v984_v4 = vadd.f32 %v5284_v24, %v964_v26  ;;  %v1478_v0 = vmax.f32 %v1476_v57, %v1477_v54 }
 0x1a4   :  { %v1684_v23 = vsel %vm1635_vm15, %v1464_v27, %v1457_v47  ;;  %v1567_v35 = vand.u32 15, %v4606_v45  ;;  %v1681_v31 = vsel %vm6065_vm7, %v1436_v42, %v1680_v20  ;;  %v1758_v36 = vrot.slane %v5248_v33, 7 }
 0x1a5   :  { %v1685_v41 = vsel %vm1637_vm1, %v1471_v52, %v1684_v23  ;;  %4243 = vrot.lane.b32.xlu0 %v4242_v7, %s4391_s18  ;;  %v999_v59 = vmax.f32 %v983_v25, 0.0  ;;  %v1000_v43 = vmax.f32 %v984_v4, 0.0  ;;  %v1682_v32 = vsel %vm6063_vm8, %v1443_v63, %v1681_v31 }
 0x1a6   :  { %v1686_v21 = vsel %vm1639_vm5, %v1478_v0, %v1685_v41  ;;  %v5296_v40 = vsel %vm6064_vm9, %v1450_v3, %v1682_v32  ;;  %v965_v37 = vmul.f32 %v4336_v8, %v943_v13  ;;  %vm5316_vm13 = vcmp.ge.s32.totalorder %v1567_v35, 1 }
 0x1a7   :  { %v1057_v39 = vrot.slane %v999_v59, 2  ;;  %v1058_v44 = vrot.slane %v999_v59, 4  ;;  %v1059_v19 = vrot.slane %v999_v59, 6  ;;  %v1479_v11 = vsel %vm1114_vm14, %v999_v59, -inf }
 0x1a8   :  { %v1480_v58 = vrot.slane %v1479_v11, 4  ;;  %v1060_v30 = vrot.slane %v1000_v43, 2  ;;  %v1061_v5 = vrot.slane %v1000_v43, 4  ;;  %v1062_v10 = vrot.slane %v1000_v43, 6 }
 0x1a9   :  { %v1486_v53 = vsel %vm1114_vm14, %v1057_v39, -inf  ;;  %v1493_v57 = vsel %vm1114_vm14, %v1058_v44, -inf  ;;  %v1500_v42 = vsel %vm1114_vm14, %v1059_v19, -inf  ;;  %v1507_v63 = vsel %vm1114_vm14, %v1000_v43, -inf }
 0x1aa   :  { %v1481_v6 = vmax.f32 %v1479_v11, %v1480_v58  ;;  %v1487_v20 = vrot.slane %v1486_v53, 4  ;;  %v1494_v29 = vrot.slane %v1493_v57, 4  ;;  %v1501_v16 = vrot.slane %v1500_v42, 4 }
 0x1ab   :  { %v1508_v54 = vrot.slane %v1507_v63, 4  ;;  %v1514_v47 = vsel %vm1114_vm14, %v1060_v30, -inf  ;;  %v1521_v38 = vsel %vm1114_vm14, %v1061_v5, -inf  ;;  %v1528_v8 = vsel %vm1114_vm14, %v1062_v10, -inf }
 0x1ac   :  { %v1482_v55 = vrot.slane %v1481_v6, 2  ;;  %v1488_v26 = vmax.f32 %v1486_v53, %v1487_v20  ;;  %v1495_v27 = vmax.f32 %v1493_v57, %v1494_v29  ;;  %v1502_v52 = vmax.f32 %v1500_v42, %v1501_v16 }
 0x1ad   :  { %v1509_v34 = vmax.f32 %v1507_v63, %v1508_v54  ;;  %v1515_v28 = vrot.slane %v1514_v47, 4  ;;  %v1522_v3 = vrot.slane %v1521_v38, 4  ;;  %v1529_v7 = vrot.slane %v1528_v8, 4 }
 0x1ae   :  { %v1483_v25 = vmax.f32 %v1481_v6, %v1482_v55  ;;  %v1489_v4 = vrot.slane %v1488_v26, 2  ;;  %v1496_v13 = vrot.slane %v1495_v27, 2  ;;  %v1503_v0 = vrot.slane %v1502_v52, 2 }
 0x1af   :  { %v1510_v23 = vrot.slane %v1509_v34, 2  ;;  %v1516_v31 = vmax.f32 %v1514_v47, %v1515_v28  ;;  %v1523_v41 = vmax.f32 %v1521_v38, %v1522_v3  ;;  %v1530_v59 = vmax.f32 %v1528_v8, %v1529_v7 }
 0x1b0   :  { %v1484_v43 = vrot.slane %v1483_v25, 1  ;;  %v1490_v32 = vmax.f32 %v1488_v26, %v1489_v4  ;;  %v1497_v39 = vmax.f32 %v1495_v27, %v1496_v13  ;;  %v1504_v44 = vmax.f32 %v1502_v52, %v1503_v0 }
 0x1b1   :  { %v1511_v19 = vmax.f32 %v1509_v34, %v1510_v23  ;;  %v1517_v11 = vrot.slane %v1516_v31, 2  ;;  %v1524_v58 = vrot.slane %v1523_v41, 2  ;;  %v1531_v30 = vrot.slane %v1530_v59, 2 }
 0x1b2   :  { %v1485_v5 = vmax.f32 %v1483_v25, %v1484_v43  ;;  %v1491_v10 = vrot.slane %v1490_v32, 1  ;;  %v1498_v53 = vrot.slane %v1497_v39, 1  ;;  %v1505_v57 = vrot.slane %v1504_v44, 1 }
 0x1b3   :  { %v1512_v42 = vrot.slane %v1511_v19, 1  ;;  %v1518_v63 = vmax.f32 %v1516_v31, %v1517_v11  ;;  %v1525_v6 = vmax.f32 %v1523_v41, %v1524_v58  ;;  %v1765_v20 = vsel %vm6062_vm0, %v1757_v12, %v1758_v36 }
 0x1b4   :  { %v1492_v29 = vmax.f32 %v1490_v32, %v1491_v10  ;;  %v1499_v16 = vmax.f32 %v1497_v39, %v1498_v53  ;;  %v1687_v54 = vsel %vm1641_vm6, %v1485_v5, %v1686_v21  ;;  %v1532_v55 = vmax.f32 %v1530_v59, %v1531_v30 }
 0x1b5   :  { %v1519_v38 = vrot.slane %v1518_v63, 1  ;;  %v1526_v8 = vrot.slane %v1525_v6, 1  ;;  %v1506_v26 = vmax.f32 %v1504_v44, %v1505_v57  ;;  %v1759_v27 = vrot.slane %v5296_v40, 7 }
 0x1b6   :  { %v985_v52 = vadd.f32 %v5284_v24, %v965_v37  ;;  %v111_v12 = vadd.s32 40, %v4503_v1  ;;  %v1513_v34 = vmax.f32 %v1511_v19, %v1512_v42  ;;  %v1798_v21 = vsel %vm5316_vm13, %v1765_v20, 0.0 }
 0x1b7   :  { %v1520_v28 = vmax.f32 %v1518_v63, %v1519_v38  ;;  %v1688_v3 = vsel %vm6065_vm7, %v1492_v29, %v1687_v54  ;;  %v1764_v7 = vsel %vm6062_vm0, %v1758_v36, %v1759_v27  ;;  %v1527_v37 = vmax.f32 %v1525_v6, %v1526_v8 }
 0x1b8   :  { %v1001_v25 = vmax.f32 %v985_v52, 0.0  ;;  %v1568_v4 = vand.u32 15, %v111_v12  ;;  %v1689_v24 = vsel %vm6063_vm8, %v1499_v16, %v1688_v3  ;;  %v1533_v13 = vrot.slane %v1532_v55, 1 }
 0x1b9   :  { %v4247_v0 = vpack.i.bf16 %v1764_v7, %v1798_v21  ;;  %v5334_v23 = vsel %vm6064_vm9, %v1506_v26, %v1689_v24  ;;  %v1691_v32 = vsel %vm1635_vm15, %v1520_v28, %v1513_v34  ;;  %v1855_v39 = vrot.slane %v5296_v40, 2 }
 0x1ba   :  { %v1063_v31 = vrot.slane %v1001_v25, 2  ;;  %v1064_v41 = vrot.slane %v1001_v25, 4  ;;  %v1065_v59 = vrot.slane %v1001_v25, 6  ;;  %v1535_v43 = vsel %vm1114_vm14, %v1001_v25, -inf }
 0x1bb   :  { %4248 = vrot.lane.b32.xlu1 %v4247_v0, %s4403_s25  ;;  %v1536_v36 = vrot.slane %v1535_v43, 4  ;;  %v1856_v44 = vrot.slane %v5334_v23, 2  ;;  %vm5344_vm10 = vcmp.lt.s32.totalorder %v1568_v4, 14  ;;  %v1807_v63 = vrot.slane %v5296_v40, 1 }
 0x1bc   :  { %v1542_v19 = vsel %vm1114_vm14, %v1063_v31, -inf  ;;  %v1549_v11 = vsel %vm1114_vm14, %v1064_v41, -inf  ;;  %v1556_v58 = vsel %vm1114_vm14, %v1065_v59, -inf  ;;  %v1808_v6 = vrot.slane %v5334_v23, 1 }
 0x1bd   :  { %v1537_v5 = vmax.f32 %v1535_v43, %v1536_v36  ;;  %v1543_v10 = vrot.slane %v1542_v19, 4  ;;  %v1550_v53 = vrot.slane %v1549_v11, 4  ;;  %v1557_v57 = vrot.slane %v1556_v58, 4 }
 0x1be   :  { %v1859_v42 = vsel %vm445_vm3, %v1855_v39, %v1856_v44  ;;  %vm5354_vm11 = vcmp.lt.s32.totalorder %v1568_v4, 15  ;;  %v1860_v38 = vsel %vm445_vm3, %v1854_v49, %v1855_v39  ;;  %v1806_v26 = vrot.slane %v5248_v33, 1 }
 0x1bf   :  { %v1538_v29 = vrot.slane %v1537_v5, 2  ;;  %v1544_v16 = vmax.f32 %v1542_v19, %v1543_v10  ;;  %v1551_v54 = vmax.f32 %v1549_v11, %v1550_v53  ;;  %v1558_v47 = vmax.f32 %v1556_v58, %v1557_v57 }
 0x1c0   :  { %v1895_v8 = vsel %vm5344_vm10, %v1859_v42, 0.0  ;;  %v1811_v52 = vsel %vm348_vm2, %v1807_v63, %v1808_v6  ;;  %v1812_v7 = vsel %vm348_vm2, %v1806_v26, %v1807_v63  ;;  %v1692_v49 = vsel %vm1637_vm1, %v1527_v37, %v1691_v32 }
 0x1c1   :  { %v1539_v12 = vmax.f32 %v1537_v5, %v1538_v29  ;;  %v1545_v34 = vrot.slane %v1544_v16, 2  ;;  %v1552_v28 = vrot.slane %v1551_v54, 2  ;;  %v1559_v21 = vrot.slane %v1558_v47, 2 }
 0x1c2   :  { %v4262_v3 = vpack.i.bf16 %v1895_v8, %v1860_v38  ;;  %v1847_v25 = vsel %vm5354_vm11, %v1811_v52, 0.0  ;;  %v1534_v41 = vmax.f32 %v1532_v55, %v1533_v13  ;;  %v1570_v32 = vand.u32 15, %v4659_v18 }
 0x1c3   :  { %v1540_v4 = vrot.slane %v1539_v12, 1  ;;  %v1546_v24 = vmax.f32 %v1544_v16, %v1545_v34  ;;  %v1553_v0 = vmax.f32 %v1551_v54, %v1552_v28  ;;  %v1560_v31 = vmax.f32 %v1558_v47, %v1559_v21 }
 0x1c4   :  { %4263 = vrot.lane.b32.xlu1 %v4262_v3, %s4391_s18  ;;  %v4257_v59 = vpack.i.bf16 %v1847_v25, %v1812_v7  ;;  %v1693_v11 = vsel %vm1639_vm5, %v1534_v41, %v1692_v49  ;;  %v1563_v5 = vand.u32 15, %v4503_v1  ;;  %vm1825_vm14 = vcmp.lt.s32.totalorder %v1570_v32, 15 }
 0x1c5   :  { %v1541_v43 = vmax.f32 %v1539_v12, %v1540_v4  ;;  %v1547_v36 = vrot.slane %v1546_v24, 1  ;;  %v1554_v39 = vrot.slane %v1553_v0, 1  ;;  %v1561_v19 = vrot.slane %v1560_v31, 1 }
 0x1c6   :  { %4258 = vrot.lane.b32.xlu0 %v4257_v59, %s4402_s24  ;;  %v1754_v57 = vrot.slane %v5106_v17, 7  ;;  %vm1770_vm12 = vcmp.ge.s32.totalorder %v1563_v5, 1  ;;  %v1851_v12 = vrot.slane %v5109_v50, 2  ;;  %vm1867_vm13 = vcmp.lt.s32.totalorder %v1564_v22, 14 }
 0x1c7   :  { %v1548_v58 = vmax.f32 %v1546_v24, %v1547_v36  ;;  %v1555_v30 = vmax.f32 %v1553_v0, %v1554_v39  ;;  %v1694_v37 = vsel %vm1641_vm6, %v1541_v43, %v1693_v11  ;;  %v1562_v55 = vmax.f32 %v1560_v31, %v1561_v19  ;;  %v3969_v36 = vld [vmem:[%s6047_s4 + $0x20] sm:$0xff]  ;;  %v3968_v39 = vld [vmem:[%s6047_s4 + $0x18] sm:$0xff]  ;;  %v3967_v19 = vld [vmem:[%s6047_s4 + $0x10] sm:$0xff] }
 0x1c8   :  { %v1768_v47 = vsel %vm6062_vm0, %v1754_v57, %v1755_v46  ;;  %v1805_v21 = vrot.slane %v5221_v15, 1  ;;  %vm1821_vm10 = vcmp.lt.s32.totalorder %v1566_v51, 15  ;;  %v5427_v25 = vadd.s32 48, %v4503_v1  ;;  %2114 = vmatpush.bf16.msra.mxu1 %v3969_v36  ;;  %v3965_v11 = vld [vmem:[%s6047_s4] sm:$0xff] }
 0x1c9   :  { %v1695_v13 = vsel %vm6065_vm7, %v1548_v58, %v1694_v37  ;;  %v4252_v49 = vpack.i.bf16 %v5296_v40, %v5248_v33  ;;  %v1760_v4 = vrot.slane %v5334_v23, 7  ;;  %v1707_v37 = vrot.slane %v5109_v50, 6 }
 0x1ca   :  { %v1696_v10 = vsel %vm6063_vm8, %v1555_v30, %v1695_v13  ;;  %v1813_v3 = vsel %vm348_vm2, %v1805_v21, %v1806_v26  ;;  %v1814_v22 = vsel %vm348_vm2, %v1804_v2, %v1805_v21  ;;  %v1569_v26 = vand.u32 15, %v5427_v25 }
 0x1cb   :  { %v5381_v53 = vsel %vm6064_vm9, %v1562_v55, %v1696_v10  ;;  %v1763_v2 = vsel %vm6062_vm0, %v1759_v27, %v1760_v4  ;;  %v1706_v30 = vrot.slane %v5106_v17, 6 }
 0x1cc   :  { %v4272_v42 = vpack.i.bf16 %v5381_v53, %v5334_v23  ;;  %v1809_v63 = vrot.slane %v5381_v53, 1  ;;  %v1761_v18 = vrot.slane %v5381_v53, 7  ;;  %vm1776_vm11 = vcmp.ge.s32.totalorder %v1569_v26, 1  ;;  %2115 = vmatpush.bf16.msra.mxu1 %v3968_v39 }
 0x1cd   :  { %v1857_v24 = vrot.slane %v5381_v53, 2  ;;  %v1800_v0 = vsel %vm1776_vm11, %v1763_v2, 0.0  ;;  %v1713_v58 = vrot.slane %v5381_v53, 6  ;;  %vm2036_vm11 = vcmask 392192  }
 0x1ce   :  { %4273 = vrot.lane.b32.xlu0 %v4272_v42, %s4401_s22  ;;  %v1810_v20 = vsel %vm348_vm2, %v1808_v6, %v1809_v63  ;;  %v1817_v29 = vsel %vm348_vm2, %v1809_v63, %v1802_v60  ;;  %v1769_v16 = vsel %vm6062_vm0, %v1761_v18, %v1754_v57  ;;  %v1863_v60 = vsel %vm445_vm3, %v1851_v12, %v1852_v62 }
 0x1cf   :  { %v1849_v54 = vsel %vm1825_vm14, %v1817_v29, 0.0  ;;  %v1794_v38 = vsel %vm1770_vm12, %v1769_v16, 0.0  ;;  %v1850_v6 = vrot.slane %v5106_v17, 2  ;;  %v1891_v46 = vsel %vm1867_vm13, %v1863_v60, 0.0 }
 0x1d0   :  { %v4277_v8 = vpack.i.bf16 %v1849_v54, %v1810_v20  ;;  %v4217_v52 = vpack.i.bf16 %v1768_v47, %v1794_v38  ;;  %v1845_v62 = vsel %vm1821_vm10, %v1813_v3, 0.0  ;;  %v1762_v51 = vsel %vm6062_vm0, %v1760_v4, %v1761_v18  ;;  %2116 = vmatpush.bf16.msra.mxu1 %v3967_v19 }
 0x1d1   :  { %v1864_v34 = vsel %vm445_vm3, %v1850_v6, %v1851_v12  ;;  %v4237_v7 = vpack.i.bf16 %v1845_v62, %v1814_v22  ;;  %v4267_v31 = vpack.i.bf16 %v1762_v51, %v1800_v0  ;;  %v1865_v41 = vsel %vm445_vm3, %v1857_v24, %v1850_v6 }
 0x1d2   :  { %4278 = vrot.lane.b32.xlu1 %v4277_v8, %s4402_s24  ;;  %4218 = vrot.lane.b32.xlu2 %v4217_v52, %s4403_s25  ;;  %v4222_v28 = vpack.i.bf16 %v1891_v46, %v1864_v34  ;;  %vm1873_vm14 = vcmp.lt.s32.totalorder %v1570_v32, 14  ;;  %v1858_v27 = vsel %vm445_vm3, %v1856_v44, %v1857_v24  ;;  %v3966_v44 = vld [vmem:[%s6047_s4 + $0x8] sm:$0xff]  ;;  %vm1722_vm12 = vcmp.ge.s32.totalorder %v1563_v5, 2 }
 0x1d3   :  { %v1897_v59 = vsel %vm1873_vm14, %v1865_v41, 0.0  ;;  %v1721_v55 = vsel %vm154_vm4, %v1713_v58, %v1706_v30  ;;  %vm2018_vm13 = vcmask 130048   ;;  %v1720_v42 = vsel %vm154_vm4, %v1706_v30, %v1707_v37 }
 0x1d4   :  { %v4282_v43 = vpack.i.bf16 %v1897_v59, %v1858_v27  ;;  %2117 = vmatpush.bf16.msra.mxu1 %v3966_v44  ;;  %v1746_v63 = vsel %vm1722_vm12, %v1721_v55, 0.0  ;;  %vm2027_vm10 = vcmask 261120   ;;  %vm2045_vm14 = vcmask 523264  }
 0x1d5   :  { %v1708_v12 = vrot.slane %v5140_v61, 6  ;;  %vm2098_vm12 = vcmask 654336   ;;  %v1709_v3 = vrot.slane %v5221_v15, 6  ;;  %vm1724_vm0 = vcmp.ge.s32.totalorder %v1565_v56, 2 }
 0x1d6   :  { %v4209_v57 = vpop.permute.xlu0 %4208  ;;  %v1710_v30 = vrot.slane %v5248_v33, 6 }
 0x1d7   :  { %v4211_v18 = vunpack.i.h.bf16 %v4209_v57  ;;  %v4210_v5 = vunpack.i.l.bf16 %v4209_v57  ;;  %v1719_v62 = vsel %vm154_vm4, %v1707_v37, %v1708_v12  ;;  %v1718_v2 = vsel %vm154_vm4, %v1708_v12, %v1709_v3 }
 0x1d8   :  { %2118 = vmatpush.bf16.msra.mxu1 %v3965_v11  ;;  %v1748_v4 = vsel %vm1724_vm0, %v1719_v62, 0.0  ;;  %vm1726_vm0 = vcmp.ge.s32.totalorder %v1567_v35, 2 }
 0x1da   :  { %4223 = vrot.lane.b32.xlu2 %v4222_v28, %s4391_s18 }
 0x1e2   :  { %4238 = vrot.lane.b32.xlu2 %v4237_v7, %s4402_s24 }
 0x1ea   :  { %4253 = vrot.lane.b32.xlu2 %v4252_v49, %s4401_s22 }
 0x1eb   :  { %v4214_v20 = vpop.permute.xlu1 %4213 }
 0x1ec   :  { %v4216_v54 = vunpack.i.h.bf16 %v4214_v20  ;;  %v4215_v47 = vunpack.i.l.bf16 %v4214_v20 }
 0x1f2   :  { %4268 = vrot.lane.b32.xlu2 %v4267_v31, %s4403_s25 }
 0x1fa   :  { %4283 = vrot.lane.b32.xlu2 %v4282_v43, %s4391_s18 }
 0x202   :  { %v4234_v7 = vpop.permute.xlu1 %4233 }
 0x203   :  { %v4236_v31 = vunpack.i.h.bf16 %v4234_v7  ;;  %v4235_v41 = vunpack.i.l.bf16 %v4234_v7 }
 0x205   :  { %v4229_v46 = vpop.permute.xlu0 %4228 }
 0x206   :  { %v4231_v61 = vunpack.i.h.bf16 %v4229_v46  ;;  %v4230_v22 = vunpack.i.l.bf16 %v4229_v46 }
 0x208   :  { %v2021_v51 = vsel %vm2018_vm13, %v1748_v4, %v4230_v22  ;;  %v2022_v15 = vsel %vm2018_vm13, %v1718_v2, %v4231_v61 }
 0x209   :  { %v2030_v56 = vsel %vm2027_vm10, %v2021_v51, %v4235_v41  ;;  %v2031_v59 = vsel %vm2027_vm10, %v2022_v15, %v4236_v31 }
 0x217   :  { %v4244_v27 = vpop.permute.xlu0 %4243 }
 0x218   :  { %v4246_v39 = vunpack.i.h.bf16 %v4244_v27  ;;  %v4245_v19 = vunpack.i.l.bf16 %v4244_v27 }
 0x22c   :  { %v4219_v32 = vpop.permute.xlu2 %4218 }
 0x22d   :  { %v4221_v13 = vunpack.i.h.bf16 %v4219_v32  ;;  %v4220_v10 = vunpack.i.l.bf16 %v4219_v32  ;;  %v4249_v37 = vpop.permute.xlu1 %4248 }
 0x22e   :  { %v4251_v57 = vunpack.i.h.bf16 %v4249_v37 }
 0x22f   :  { %v2020_v17 = vsel %vm2018_vm13, %v1720_v42, %v4221_v13  ;;  %v2019_v50 = vsel %vm2018_vm13, %v1746_v63, %v4220_v10  ;;  %v1711_v13 = vrot.slane %v5296_v40, 6  ;;  %v1717_v10 = vsel %vm154_vm4, %v1709_v3, %v1710_v30 }
 0x230   :  { %v2029_v29 = vsel %vm2027_vm10, %v2020_v17, %v4211_v18  ;;  %v2028_v16 = vsel %vm2027_vm10, %v2019_v50, %v4210_v5  ;;  %v4250_v42 = vunpack.i.l.bf16 %v4249_v37  ;;  %v1750_v50 = vsel %vm1726_vm0, %v1717_v10, 0.0 }
 0x231   :  { %v2037_v60 = vsel %vm2036_vm11, %v2028_v16, %v4215_v47  ;;  %v2038_v6 = vsel %vm2036_vm11, %v2029_v29, %v4216_v54  ;;  %v1716_v33 = vsel %vm154_vm4, %v1710_v30, %v1711_v13  ;;  %vm1728_vm0 = vcmp.ge.s32.totalorder %v1569_v26, 2 }
 0x232   :  { %v2023_v5 = vsel %vm2018_vm13, %v1750_v50, %v4250_v42  ;;  %v2024_v40 = vsel %vm2018_vm13, %v1716_v33, %v4251_v57 }
 0x234   :  { %v4224_v38 = vpop.permute.xlu2 %4223 }
 0x235   :  { %v4226_v8 = vunpack.i.h.bf16 %v4224_v38  ;;  %v4225_v52 = vunpack.i.l.bf16 %v4224_v38 }
 0x236   :  { %v4264_v35 = vpop.permute.xlu1 %4263 }
 0x237   :  { %v2046_v34 = vsel %vm2045_vm14, %v2037_v60, %v4225_v52  ;;  %v2047_v28 = vsel %vm2045_vm14, %v2038_v6, %v4226_v8  ;;  %v4266_v38 = vunpack.i.h.bf16 %v4264_v35  ;;  %v4265_v8 = vunpack.i.l.bf16 %v4264_v35 }
 0x238   :  { %v2054_v21 = vpack.c.bf16 %v2047_v28, %v2046_v34  ;;  %v4259_v18 = vpop.permute.xlu0 %4258  ;;  %v1712_v6 = vrot.slane %v5334_v23, 6 }
 0x239   :  { %v4261_v29 = vunpack.i.h.bf16 %v4259_v18  ;;  %v4260_v16 = vunpack.i.l.bf16 %v4259_v18 }
 0x23a   :  { %3709 = vmatmul.msk.bf16.vlgmr.msra.gmra.mxu1 %vm2098_vm12, %v2054_v21  ;;  %v1715_v34 = vsel %vm154_vm4, %v1711_v13, %v1712_v6  ;;  %v1714_v61 = vsel %vm154_vm4, %v1712_v6, %v1713_v58 }
 0x23b   :  { %v1752_v62 = vsel %vm1728_vm0, %v1715_v34, 0.0 }
 0x23c   :  { %v4239_v49 = vpop.permute.xlu2 %4238 }
 0x23d   :  { %v4241_v24 = vunpack.i.h.bf16 %v4239_v49  ;;  %v4240_v0 = vunpack.i.l.bf16 %v4239_v49 }
 0x23f   :  { %v2040_v43 = vsel %vm2036_vm11, %v2031_v59, %v4241_v24  ;;  %v2039_v36 = vsel %vm2036_vm11, %v2030_v56, %v4240_v0  ;;  %v5541_v56 = vld [vmem:[%s6048_s5] ss:$0 sm:$0xff] }
 0x240   :  { %v2048_v44 = vsel %vm2045_vm14, %v2039_v36, %v4245_v19  ;;  %v2049_v11 = vsel %vm2045_vm14, %v2040_v43, %v4246_v39  ;;  %v4274_v3 = vpop.permute.xlu0 %4273  ;;  %v5546_v59 = vld [vmem:[%s6049_s6] ss:$0 sm:$0xff] }
 0x241   :  { %v2055_v55 = vpack.c.bf16 %v2049_v11, %v2048_v44  ;;  %v4276_v49 = vunpack.i.h.bf16 %v4274_v3  ;;  %v4275_v4 = vunpack.i.l.bf16 %v4274_v3 }
 0x244   :  { %v4254_v32 = vpop.permute.xlu2 %4253  ;;  %v4279_v25 = vpop.permute.xlu1 %4278 }
 0x245   :  { %v4256_v63 = vunpack.i.h.bf16 %v4254_v32  ;;  %v4255_v17 = vunpack.i.l.bf16 %v4254_v32  ;;  %v4281_v24 = vunpack.i.h.bf16 %v4279_v25  ;;  %v4280_v0 = vunpack.i.l.bf16 %v4279_v25 }
 0x247   :  { %v2033_v20 = vsel %vm2027_vm10, %v2024_v40, %v4256_v63  ;;  %v2032_v45 = vsel %vm2027_vm10, %v2023_v5, %v4255_v17 }
 0x248   :  { %v2041_v54 = vsel %vm2036_vm11, %v2032_v45, %v4260_v16  ;;  %v2042_v47 = vsel %vm2036_vm11, %v2033_v20, %v4261_v29 }
 0x249   :  { %v2050_v12 = vsel %vm2045_vm14, %v2041_v54, %v4265_v8  ;;  %v2051_v60 = vsel %vm2045_vm14, %v2042_v47, %v4266_v38 }
 0x24a   :  { %3710 = vmatmul.msk.bf16.gmra.mxu1 %vm2098_vm12, %v2055_v55  ;;  %v2056_v46 = vpack.c.bf16 %v2051_v60, %v2050_v12 }
 0x24c   :  { %v4269_v52 = vpop.permute.xlu2 %4268 }
 0x24d   :  { %v4271_v28 = vunpack.i.h.bf16 %v4269_v52  ;;  %v4270_v21 = vunpack.i.l.bf16 %v4269_v52 }
 0x24f   :  { %v2025_v23 = vsel %vm2018_vm13, %v1752_v62, %v4270_v21  ;;  %v2026_v22 = vsel %vm2018_vm13, %v1714_v61, %v4271_v28  ;;  %vm2228_vm13 = vcmask 254976  }
 0x250   :  { %v2034_v26 = vsel %vm2027_vm10, %v2025_v23, %v4275_v4  ;;  %v2035_v2 = vsel %vm2027_vm10, %v2026_v22, %v4276_v49 }
 0x251   :  { %v2043_v53 = vsel %vm2036_vm11, %v2034_v26, %v4280_v0  ;;  %v2044_v58 = vsel %vm2036_vm11, %v2035_v2, %v4281_v24 }
 0x254   :  { %v4284_v7 = vpop.permute.xlu2 %4283 }
 0x255   :  { %v4286_v51 = vunpack.i.h.bf16 %v4284_v7  ;;  %v4285_v15 = vunpack.i.l.bf16 %v4284_v7 }
 0x257   :  { %v2052_v31 = vsel %vm2045_vm14, %v2043_v53, %v4285_v15  ;;  %v2053_v41 = vsel %vm2045_vm14, %v2044_v58, %v4286_v51 }
 0x258   :  { %v2057_v27 = vpack.c.bf16 %v2053_v41, %v2052_v31 }
 0x25a   :  { %3711 = vmatmul.msk.bf16.gmra.mxu1 %vm2098_vm12, %v2056_v46 }
 0x26a   :  { %3712 = vmatmul.msk.bf16.gmra.mxu1 %vm2098_vm12, %v2057_v27 }
 0x2b7   :  { %v2120_v43 = vpop.f32.mrf.mxu1 }
 0x2b8   :  { %v2144_v36 = vmul.f32 %v5541_v56, %v2120_v43 }
 0x2ba   :  { %v2156_v39 = vadd.f32 %v5546_v59, %v2144_v36 }
 0x2bc   :  { %v2164_v19 = vmax.f32 %v2156_v39, 0.0 }
 0x2be   :  { %v2180_v44 = vrot.slane %v2164_v19, 2  ;;  %v2181_v11 = vrot.slane %v2164_v19, 4  ;;  %v2182_v30 = vrot.slane %v2164_v19, 6  ;;  %v2229_v37 = vsel %vm2228_vm13, %v2164_v19, -inf }
 0x2bf   :  { %v2230_v32 = vrot.slane %v2229_v37, 4  ;;  %v2122_v55 = vpop.f32.mrf.mxu1 }
 0x2c0   :  { %v2236_v13 = vsel %vm2228_vm13, %v2180_v44, -inf  ;;  %v2243_v10 = vsel %vm2228_vm13, %v2181_v11, -inf  ;;  %v2250_v57 = vsel %vm2228_vm13, %v2182_v30, -inf  ;;  %v2145_v42 = vmul.f32 %v5541_v56, %v2122_v55 }
 0x2c1   :  { %v2231_v63 = vmax.f32 %v2229_v37, %v2230_v32  ;;  %v2237_v17 = vrot.slane %v2236_v13, 4  ;;  %v2244_v50 = vrot.slane %v2243_v10, 4  ;;  %v2251_v33 = vrot.slane %v2250_v57, 4 }
 0x2c2   :  { %v2157_v18 = vadd.f32 %v5546_v59, %v2145_v42 }
 0x2c3   :  { %v2232_v5 = vrot.slane %v2231_v63, 2  ;;  %v2238_v40 = vmax.f32 %v2236_v13, %v2237_v17  ;;  %v2245_v20 = vmax.f32 %v2243_v10, %v2244_v50  ;;  %v2252_v45 = vmax.f32 %v2250_v57, %v2251_v33 }
 0x2c4   :  { %v2165_v35 = vmax.f32 %v2157_v18, 0.0 }
 0x2c5   :  { %v2239_v29 = vrot.slane %v2238_v40, 2  ;;  %v2246_v16 = vrot.slane %v2245_v20, 2  ;;  %v2253_v54 = vrot.slane %v2252_v45, 2  ;;  %v2233_v38 = vmax.f32 %v2231_v63, %v2232_v5 }
 0x2c6   :  { %v2257_v47 = vsel %vm2228_vm13, %v2165_v35, -inf  ;;  %v2183_v12 = vrot.slane %v2165_v35, 2  ;;  %v2184_v60 = vrot.slane %v2165_v35, 4  ;;  %v2185_v46 = vrot.slane %v2165_v35, 6 }
 0x2c7   :  { %v2125_v8 = vpop.f32.mrf.mxu1  ;;  %v2240_v52 = vmax.f32 %v2238_v40, %v2239_v29  ;;  %v2258_v6 = vrot.slane %v2257_v47, 4  ;;  %v2247_v34 = vmax.f32 %v2245_v20, %v2246_v16  ;;  %v2254_v28 = vmax.f32 %v2252_v45, %v2253_v54 }
 0x2c8   :  { %v2234_v21 = vrot.slane %v2233_v38, 1  ;;  %v2146_v3 = vmul.f32 %v5541_v56, %v2125_v8  ;;  %v2264_v23 = vsel %vm2228_vm13, %v2183_v12, -inf  ;;  %v2271_v22 = vsel %vm2228_vm13, %v2184_v60, -inf }
 0x2c9   :  { %v2241_v62 = vrot.slane %v2240_v52, 1  ;;  %v2259_v61 = vmax.f32 %v2257_v47, %v2258_v6  ;;  %v2278_v7 = vsel %vm2228_vm13, %v2185_v46, -inf  ;;  %v2248_v4 = vrot.slane %v2247_v34, 1 }
 0x2ca   :  { %v2158_v49 = vadd.f32 %v5546_v59, %v2146_v3  ;;  %v2255_v25 = vrot.slane %v2254_v28, 1  ;;  %v2235_v26 = vmax.f32 %v2233_v38, %v2234_v21  ;;  %v2265_v2 = vrot.slane %v2264_v23, 4 }
 0x2cb   :  { %v2272_v51 = vrot.slane %v2271_v22, 4  ;;  %v2242_v0 = vmax.f32 %v2240_v52, %v2241_v62  ;;  %v2260_v53 = vrot.slane %v2259_v61, 2  ;;  %v2279_v58 = vrot.slane %v2278_v7, 4 }
 0x2cc   :  { %v2166_v15 = vmax.f32 %v2158_v49, 0.0  ;;  %v5564_v39 = vmax.f32 %v2247_v34, %v2248_v4  ;;  %v5566_v19 = vmax.f32 %v2254_v28, %v2255_v25  ;;  %v2266_v30 = vmax.f32 %v2264_v23, %v2265_v2 }
 0x2cd   :  { %v2261_v63 = vmax.f32 %v2259_v61, %v2260_v53  ;;  %v2273_v17 = vmax.f32 %v2271_v22, %v2272_v51  ;;  %v5572_v50 = vmax.f32 %v2278_v7, %v2279_v58  ;;  %v5579_v7 = vsel %vm1635_vm15, %v2242_v0, %v2235_v26 }
 0x2ce   :  { %v2186_v41 = vrot.slane %v2166_v15, 2  ;;  %v2187_v27 = vrot.slane %v2166_v15, 4  ;;  %v2188_v43 = vrot.slane %v2166_v15, 6  ;;  %v2285_v36 = vsel %vm2228_vm13, %v2166_v15, -inf }
 0x2cf   :  { %v2127_v24 = vpop.f32.mrf.mxu1  ;;  %v2286_v44 = vrot.slane %v2285_v36, 4  ;;  %v2267_v34 = vrot.slane %v2266_v30, 2  ;;  %v2262_v49 = vrot.slane %v2261_v63, 1  ;;  %v2274_v4 = vrot.slane %v2273_v17, 2 }
 0x2d0   :  { %v2147_v31 = vmul.f32 %v5541_v56, %v2127_v24  ;;  %v2292_v37 = vsel %vm2228_vm13, %v2186_v41, -inf  ;;  %v2299_v32 = vsel %vm2228_vm13, %v2187_v27, -inf  ;;  %v2306_v55 = vsel %vm2228_vm13, %v2188_v43, -inf }
 0x2d1   :  { %v2287_v13 = vmax.f32 %v2285_v36, %v2286_v44  ;;  %v2293_v10 = vrot.slane %v2292_v37, 4  ;;  %v2300_v57 = vrot.slane %v2299_v32, 4  ;;  %v2307_v42 = vrot.slane %v2306_v55, 4 }
 0x2d2   :  { %v2159_v11 = vadd.f32 %v5546_v59, %v2147_v31  ;;  %v5581_v53 = vmax.f32 %v2266_v30, %v2267_v34  ;;  %v5586_v0 = vmax.f32 %v2273_v17, %v2274_v4  ;;  %v5591_v30 = vmax.f32 %v2261_v63, %v2262_v49 }
 0x2d3   :  { %v2288_v18 = vrot.slane %v2287_v13, 2  ;;  %v2294_v5 = vmax.f32 %v2292_v37, %v2293_v10  ;;  %v2301_v40 = vmax.f32 %v2299_v32, %v2300_v57  ;;  %v2308_v20 = vmax.f32 %v2306_v55, %v2307_v42 }
 0x2d4   :  { %v2167_v33 = vmax.f32 %v2159_v11, 0.0  ;;  %v2281_v11 = vrot.slane %v5572_v50, 2  ;;  %v2269_v57 = vrot.slane %v5581_v53, 1 }
 0x2d5   :  { %v2289_v47 = vmax.f32 %v2287_v13, %v2288_v18  ;;  %v2295_v38 = vrot.slane %v2294_v5, 2  ;;  %v2302_v8 = vrot.slane %v2301_v40, 2  ;;  %v2309_v52 = vrot.slane %v2308_v20, 2 }
 0x2d6   :  { %v2189_v45 = vrot.slane %v2167_v33, 2  ;;  %v2190_v35 = vrot.slane %v2167_v33, 4  ;;  %v2191_v29 = vrot.slane %v2167_v33, 6  ;;  %v2313_v16 = vsel %vm2228_vm13, %v2167_v33, -inf }
 0x2d7   :  { %v2130_v54 = vpop.f32.mrf.mxu1  ;;  %v2314_v12 = vrot.slane %v2313_v16, 4  ;;  %v2296_v28 = vmax.f32 %v2294_v5, %v2295_v38  ;;  %v2303_v21 = vmax.f32 %v2301_v40, %v2302_v8  ;;  %v2310_v3 = vmax.f32 %v2308_v20, %v2309_v52 }
 0x2d8   :  { %v2320_v60 = vsel %vm2228_vm13, %v2189_v45, -inf  ;;  %v2327_v6 = vsel %vm2228_vm13, %v2190_v35, -inf  ;;  %v2334_v46 = vsel %vm2228_vm13, %v2191_v29, -inf  ;;  %v2290_v2 = vrot.slane %v2289_v47, 1 }
 0x2d9   :  { %v2315_v62 = vmax.f32 %v2313_v16, %v2314_v12  ;;  %v2321_v61 = vrot.slane %v2320_v60, 4  ;;  %v2328_v23 = vrot.slane %v2327_v6, 4  ;;  %v2335_v22 = vrot.slane %v2334_v46, 4 }
 0x2da   :  { %v2297_v25 = vrot.slane %v2296_v28, 1  ;;  %v2304_v58 = vrot.slane %v2303_v21, 1  ;;  %v2311_v31 = vrot.slane %v2310_v3, 1  ;;  %v2148_v41 = vmul.f32 %v5541_v56, %v2130_v54 }
 0x2db   :  { %v2316_v51 = vrot.slane %v2315_v62, 2  ;;  %v2322_v15 = vmax.f32 %v2320_v60, %v2321_v61  ;;  %v2329_v24 = vmax.f32 %v2327_v6, %v2328_v23  ;;  %v5584_v44 = vmax.f32 %v2334_v46, %v2335_v22 }
 0x2dc   :  { %v2298_v27 = vmax.f32 %v2296_v28, %v2297_v25  ;;  %v2160_v37 = vadd.f32 %v5546_v59, %v2148_v41  ;;  %v2291_v55 = vmax.f32 %v2289_v47, %v2290_v2  ;;  %v5597_v17 = vmax.f32 %v2303_v21, %v2304_v58 }
 0x2dd   :  { %v2317_v43 = vmax.f32 %v2315_v62, %v2316_v51  ;;  %v2323_v36 = vrot.slane %v2322_v15, 2  ;;  %v2330_v10 = vrot.slane %v2329_v24, 2  ;;  %v5599_v5 = vmax.f32 %v2310_v3, %v2311_v31 }
 0x2de   :  { %v2168_v33 = vmax.f32 %v2160_v37, 0.0  ;;  %v5602_v40 = vsel %vm1635_vm15, %v2298_v27, %v2291_v55  ;;  %v2337_v63 = vrot.slane %v5584_v44, 2 }
 0x2df   :  { %v2132_v26 = vpop.f32.mrf.mxu1  ;;  %v2318_v13 = vrot.slane %v2317_v43, 1  ;;  %v5594_v42 = vmax.f32 %v2322_v15, %v2323_v36  ;;  %v5608_v54 = vmax.f32 %v2329_v24, %v2330_v10 }
 0x2e0   :  { %v2149_v32 = vmul.f32 %v5541_v56, %v2132_v26  ;;  %v2192_v20 = vrot.slane %v2168_v33, 2  ;;  %v2193_v45 = vrot.slane %v2168_v33, 4  ;;  %v2194_v35 = vrot.slane %v2168_v33, 6 }
 0x2e1   :  { %v2341_v29 = vsel %vm2228_vm13, %v2168_v33, -inf  ;;  %v5606_v16 = vmax.f32 %v2317_v43, %v2318_v13  ;;  %v2325_v8 = vrot.slane %v5594_v42, 1 }
 0x2e2   :  { %v2161_v18 = vadd.f32 %v5546_v59, %v2149_v32  ;;  %v2342_v47 = vrot.slane %v2341_v29, 4  ;;  %v2348_v52 = vsel %vm2228_vm13, %v2192_v20, -inf  ;;  %v2355_v12 = vsel %vm2228_vm13, %v2193_v45, -inf }
 0x2e3   :  { %v2362_v60 = vsel %vm2228_vm13, %v2194_v35, -inf  ;;  %v2349_v46 = vrot.slane %v2348_v52, 4  ;;  %v2356_v34 = vrot.slane %v2355_v12, 4 }
 0x2e4   :  { %v2169_v38 = vmax.f32 %v2161_v18, 0.0  ;;  %v2343_v6 = vmax.f32 %v2341_v29, %v2342_v47  ;;  %v2363_v28 = vrot.slane %v2362_v60, 4 }
 0x2e5   :  { %v2350_v22 = vmax.f32 %v2348_v52, %v2349_v46  ;;  %v2357_v49 = vmax.f32 %v2355_v12, %v2356_v34 }
 0x2e6   :  { %v2195_v21 = vrot.slane %v2169_v38, 2  ;;  %v2196_v3 = vrot.slane %v2169_v38, 4  ;;  %v2197_v62 = vrot.slane %v2169_v38, 6  ;;  %v2369_v61 = vsel %vm2228_vm13, %v2169_v38, -inf }
 0x2e7   :  { %v2344_v23 = vrot.slane %v2343_v6, 2  ;;  %v2364_v4 = vmax.f32 %v2362_v60, %v2363_v28  ;;  %v2370_v25 = vrot.slane %v2369_v61, 4  ;;  %v2351_v58 = vrot.slane %v2350_v22, 2  ;;  %v2135_v45 = vpop.f32.mrf.mxu1 }
 0x2e8   :  { %v2376_v2 = vsel %vm2228_vm13, %v2195_v21, -inf  ;;  %v2383_v51 = vsel %vm2228_vm13, %v2196_v3, -inf  ;;  %v2390_v15 = vsel %vm2228_vm13, %v2197_v62, -inf  ;;  %v2358_v31 = vrot.slane %v2357_v49, 2 }
 0x2e9   :  { %v2345_v24 = vmax.f32 %v2343_v6, %v2344_v23  ;;  %v2365_v41 = vrot.slane %v2364_v4, 2  ;;  %v2371_v27 = vmax.f32 %v2369_v61, %v2370_v25  ;;  %v2377_v43 = vrot.slane %v2376_v2, 4 }
 0x2ea   :  { %v2384_v36 = vrot.slane %v2383_v51, 4  ;;  %v2391_v26 = vrot.slane %v2390_v15, 4  ;;  %v2352_v32 = vmax.f32 %v2350_v22, %v2351_v58  ;;  %v2359_v55 = vmax.f32 %v2357_v49, %v2358_v31  ;;  %v3979_v22 = vld [vmem:[%s6050_s7 + $0x48] sm:$0xff]  ;;  %v3978_v31 = vld [vmem:[%s6050_s7 + $0x40] sm:$0xff] }
 0x2eb   :  { %v2346_v37 = vrot.slane %v2345_v24, 1  ;;  %v2366_v13 = vmax.f32 %v2364_v4, %v2365_v41  ;;  %v2372_v10 = vrot.slane %v2371_v27, 2  ;;  %v2378_v33 = vmax.f32 %v2376_v2, %v2377_v43  ;;  %2789 = vmatpush.bf16.msra.mxu3 %v3979_v22 }
 0x2ec   :  { %v2385_v18 = vmax.f32 %v2383_v51, %v2384_v36  ;;  %v2392_v20 = vmax.f32 %v2390_v15, %v2391_v26  ;;  %v2353_v29 = vrot.slane %v2352_v32, 1  ;;  %v2360_v47 = vrot.slane %v2359_v55, 1 }
 0x2ed   :  { %v2347_v35 = vmax.f32 %v2345_v24, %v2346_v37  ;;  %v2367_v38 = vrot.slane %v2366_v13, 1  ;;  %v2373_v52 = vmax.f32 %v2371_v27, %v2372_v10  ;;  %v2379_v12 = vrot.slane %v2378_v33, 2 }
 0x2ee   :  { %v2386_v60 = vrot.slane %v2385_v18, 2  ;;  %v2393_v6 = vrot.slane %v2392_v20, 2  ;;  %v2354_v46 = vmax.f32 %v2352_v32, %v2353_v29  ;;  %v2361_v34 = vmax.f32 %v2359_v55, %v2360_v47 }
 0x2ef   :  { %v2368_v28 = vmax.f32 %v2366_v13, %v2367_v38  ;;  %v2150_v21 = vmul.f32 %v5541_v56, %v2135_v45  ;;  %v2374_v3 = vrot.slane %v2373_v52, 1  ;;  %v2380_v62 = vmax.f32 %v2378_v33, %v2379_v12  ;;  %2790 = vmatpush.bf16.msra.mxu3 %v3978_v31 }
 0x2f0   :  { %v2387_v61 = vmax.f32 %v2385_v18, %v2386_v60  ;;  %v2394_v23 = vmax.f32 %v2392_v20, %v2393_v6  ;;  %v2503_v49 = vsel %vm1635_vm15, %v2354_v46, %v2347_v35  ;;  %v2276_v25 = vrot.slane %v5586_v0, 1 }
 0x2f1   :  { %v2162_v4 = vadd.f32 %v5546_v59, %v2150_v21  ;;  %v2282_v2 = vmax.f32 %v5572_v50, %v2281_v11  ;;  %v2504_v51 = vsel %vm1637_vm1, %v2361_v34, %v2503_v49  ;;  %v2375_v15 = vmax.f32 %v2373_v52, %v2374_v3 }
 0x2f2   :  { %v2381_v24 = vrot.slane %v2380_v62, 1  ;;  %v2388_v58 = vrot.slane %v2387_v61, 1  ;;  %v2505_v41 = vsel %vm1639_vm5, %v2368_v28, %v2504_v51  ;;  %v2395_v27 = vrot.slane %v2394_v23, 1 }
 0x2f3   :  { %v2170_v43 = vmax.f32 %v2162_v4, 0.0  ;;  %v2270_v36 = vmax.f32 %v5581_v53, %v2269_v57  ;;  %v2506_v11 = vsel %vm1641_vm6, %v2375_v15, %v2505_v41  ;;  %v2277_v37 = vmax.f32 %v5586_v0, %v2276_v25 }
 0x2f4   :  { %v5636_v26 = vmax.f32 %v2380_v62, %v2381_v24  ;;  %v5638_v50 = vmax.f32 %v2387_v61, %v2388_v58  ;;  %v2283_v10 = vrot.slane %v2282_v2, 1  ;;  %v5642_v33 = vmax.f32 %v2394_v23, %v2395_v27 }
 0x2f5   :  { %v2198_v32 = vrot.slane %v2170_v43, 2  ;;  %v2199_v55 = vrot.slane %v2170_v43, 4  ;;  %v2200_v13 = vrot.slane %v2170_v43, 6  ;;  %v2397_v18 = vsel %vm2228_vm13, %v2170_v43, -inf }
 0x2f6   :  { %v2326_v53 = vmax.f32 %v5594_v42, %v2325_v8  ;;  %v2332_v57 = vrot.slane %v5608_v54, 1  ;;  %v2398_v20 = vrot.slane %v2397_v18, 4  ;;  %v2338_v42 = vmax.f32 %v5584_v44, %v2337_v63 }
 0x2f7   :  { %v2404_v45 = vsel %vm2228_vm13, %v2198_v32, -inf  ;;  %v2411_v0 = vsel %vm2228_vm13, %v2199_v55, -inf  ;;  %v2418_v35 = vsel %vm2228_vm13, %v2200_v13, -inf  ;;  %v2490_v8 = vsel %vm1637_vm1, %v5564_v39, %v5579_v7 }
 0x2f8   :  { %v2405_v29 = vrot.slane %v2404_v45, 4  ;;  %v2412_v47 = vrot.slane %v2411_v0, 4  ;;  %v2419_v38 = vrot.slane %v2418_v35, 4  ;;  %v2333_v52 = vmax.f32 %v5608_v54, %v2332_v57 }
 0x2f9   :  { %v2399_v12 = vmax.f32 %v2397_v18, %v2398_v20  ;;  %v2497_v60 = vsel %vm1637_vm1, %v5597_v17, %v5602_v40  ;;  %v2491_v28 = vsel %vm1639_vm5, %v5566_v19, %v2490_v8  ;;  %v2339_v21 = vrot.slane %v2338_v42, 1  ;;  %v2137_v17 = vpop.f32.mrf.mxu1 }
 0x2fa   :  { %v2406_v6 = vmax.f32 %v2404_v45, %v2405_v29  ;;  %v2413_v46 = vmax.f32 %v2411_v0, %v2412_v47  ;;  %v2420_v34 = vmax.f32 %v2418_v35, %v2419_v38  ;;  %v2492_v3 = vsel %vm1641_vm6, %v5591_v30, %v2491_v28 }
 0x2fb   :  { %v2400_v54 = vrot.slane %v2399_v12, 2  ;;  %v2498_v44 = vsel %vm1639_vm5, %v5599_v5, %v2497_v60  ;;  %v2493_v62 = vsel %vm6065_vm7, %v2270_v36, %v2492_v3  ;;  %v2284_v61 = vmax.f32 %v2282_v2, %v2283_v10 }
 0x2fc   :  { %v2407_v63 = vrot.slane %v2406_v6, 2  ;;  %v2414_v39 = vrot.slane %v2413_v46, 2  ;;  %v2421_v7 = vrot.slane %v2420_v34, 2  ;;  %v2494_v23 = vsel %vm6063_vm8, %v2277_v37, %v2493_v62 }
 0x2fd   :  { %v2401_v40 = vmax.f32 %v2399_v12, %v2400_v54  ;;  %v2499_v19 = vsel %vm1641_vm6, %v5606_v16, %v2498_v44  ;;  %v2340_v30 = vmax.f32 %v2338_v42, %v2339_v21  ;;  %v5675_v5 = vsel %vm6064_vm9, %v2284_v61, %v2494_v23 }
 0x2fe   :  { %v2408_v22 = vmax.f32 %v2406_v6, %v2407_v63  ;;  %v2415_v49 = vmax.f32 %v2413_v46, %v2414_v39  ;;  %v5672_v4 = vmax.f32 %v2420_v34, %v2421_v7  ;;  %v2500_v51 = vsel %vm6065_vm7, %v2326_v53, %v2499_v19 }
 0x2ff   :  { %v2402_v25 = vrot.slane %v2401_v40, 1  ;;  %v2151_v15 = vmul.f32 %v5541_v56, %v2137_v17  ;;  %v2501_v58 = vsel %vm6063_vm8, %v2333_v52, %v2500_v51  ;;  %v5681_v31 = vand.u32 7, %v4503_v1 }
 0x300   :  { %v2409_v24 = vrot.slane %v2408_v22, 1  ;;  %v2416_v2 = vrot.slane %v2415_v49, 1  ;;  %v2423_v41 = vrot.slane %v5672_v4, 1  ;;  %v5685_v27 = vsel %vm6064_vm9, %v2340_v30, %v2501_v58 }
 0x301   :  { %v2403_v16 = vmax.f32 %v2401_v40, %v2402_v25  ;;  %v2163_v43 = vadd.f32 %v5546_v59, %v2151_v15  ;;  %v4292_v56 = vpack.i.bf16 %v5685_v27, %v5675_v5  ;;  %v5691_v32 = vand.u32 7, %v5130_v48 }
 0x302   :  { %v2410_v36 = vmax.f32 %v2408_v22, %v2409_v24  ;;  %v2417_v37 = vmax.f32 %v2415_v49, %v2416_v2  ;;  %v2507_v13 = vsel %vm6065_vm7, %v5636_v26, %v2506_v11  ;;  %v2593_v10 = vrot.slane %v5675_v5, 2 }
 0x303   :  { %v2171_v55 = vmax.f32 %v2163_v43, 0.0  ;;  %v2594_v18 = vrot.slane %v5685_v27, 2  ;;  %4293 = vrot.lane.b32.xlu1 %v4292_v56, %s4391_s18  ;;  %v2508_v59 = vsel %vm6063_vm8, %v5638_v50, %v2507_v13  ;;  %vm2601_vm11 = vcmp.lt.s32.totalorder %v5681_v31, 6 }
 0x304   :  { %v2510_v53 = vsel %vm1635_vm15, %v2410_v36, %v2403_v16  ;;  %vm2602_vm12 = vcmp.lt.s32.totalorder %v5691_v32, 6  ;;  %v5706_v0 = vsel %vm6064_vm9, %v5642_v33, %v2508_v59  ;;  %v2569_v50 = vrot.slane %v5675_v5, 1 }
 0x305   :  { %v2201_v57 = vrot.slane %v2171_v55, 2  ;;  %v2202_v20 = vrot.slane %v2171_v55, 4  ;;  %v2203_v45 = vrot.slane %v2171_v55, 6  ;;  %v2425_v26 = vsel %vm2228_vm13, %v2171_v55, -inf }
 0x306   :  { %v2426_v11 = vrot.slane %v2425_v26, 4  ;;  %v2599_v35 = vsel %vm445_vm3, %v2593_v10, %v2594_v18  ;;  %v2595_v52 = vrot.slane %v5706_v0, 2  ;;  %v2570_v46 = vrot.slane %v5685_v27, 1 }
 0x307   :  { %v2432_v29 = vsel %vm2228_vm13, %v2201_v57, -inf  ;;  %v2439_v47 = vsel %vm2228_vm13, %v2202_v20, -inf  ;;  %v2446_v38 = vsel %vm2228_vm13, %v2203_v45, -inf  ;;  %v2613_v6 = vsel %vm2601_vm11, %v2599_v35, 0.0 }
 0x308   :  { %v2427_v12 = vmax.f32 %v2425_v26, %v2426_v11  ;;  %v2433_v42 = vrot.slane %v2432_v29, 4  ;;  %v2440_v8 = vrot.slane %v2439_v47, 4  ;;  %v2447_v33 = vrot.slane %v2446_v38, 4 }
 0x309   :  { %v2598_v60 = vsel %vm445_vm3, %v2594_v18, %v2595_v52  ;;  %v2571_v34 = vrot.slane %v5706_v0, 1  ;;  %v2575_v39 = vsel %vm348_vm2, %v2569_v50, %v2570_v46  ;;  %vm2577_vm0 = vcmp.lt.s32.totalorder %v5681_v31, 7 }
 0x30a   :  { %v2428_v28 = vrot.slane %v2427_v12, 2  ;;  %v2434_v54 = vmax.f32 %v2432_v29, %v2433_v42  ;;  %v2441_v21 = vmax.f32 %v2439_v47, %v2440_v8  ;;  %v2448_v3 = vmax.f32 %v2446_v38, %v2447_v33 }
 0x30b   :  { %v2614_v44 = vsel %vm2602_vm12, %v2598_v60, 0.0  ;;  %v2574_v63 = vsel %vm348_vm2, %v2570_v46, %v2571_v34  ;;  %vm2578_vm13 = vcmp.lt.s32.totalorder %v5691_v32, 7  ;;  %v2589_v23 = vsel %vm2577_vm0, %v2575_v39, 0.0 }
 0x30c   :  { %v2429_v7 = vmax.f32 %v2427_v12, %v2428_v28  ;;  %v2435_v62 = vrot.slane %v2434_v54, 2  ;;  %v2442_v17 = vrot.slane %v2441_v21, 2  ;;  %v2449_v40 = vrot.slane %v2448_v3, 2 }
 0x30d   :  { %v2675_v61 = vpack.c.bf16 %v2614_v44, %v2613_v6  ;;  %v2511_v19 = vsel %vm1637_vm1, %v2417_v37, %v2510_v53  ;;  %v2590_v25 = vsel %vm2578_vm13, %v2574_v63, 0.0  ;;  %v2424_v51 = vmax.f32 %v5672_v4, %v2423_v41 }
 0x30e   :  { %v2430_v22 = vrot.slane %v2429_v7, 1  ;;  %v2436_v49 = vmax.f32 %v2434_v54, %v2435_v62  ;;  %v2443_v30 = vmax.f32 %v2441_v21, %v2442_v17  ;;  %v4297_v15 = vpack.i.bf16 %v2590_v25, %v2589_v23  ;;  %v3977_v23 = vld [vmem:[%s6050_s7 + $0x38] sm:$0xff] }
 0x30f   :  { %3753 = vmatmul.msk.bf16.vlgmr.msra.gmra.mxu3 %vm2027_vm10, %v2675_v61  ;;  %v2450_v24 = vmax.f32 %v2448_v3, %v2449_v40  ;;  %v2512_v36 = vsel %vm1639_vm5, %v2424_v51, %v2511_v19  ;;  %v5741_v37 = vand.u32 7, %v4542_v14  ;;  %v2455_v41 = vand.u32 7, %v5173_v9  ;;  %2764 = vmatpush.bf16.msra.mxu2 %v3977_v23  ;;  %v3972_v19 = vld [vmem:[%s6050_s7 + $0x10] sm:$0xff] }
 0x310   :  { %v2431_v2 = vmax.f32 %v2429_v7, %v2430_v22  ;;  %v2437_v58 = vrot.slane %v2436_v49, 1  ;;  %v2444_v16 = vrot.slane %v2443_v30, 1  ;;  %4298 = vrot.lane.b32.xlu2 %v4297_v15, %s4404_s28  ;;  %v2546_v53 = vrot.slane %v5685_v27, 7  ;;  %v3971_v22 = vld [vmem:[%s6050_s7 + $0x8] sm:$0xff] }
 0x311   :  { %v2451_v43 = vrot.slane %v2450_v24, 1  ;;  %vm2603_vm11 = vcmp.lt.s32.totalorder %v2455_v41, 6  ;;  %vm2604_vm12 = vcmp.lt.s32.totalorder %v5741_v37, 6  ;;  %vm2579_vm0 = vcmp.lt.s32.totalorder %v2455_v41, 7 }
 0x312   :  { %v2438_v56 = vmax.f32 %v2436_v49, %v2437_v58  ;;  %v2445_v55 = vmax.f32 %v2443_v30, %v2444_v16  ;;  %v2513_v4 = vsel %vm1641_vm6, %v2431_v2, %v2512_v36  ;;  %vm2580_vm13 = vcmp.lt.s32.totalorder %v5741_v37, 7  ;;  %v3970_v49 = vld [vmem:[%s6050_s7] sm:$0xff] }
 0x313   :  { %v2452_v13 = vmax.f32 %v2450_v24, %v2451_v43  ;;  %v2545_v14 = vrot.slane %v5675_v5, 7  ;;  %v2521_v63 = vrot.slane %v5675_v5, 6  ;;  %v2522_v39 = vrot.slane %v5685_v27, 6  ;;  %v3976_v5 = vld [vmem:[%s6050_s7 + $0x30] sm:$0xff]  ;;  %v3975_v27 = vld [vmem:[%s6050_s7 + $0x28] sm:$0xff] }
 0x314   :  { %v2514_v18 = vsel %vm6065_vm7, %v2438_v56, %v2513_v4  ;;  %vm2554_vm7 = vcmp.ge.s32.totalorder %v5691_v32, 1  ;;  %v2523_v17 = vrot.slane %v5706_v0, 6  ;;  %2765 = vmatpush.bf16.msra.mxu2 %v3976_v5 }
 0x315   :  { %v2515_v59 = vsel %vm6063_vm8, %v2445_v55, %v2514_v18  ;;  %vm6090_vm8 = vcmp.lt.s32.totalorder %v4503_v1, 1  ;;  %v2527_v7 = vsel %vm154_vm4, %v2521_v63, %v2522_v39 }
 0x316   :  { %v5750_v57 = vsel %vm6064_vm9, %v2452_v13, %v2515_v59  ;;  %v2551_v11 = vsel %vm6090_vm8, %v2545_v14, %v2546_v53  ;;  %vm2553_vm9 = vcmp.ge.s32.totalorder %v5681_v31, 1  ;;  %v2526_v40 = vsel %vm154_vm4, %v2522_v39, %v2523_v17 }
 0x317   :  { %v4307_v9 = vpack.i.bf16 %v5750_v57, %v5706_v0  ;;  %v2596_v20 = vrot.slane %v5750_v57, 2  ;;  %v2572_v45 = vrot.slane %v5750_v57, 1  ;;  %v2548_v26 = vrot.slane %v5750_v57, 7 }
 0x318   :  { %v2566_v46 = vsel %vm2554_vm7, %v2551_v11, 0.0  ;;  %vm2530_vm7 = vcmp.ge.s32.totalorder %v5691_v32, 2  ;;  %2766 = vmatpush.bf16.msra.mxu2 %v3975_v27  ;;  %v3974_v32 = vld [vmem:[%s6050_s7 + $0x20] sm:$0xff]  ;;  %v2524_v30 = vrot.slane %v5750_v57, 6 }
 0x319   :  { %4308 = vrot.lane.b32.xlu1 %v4307_v9, %s4391_s18  ;;  %v2597_v35 = vsel %vm445_vm3, %v2595_v52, %v2596_v20  ;;  %v2600_v29 = vsel %vm445_vm3, %v2596_v20, %v2593_v10  ;;  %v2573_v47 = vsel %vm348_vm2, %v2571_v34, %v2572_v45  ;;  %v2576_v38 = vsel %vm348_vm2, %v2572_v45, %v2569_v50 }
 0x31a   :  { %v2615_v12 = vsel %vm2603_vm11, %v2597_v35, 0.0  ;;  %v2616_v42 = vsel %vm2604_vm12, %v2600_v29, 0.0  ;;  %v2591_v52 = vsel %vm2579_vm0, %v2573_v47, 0.0  ;;  %v2592_v8 = vsel %vm2580_vm13, %v2576_v38, 0.0  ;;  %vm6091_vm11 = vmmov %vm6090_vm8 }
 0x31b   :  { %v2677_v33 = vpack.c.bf16 %v2616_v42, %v2615_v12  ;;  %v4312_v10 = vpack.i.bf16 %v2592_v8, %v2591_v52  ;;  %v2552_v60 = vsel %vm6090_vm8, %v2548_v26, %v2545_v14  ;;  %v2547_v34 = vrot.slane %v5706_v0, 7  ;;  %vm6092_vm0 = vmmov %vm6090_vm8  ;;  %v3973_v0 = vld [vmem:[%s6050_s7 + $0x18] sm:$0xff] }
 0x31c   :  { %v2565_v6 = vsel %vm2553_vm9, %v2552_v60, 0.0  ;;  %vm2556_vm12 = vcmp.ge.s32.totalorder %v5741_v37, 1  ;;  %vm2555_vm13 = vcmp.ge.s32.totalorder %v2455_v41, 1  ;;  %v2542_v62 = vsel %vm2530_vm7, %v2527_v7, 0.0  ;;  %2767 = vmatpush.bf16.msra.mxu2 %v3974_v32 }
 0x31d   :  { %4313 = vrot.lane.b32.xlu2 %v4312_v10, %s4404_s28  ;;  %v4287_v50 = vpack.i.bf16 %v2566_v46, %v2565_v6  ;;  %v2549_v28 = vsel %vm6091_vm11, %v2547_v34, %v2548_v26  ;;  %v2550_v54 = vsel %vm6092_vm0, %v2546_v53, %v2547_v34  ;;  %vm2531_vm9 = vcmp.ge.s32.totalorder %v2455_v41, 2  ;;  %v5850_v6 = vld [vmem:[%s6051_s8] ss:$0 sm:$0xff] }
 0x31e   :  { %v2568_v21 = vsel %vm2556_vm12, %v2549_v28, 0.0  ;;  %v2567_v3 = vsel %vm2555_vm13, %v2550_v54, 0.0  ;;  %v2543_v61 = vsel %vm2531_vm9, %v2526_v40, 0.0  ;;  %vm2529_vm8 = vcmp.ge.s32.totalorder %v5681_v31, 2  ;;  %v5855_v34 = vld [vmem:[%s6052_s9] ss:$0 sm:$0xff] }
 0x31f   :  { %3754 = vmatmul.msk.bf16.gmra.mxu3 %vm2027_vm10, %v2677_v33  ;;  %4288 = vrot.lane.b32.xlu0 %v4287_v50, %s4401_s22  ;;  %v4302_v44 = vpack.i.bf16 %v2568_v21, %v2567_v3  ;;  %v2528_v51 = vsel %vm154_vm4, %v2524_v30, %v2521_v63  ;;  %vm2669_vm11 = vcmask 785408   ;;  %vm2532_vm12 = vcmp.ge.s32.totalorder %v5741_v37, 2 }
 0x320   :  { %2768 = vmatpush.bf16.msra.mxu2 %v3973_v0  ;;  %v2541_v36 = vsel %vm2529_vm8, %v2528_v51, 0.0  ;;  %v2525_v20 = vsel %vm154_vm4, %v2523_v17, %v2524_v30  ;;  %vm6093_vm0 = vcmask 1045509   ;;  %vm6094_vm13 = vcmask 1046534  }
 0x321   :  { %v2544_v26 = vsel %vm2532_vm12, %v2525_v20, 0.0  ;;  %vm6095_vm7 = vmmov %vm6093_vm0  ;;  %vm6096_vm9 = vcmask 1047559  }
 0x322   :  { %vm6097_vm8 = vmmov %vm6094_vm13 }
 0x324   :  { %2769 = vmatpush.bf16.msra.mxu2 %v3972_v19 }
 0x327   :  { %4303 = vrot.lane.b32.xlu0 %v4302_v44, %s4401_s22 }
 0x328   :  { %2770 = vmatpush.bf16.msra.mxu2 %v3971_v22 }
 0x32c   :  { %2771 = vmatpush.bf16.msra.mxu2 %v3970_v49 }
 0x36a   :  { %v4299_v15 = vpop.permute.xlu2 %4298 }
 0x36b   :  { %v4301_v56 = vunpack.i.h.bf16 %v4299_v15  ;;  %v4300_v55 = vunpack.i.l.bf16 %v4299_v15 }
 0x375   :  { %v4294_v25 = vpop.permute.xlu1 %4293 }
 0x376   :  { %v4296_v16 = vunpack.i.h.bf16 %v4294_v25  ;;  %v4295_v43 = vunpack.i.l.bf16 %v4294_v25 }
 0x377   :  { %v4314_v29 = vpop.permute.xlu2 %4313 }
 0x378   :  { %v4316_v52 = vunpack.i.h.bf16 %v4314_v29  ;;  %v4315_v37 = vunpack.i.l.bf16 %v4314_v29 }
 0x38b   :  { %v4309_v45 = vpop.permute.xlu1 %4308 }
 0x38c   :  { %v4311_v47 = vunpack.i.h.bf16 %v4309_v45  ;;  %v4310_v38 = vunpack.i.l.bf16 %v4309_v45 }
 0x391   :  { %v4289_v24 = vpop.permute.xlu0 %4288 }
 0x392   :  { %v4291_v2 = vunpack.i.h.bf16 %v4289_v24  ;;  %v4290_v58 = vunpack.i.l.bf16 %v4289_v24  ;;  %v2792_v60 = vpop.f32.mrf.mxu3 }
 0x394   :  { %v2662_v4 = vsel %vm2027_vm10, %v2542_v62, %v4291_v2  ;;  %v2661_v41 = vsel %vm2027_vm10, %v2541_v36, %v4290_v58 }
 0x395   :  { %v2665_v13 = vsel %vm2045_vm14, %v2661_v41, %v4295_v43  ;;  %v2666_v31 = vsel %vm2045_vm14, %v2662_v4, %v4296_v16 }
 0x396   :  { %v2670_v18 = vsel %vm2669_vm11, %v2665_v13, %v4300_v55  ;;  %v2671_v53 = vsel %vm2669_vm11, %v2666_v31, %v4301_v56 }
 0x397   :  { %v2674_v59 = vpack.c.bf16 %v2671_v53, %v2670_v18 }
 0x399   :  { %v4304_v57 = vpop.permute.xlu0 %4303  ;;  %2772 = vmatmul.bf16.vlgmr.msra.gmra.mxu2 %v2674_v59 }
 0x39a   :  { %v4306_v14 = vunpack.i.h.bf16 %v4304_v57  ;;  %v4305_v9 = vunpack.i.l.bf16 %v4304_v57  ;;  %v2794_v54 = vpop.f32.mrf.mxu3 }
 0x39c   :  { %v2663_v11 = vsel %vm2027_vm10, %v2543_v61, %v4305_v9  ;;  %v2664_v35 = vsel %vm2027_vm10, %v2544_v26, %v4306_v14  ;;  %vm2850_vm10 = vcmask 517120  }
 0x39d   :  { %v2667_v12 = vsel %vm2045_vm14, %v2663_v11, %v4310_v38  ;;  %v2668_v42 = vsel %vm2045_vm14, %v2664_v35, %v4311_v47 }
 0x39e   :  { %v2672_v8 = vsel %vm2669_vm11, %v2667_v12, %v4315_v37  ;;  %v2673_v33 = vsel %vm2669_vm11, %v2668_v42, %v4316_v52  ;;  %vm6098_vm11 = vmmov %vm6096_vm9 }
 0x39f   :  { %v2676_v10 = vpack.c.bf16 %v2673_v33, %v2672_v8 }
 0x3a2   :  { %v2797_v15 = vpop.f32.mrf.mxu3 }
 0x3a9   :  { %2777 = vmatmul.bf16.gmra.mxu2 %v2676_v10 }
 0x3aa   :  { %v2799_v8 = vpop.f32.mrf.mxu3 }
 0x41c   :  { %v2773_v46 = vpop.f32.mrf.mxu2 }
 0x41d   :  { %v2793_v50 = vadd.f32 %v2792_v60, %v2773_v46 }
 0x41f   :  { %v2806_v28 = vmul.f32 %v5850_v6, %v2793_v50 }
 0x421   :  { %v2814_v21 = vadd.f32 %v5855_v34, %v2806_v28 }
 0x423   :  { %v2818_v3 = vmax.f32 %v2814_v21, 0.0 }
 0x424   :  { %v2775_v44 = vpop.f32.mrf.mxu2 }
 0x425   :  { %v2826_v63 = vrot.slane %v2818_v3, 2  ;;  %v2827_v39 = vrot.slane %v2818_v3, 4  ;;  %v2828_v7 = vrot.slane %v2818_v3, 6  ;;  %v2851_v62 = vsel %vm2850_vm10, %v2818_v3, -inf }
 0x426   :  { %v2852_v17 = vrot.slane %v2851_v62, 4  ;;  %v2795_v40 = vadd.f32 %v2794_v54, %v2775_v44 }
 0x427   :  { %v2858_v61 = vsel %vm2850_vm10, %v2826_v63, -inf  ;;  %v2865_v23 = vsel %vm2850_vm10, %v2827_v39, -inf  ;;  %v2872_v5 = vsel %vm2850_vm10, %v2828_v7, -inf }
 0x428   :  { %v2853_v27 = vmax.f32 %v2851_v62, %v2852_v17  ;;  %v2859_v32 = vrot.slane %v2858_v61, 4  ;;  %v2866_v0 = vrot.slane %v2865_v23, 4  ;;  %v2873_v19 = vrot.slane %v2872_v5, 4 }
 0x429   :  { %v2807_v22 = vmul.f32 %v5850_v6, %v2795_v40 }
 0x42a   :  { %v2854_v49 = vrot.slane %v2853_v27, 2  ;;  %v2860_v30 = vmax.f32 %v2858_v61, %v2859_v32  ;;  %v2867_v25 = vmax.f32 %v2865_v23, %v2866_v0  ;;  %v2874_v51 = vmax.f32 %v2872_v5, %v2873_v19  ;;  %v3987_v19 = vld [vmem:[%s6053_s10 + $0x38] sm:$0xff] }
 0x42b   :  { %v2815_v24 = vadd.f32 %v5855_v34, %v2807_v22  ;;  %v3995_v22 = vld [vmem:[%s6053_s10 + $0x78] sm:$0xff]  ;;  %3231 = vmatpush.bf16.msrb.mxu3 %v3987_v19 }
 0x42c   :  { %v2861_v2 = vrot.slane %v2860_v30, 2  ;;  %v2868_v58 = vrot.slane %v2867_v25, 2  ;;  %v2875_v16 = vrot.slane %v2874_v51, 2  ;;  %v2778_v43 = vpop.f32.mrf.mxu2  ;;  %v2855_v56 = vmax.f32 %v2853_v27, %v2854_v49  ;;  %3245 = vmatpush.bf16.msrb.mxu2 %v3995_v22  ;;  %v3991_v22 = vld [vmem:[%s6053_s10 + $0x58] sm:$0xff] }
 0x42d   :  { %v2819_v36 = vmax.f32 %v2815_v24, 0.0  ;;  %v2798_v41 = vadd.f32 %v2797_v15, %v2778_v43 }
 0x42e   :  { %v2862_v55 = vmax.f32 %v2860_v30, %v2861_v2  ;;  %v2869_v4 = vmax.f32 %v2867_v25, %v2868_v58  ;;  %v2876_v57 = vmax.f32 %v2874_v51, %v2875_v16  ;;  %v2856_v26 = vrot.slane %v2855_v56, 1  ;;  %v3986_v58 = vld [vmem:[%s6053_s10 + $0x30] sm:$0xff] }
 0x42f   :  { %v2829_v13 = vrot.slane %v2819_v36, 2  ;;  %v2830_v31 = vrot.slane %v2819_v36, 4  ;;  %v2831_v18 = vrot.slane %v2819_v36, 6  ;;  %v2879_v53 = vsel %vm2850_vm10, %v2819_v36, -inf  ;;  %v3994_v16 = vld [vmem:[%s6053_s10 + $0x70] sm:$0xff]  ;;  %3232 = vmatpush.bf16.msrb.mxu3 %v3986_v58 }
 0x430   :  { %v2863_v59 = vrot.slane %v2862_v55, 1  ;;  %v2880_v14 = vrot.slane %v2879_v53, 4  ;;  %v2870_v11 = vrot.slane %v2869_v4, 1  ;;  %v2808_v12 = vmul.f32 %v5850_v6, %v2798_v41  ;;  %3246 = vmatpush.bf16.msrb.mxu2 %v3994_v16 }
 0x431   :  { %v2886_v9 = vsel %vm2850_vm10, %v2829_v13, -inf  ;;  %v2893_v20 = vsel %vm2850_vm10, %v2830_v31, -inf  ;;  %v2900_v45 = vsel %vm2850_vm10, %v2831_v18, -inf  ;;  %v2877_v33 = vrot.slane %v2876_v57, 1 }
 0x432   :  { %v2887_v35 = vrot.slane %v2886_v9, 4  ;;  %v2881_v29 = vmax.f32 %v2879_v53, %v2880_v14  ;;  %v2894_v47 = vrot.slane %v2893_v20, 4  ;;  %v2901_v38 = vrot.slane %v2900_v45, 4 }
 0x433   :  { %v2864_v42 = vmax.f32 %v2862_v55, %v2863_v59  ;;  %v2857_v46 = vmax.f32 %v2855_v56, %v2856_v26  ;;  %v2816_v50 = vadd.f32 %v5855_v34, %v2808_v12  ;;  %v2871_v54 = vmax.f32 %v2869_v4, %v2870_v11 }
 0x434   :  { %v2888_v52 = vmax.f32 %v2886_v9, %v2887_v35  ;;  %v2780_v37 = vpop.f32.mrf.mxu2  ;;  %v2882_v10 = vrot.slane %v2881_v29, 2  ;;  %v2895_v60 = vmax.f32 %v2893_v20, %v2894_v47  ;;  %v2902_v3 = vmax.f32 %v2900_v45, %v2901_v38  ;;  %v3993_v45 = vld [vmem:[%s6053_s10 + $0x68] sm:$0xff] }
 0x435   :  { %v2800_v28 = vadd.f32 %v2799_v8, %v2780_v37  ;;  %v2981_v44 = vsel %vm1635_vm15, %v2864_v42, %v2857_v46  ;;  %v2820_v39 = vmax.f32 %v2816_v50, 0.0  ;;  %v2878_v7 = vmax.f32 %v2876_v57, %v2877_v33  ;;  %3247 = vmatpush.bf16.msrb.mxu2 %v3993_v45 }
 0x436   :  { %v2889_v21 = vrot.slane %v2888_v52, 2  ;;  %v2883_v63 = vmax.f32 %v2881_v29, %v2882_v10  ;;  %v2896_v62 = vrot.slane %v2895_v60, 2  ;;  %v2982_v5 = vsel %vm1637_vm1, %v2871_v54, %v2981_v44  ;;  %v3992_v54 = vld [vmem:[%s6053_s10 + $0x60] sm:$0xff] }
 0x437   :  { %v2832_v17 = vrot.slane %v2820_v39, 2  ;;  %v2833_v40 = vrot.slane %v2820_v39, 4  ;;  %v2834_v61 = vrot.slane %v2820_v39, 6  ;;  %v2809_v23 = vmul.f32 %v5850_v6, %v2800_v28  ;;  %v3984_v28 = vld [vmem:[%s6053_s10 + $0x20] sm:$0xff] }
 0x438   :  { %v2890_v27 = vmax.f32 %v2888_v52, %v2889_v21  ;;  %v2903_v32 = vrot.slane %v2902_v3, 2  ;;  %v2907_v0 = vsel %vm2850_vm10, %v2820_v39, -inf  ;;  %v2884_v49 = vrot.slane %v2883_v63, 1 }
 0x439   :  { %v2908_v30 = vrot.slane %v2907_v0, 4  ;;  %v2914_v25 = vsel %vm2850_vm10, %v2832_v17, -inf  ;;  %v2921_v6 = vsel %vm2850_vm10, %v2833_v40, -inf  ;;  %v5883_v51 = vmax.f32 %v2895_v60, %v2896_v62  ;;  %3248 = vmatpush.bf16.msrb.mxu2 %v3992_v54 }
 0x43a   :  { %v2915_v15 = vrot.slane %v2914_v25, 4  ;;  %v2922_v24 = vrot.slane %v2921_v6, 4  ;;  %v2928_v2 = vsel %vm2850_vm10, %v2834_v61, -inf  ;;  %v2817_v56 = vadd.f32 %v5855_v34, %v2809_v23  ;;  %v3985_v34 = vld [vmem:[%s6053_s10 + $0x28] sm:$0xff] }
 0x43b   :  { %v2909_v43 = vmax.f32 %v2907_v0, %v2908_v30  ;;  %v2929_v36 = vrot.slane %v2928_v2, 4  ;;  %v5893_v55 = vmax.f32 %v2902_v3, %v2903_v32  ;;  %v2983_v13 = vsel %vm1639_vm5, %v2878_v7, %v2982_v5  ;;  %3233 = vmatpush.bf16.msrb.mxu3 %v3985_v34 }
 0x43c   :  { %v2916_v4 = vmax.f32 %v2914_v25, %v2915_v15  ;;  %v2923_v41 = vmax.f32 %v2921_v6, %v2922_v24  ;;  %v2891_v31 = vrot.slane %v2890_v27, 1  ;;  %v2821_v59 = vmax.f32 %v2817_v56, 0.0 }
 0x43d   :  { %v2910_v18 = vrot.slane %v2909_v43, 2  ;;  %v2930_v53 = vmax.f32 %v2928_v2, %v2929_v36  ;;  %v2885_v57 = vmax.f32 %v2883_v63, %v2884_v49  ;;  %v2898_v14 = vrot.slane %v5883_v51, 1  ;;  %3249 = vmatpush.bf16.msrb.mxu2 %v3991_v22 }
 0x43e   :  { %v2917_v9 = vrot.slane %v2916_v4, 2  ;;  %v2924_v20 = vrot.slane %v2923_v41, 2  ;;  %v2835_v35 = vrot.slane %v2821_v59, 2  ;;  %v2836_v29 = vrot.slane %v2821_v59, 4 }
 0x43f   :  { %v2911_v26 = vmax.f32 %v2909_v43, %v2910_v18  ;;  %v2931_v11 = vrot.slane %v2930_v53, 2  ;;  %v2837_v12 = vrot.slane %v2821_v59, 6  ;;  %v2935_v42 = vsel %vm2850_vm10, %v2821_v59, -inf  ;;  %3234 = vmatpush.bf16.msrb.mxu3 %v3984_v28 }
 0x440   :  { %v2918_v47 = vmax.f32 %v2916_v4, %v2917_v9  ;;  %v2925_v38 = vmax.f32 %v2923_v41, %v2924_v20  ;;  %v2936_v8 = vrot.slane %v2935_v42, 4  ;;  %v2942_v33 = vsel %vm2850_vm10, %v2835_v35, -inf  ;;  %v3982_v41 = vld [vmem:[%s6053_s10 + $0x10] sm:$0xff]  ;;  %v3981_v35 = vld [vmem:[%s6053_s10 + $0x8] sm:$0xff] }
 0x441   :  { %v2912_v52 = vrot.slane %v2911_v26, 1  ;;  %v2932_v37 = vmax.f32 %v2930_v53, %v2931_v11  ;;  %v2943_v46 = vrot.slane %v2942_v33, 4  ;;  %v2949_v50 = vsel %vm2850_vm10, %v2836_v29, -inf }
 0x442   :  { %v2919_v10 = vrot.slane %v2918_v47, 1  ;;  %v2926_v60 = vrot.slane %v2925_v38, 1  ;;  %v2892_v21 = vmax.f32 %v2890_v27, %v2891_v31  ;;  %v2937_v3 = vmax.f32 %v2935_v42, %v2936_v8  ;;  %v3983_v27 = vld [vmem:[%s6053_s10 + $0x18] sm:$0xff] }
 0x443   :  { %v2950_v44 = vrot.slane %v2949_v50, 4  ;;  %v2984_v63 = vsel %vm1641_vm6, %v2885_v57, %v2983_v13  ;;  %v2913_v39 = vmax.f32 %v2911_v26, %v2912_v52  ;;  %v2944_v62 = vmax.f32 %v2942_v33, %v2943_v46  ;;  %3235 = vmatpush.bf16.msrb.mxu3 %v3983_v27 }
 0x444   :  { %v2920_v7 = vmax.f32 %v2918_v47, %v2919_v10  ;;  %v2956_v17 = vsel %vm2850_vm10, %v2837_v12, -inf  ;;  %v2927_v40 = vmax.f32 %v2925_v38, %v2926_v60  ;;  %v2938_v61 = vrot.slane %v2937_v3, 2 }
 0x445   :  { %v2951_v23 = vmax.f32 %v2949_v50, %v2950_v44  ;;  %v2957_v5 = vrot.slane %v2956_v17, 4  ;;  %v2933_v32 = vrot.slane %v2932_v37, 1  ;;  %v2945_v19 = vrot.slane %v2944_v62, 2  ;;  %v3980_v44 = vld [vmem:[%s6053_s10] sm:$0xff] }
 0x446   :  { %v2988_v0 = vsel %vm1635_vm15, %v2920_v7, %v2913_v39  ;;  %v2939_v49 = vmax.f32 %v2937_v3, %v2938_v61  ;;  %v2899_v6 = vmax.f32 %v5883_v51, %v2898_v14  ;;  %v2905_v15 = vrot.slane %v5893_v55, 1  ;;  %v3990_v51 = vld [vmem:[%s6053_s10 + $0x50] sm:$0xff]  ;;  %v3999_v39 = vld [vmem:[%s6053_s10 + $0x98] sm:$0xff] }
 0x447   :  { %v2952_v30 = vrot.slane %v2951_v23, 2  ;;  %v2958_v25 = vmax.f32 %v2956_v17, %v2957_v5  ;;  %v2946_v24 = vmax.f32 %v2944_v62, %v2945_v19  ;;  %v2985_v2 = vsel %vm6093_vm0, %v2892_v21, %v2984_v63  ;;  %3236 = vmatpush.bf16.msrb.mxu3 %v3982_v41  ;;  %3250 = vmatpush.bf16.msrb.mxu2 %v3990_v51  ;;  %v3988_v63 = vld [vmem:[%s6053_s10 + $0x40] sm:$0xff]  ;;  %v3998_v7 = vld [vmem:[%s6053_s10 + $0x90] sm:$0xff]  ;;  %v3997_v62 = vld [vmem:[%s6053_s10 + $0x88] sm:$0xff] }
 0x448   :  { %v2989_v58 = vsel %vm1637_vm1, %v2927_v40, %v2988_v0  ;;  %v2940_v16 = vrot.slane %v2939_v49, 1  ;;  %v2934_v56 = vmax.f32 %v2932_v37, %v2933_v32  ;;  %v5932_v53 = vand.u32 3, %v4503_v1  ;;  %v3996_v17 = vld [vmem:[%s6053_s10 + $0x80] sm:$0xff]  ;;  %v4007_v40 = vld [vmem:[#allocation2 + $0x38] sm:$0xff] }
 0x449   :  { %v2953_v43 = vmax.f32 %v2951_v23, %v2952_v30  ;;  %v2959_v36 = vrot.slane %v2958_v25, 2  ;;  %v2947_v4 = vrot.slane %v2946_v24, 1  ;;  %v5935_v57 = vand.u32 3, %v5130_v48  ;;  %v3989_v48 = vld [vmem:[%s6053_s10 + $0x48] sm:$0xff]  ;;  %3508 = vmatpush.bf16.msrb.mxu1 %v4007_v40 }
 0x44a   :  { %v2941_v13 = vmax.f32 %v2939_v49, %v2940_v16  ;;  %v2986_v14 = vsel %vm6094_vm13, %v2899_v6, %v2985_v2  ;;  %v2990_v9 = vsel %vm1639_vm5, %v2934_v56, %v2989_v58  ;;  %v2906_v45 = vmax.f32 %v5893_v55, %v2905_v15 }
 0x44b   :  { %v2954_v31 = vrot.slane %v2953_v43, 1  ;;  %v2960_v18 = vmax.f32 %v2958_v25, %v2959_v36  ;;  %v2948_v59 = vmax.f32 %v2946_v24, %v2947_v4  ;;  %vm3026_vm12 = vcmp.lt.s32.totalorder %v5935_v57, 3  ;;  %3237 = vmatpush.bf16.msrb.mxu3 %v3981_v35  ;;  %3251 = vmatpush.bf16.msrb.mxu2 %v3989_v48  ;;  %v4333_v35 = vld [vmem:[%s6054_s11] ss:$0 sm:$0xff] }
 0x44c   :  { %v2991_v26 = vsel %vm1641_vm6, %v2941_v13, %v2990_v9  ;;  %v5949_v47 = vsel %vm6096_vm9, %v2906_v45, %v2986_v14  ;;  %vm3025_vm6 = vcmp.lt.s32.totalorder %v5932_v53, 3  ;;  %vm3013_vm10 = vcmp.ge.s32.totalorder %v5932_v53, 1  ;;  %v4004_v9 = vld [vmem:[#allocation2 + $0x20] sm:$0xff]  ;;  %v4014_v45 = vld [vmem:[#allocation2 + $0x70] sm:$0xff] }
 0x44d   :  { %v2955_v20 = vmax.f32 %v2953_v43, %v2954_v31  ;;  %v2961_v34 = vrot.slane %v2960_v18, 1  ;;  %v2992_v11 = vsel %vm6095_vm7, %v2948_v59, %v2991_v26  ;;  %vm3014_vm0 = vcmp.ge.s32.totalorder %v5935_v57, 1  ;;  %v4005_v59 = vld [vmem:[#allocation2 + $0x28] sm:$0xff]  ;;  %v4002_v26 = vld [vmem:[#allocation2 + $0x10] sm:$0xff] }
 0x44e   :  { %v3021_v12 = vrot.slane %v5949_v47, 1  ;;  %v3009_v52 = vrot.slane %v5949_v47, 7  ;;  %vm6099_vm13 = vcmp.lt.s32.totalorder %v4503_v1, 1  ;;  %v2997_v23 = vrot.slane %v5949_v47, 6 }
 0x44f   :  { %v2962_v29 = vmax.f32 %v2960_v18, %v2961_v34  ;;  %v2993_v55 = vsel %vm6097_vm8, %v2955_v20, %v2992_v11  ;;  %vm6100_vm7 = vmmov %vm6099_vm13  ;;  %3238 = vmatpush.bf16.msrb.mxu3 %v3980_v44  ;;  %3252 = vmatpush.bf16.msrb.mxu2 %v3988_v63  ;;  %vm3002_vm9 = vcmp.ge.s32.totalorder %v5935_v57, 2  ;;  %v3033_v56 = vrot.slane %v5949_v47, 2  ;;  %v4006_v18 = vld [vmem:[#allocation2 + $0x30] sm:$0xff]  ;;  %v4015_v20 = vld [vmem:[#allocation2 + $0x78] sm:$0xff] }
 0x450   :  { %vm3038_vm8 = vcmp.lt.s32.totalorder %v5935_v57, 2  ;;  %3509 = vmatpush.bf16.msrb.mxu1 %v4006_v18  ;;  %v4003_v34 = vld [vmem:[#allocation2 + $0x18] sm:$0xff]  ;;  %v4013_v57 = vld [vmem:[#allocation2 + $0x68] sm:$0xff] }
 0x451   :  { %v5954_v38 = vsel %vm6098_vm11, %v2962_v29, %v2993_v55  ;;  %v4012_v29 = vld [vmem:[#allocation2 + $0x60] sm:$0xff]  ;;  %v4025_v18 = vld [vmem:[#allocation4 + $0x44] sm:$0xf0] }
 0x452   :  { %v3022_v42 = vrot.slane %v5954_v38, 1  ;;  %v3010_v37 = vrot.slane %v5954_v38, 7  ;;  %v2998_v61 = vrot.slane %v5954_v38, 6  ;;  %v3034_v36 = vrot.slane %v5954_v38, 2 }
 0x453   :  { %3263 = vmatpush.bf16.msra.mxu3 %v3999_v39  ;;  %v4029_v39 = vld [vmem:[#allocation4 + $0x64] sm:$0xf0] }
 0x454   :  { %v3023_v8 = vsel %vm348_vm2, %v3021_v12, %v3022_v42  ;;  %v3024_v33 = vsel %vm348_vm2, %v3022_v42, %v3021_v12  ;;  %v3011_v10 = vsel %vm6099_vm13, %v3009_v52, %v3010_v37  ;;  %v3012_v60 = vsel %vm6100_vm7, %v3010_v37, %v3009_v52  ;;  %3510 = vmatpush.bf16.msrb.mxu1 %v4005_v59  ;;  %v4011_v42 = vld [vmem:[#allocation2 + $0x58] sm:$0xff]  ;;  %v4000_v52 = vld [vmem:[#allocation2] sm:$0xff] }
 0x455   :  { %v3031_v46 = vsel %vm3025_vm6, %v3023_v8, 0.0  ;;  %v3032_v50 = vsel %vm3026_vm12, %v3024_v33, 0.0  ;;  %v3019_v28 = vsel %vm3013_vm10, %v3012_v60, 0.0  ;;  %v3020_v54 = vsel %vm3014_vm0, %v3011_v10, 0.0  ;;  %v3958_v33 = vld [vmem:[#allocation4 + $0x70] sm:$0xf] }
 0x456   :  { %v4322_v21 = vpack.i.bf16 %v3032_v50, %v3031_v46  ;;  %v4317_v3 = vpack.i.bf16 %v3020_v54, %v3019_v28  ;;  %v2999_v5 = vsel %vm154_vm4, %v2997_v23, %v2998_v61  ;;  %v3000_v32 = vsel %vm154_vm4, %v2998_v61, %v2997_v23  ;;  %v4031_v10 = vld [vmem:[#allocation4 + $0x74] sm:$0xf0]  ;;  %v4030_v60 = vld [vmem:[#allocation4 + $0x74] sm:$0xf]  ;;  %v3960_v54 = vld [vmem:[#allocation4 + $0x78] sm:$0xf0] }
 0x457   :  { %3264 = vmatpush.bf16.msra.mxu3 %v3998_v7  ;;  %vm3001_vm2 = vcmp.ge.s32.totalorder %v5932_v53, 2  ;;  %v3008_v6 = vsel %vm3002_vm9, %v2999_v5, 0.0  ;;  %v3035_v4 = vsel %vm445_vm3, %v3033_v56, %v3034_v36  ;;  %v3036_v41 = vsel %vm445_vm3, %v3034_v36, %v3033_v56  ;;  %v4010_v50 = vld [vmem:[#allocation2 + $0x50] sm:$0xff]  ;;  %v4028_v7 = vld [vmem:[#allocation4 + $0x64] sm:$0xf] }
 0x458   :  { %4323 = vrot.lane.b32.xlu1 %v4322_v21, %s4391_s18  ;;  %4318 = vrot.lane.b32.xlu0 %v4317_v3, %s4391_s18  ;;  %v3007_v25 = vsel %vm3001_vm2, %v3000_v32, 0.0  ;;  %vm3037_vm4 = vcmp.lt.s32.totalorder %v5932_v53, 2  ;;  %v3044_v13 = vsel %vm3038_vm8, %v3036_v41, 0.0  ;;  %vm3301_vm3 = vcmask 1041408   ;;  %v3950_v21 = vld [vmem:[#allocation4 + $0x60] sm:$0xf] }
 0x459   :  { %v3043_v51 = vsel %vm3037_vm4, %v3035_v4, 0.0  ;;  %3511 = vmatpush.bf16.msrb.mxu1 %v4004_v9  ;;  %v3959_v28 = vor.u32 %v4031_v10, %v3958_v33  ;;  %v3963_v63 = vor.u32 %v4030_v60, %v3960_v54  ;;  %v3942_v5 = vld [vmem:[#allocation4 + $0x50] sm:$0xf]  ;;  %v3936_v9 = vld [vmem:[#allocation4 + $0x48] sm:$0xf0] }
 0x45a   :  { %v3067_v31 = vpack.c.bf16 %v3044_v13, %v3043_v51 }
 0x45b   :  { %3265 = vmatpush.bf16.msra.mxu3 %v3997_v62  ;;  %v3952_v62 = vld [vmem:[#allocation4 + $0x68] sm:$0xf0]  ;;  %3638 = vmatpush.bf16.msra.mxu2 %v3959_v28 }
 0x45d   :  { %3512 = vmatpush.bf16.msrb.mxu1 %v4003_v34  ;;  %v4008_v34 = vld [vmem:[#allocation2 + $0x40] sm:$0xff] }
 0x45f   :  { %3266 = vmatpush.bf16.msra.mxu3 %v3996_v17 }
 0x461   :  { %3513 = vmatpush.bf16.msrb.mxu1 %v4002_v26 }
 0x4ca   :  { %v4324_v0 = vpop.permute.xlu1 %4323  ;;  %v4319_v19 = vpop.permute.xlu0 %4318 }
 0x4cb   :  { %v4326_v27 = vunpack.i.h.bf16 %v4324_v0  ;;  %v4325_v22 = vunpack.i.l.bf16 %v4324_v0  ;;  %v4321_v49 = vunpack.i.h.bf16 %v4319_v19  ;;  %v4320_v30 = vunpack.i.l.bf16 %v4319_v19 }
 0x4cc   :  { %v3951_v19 = vor.u32 %v4029_v39, %v3950_v21 }
 0x4cd   :  { %v3061_v15 = vsel %vm2045_vm14, %v3007_v25, %v4320_v30  ;;  %v3062_v24 = vsel %vm2045_vm14, %v3008_v6, %v4321_v49  ;;  %v3063_v2 = vsel %vm2045_vm14, %v5949_v47, %v4325_v22  ;;  %v3064_v58 = vsel %vm2045_vm14, %v5954_v38, %v4326_v27  ;;  %v4001_v47 = vld [vmem:[#allocation2 + $0x8] sm:$0xff]  ;;  %v4334_v38 = vld [vmem:[%s6055_s12] ss:$0 sm:$0xff]  ;;  %v4027_v22 = vld [vmem:[#allocation4 + $0x54] sm:$0xf0] }
 0x4ce   :  { %v3065_v16 = vpack.c.bf16 %v3062_v24, %v3061_v15  ;;  %v3066_v43 = vpack.c.bf16 %v3064_v58, %v3063_v2  ;;  %3514 = vmatpush.bf16.msrb.mxu1 %v4001_v47  ;;  %v3955_v27 = vor.u32 %v4028_v7, %v3952_v62  ;;  %v4026_v49 = vld [vmem:[#allocation4 + $0x54] sm:$0xf]  ;;  %v3944_v15 = vld [vmem:[#allocation4 + $0x58] sm:$0xf0]  ;;  %3639 = vmatpush.bf16.msra.mxu2 %v3951_v19 }
 0x4cf   :  { %v3943_v56 = vor.u32 %v4027_v22, %v3942_v5  ;;  %v3947_v13 = vor.u32 %v4026_v49, %v3944_v15  ;;  %v4022_v47 = vld [vmem:[#allocation4 + $0x34] sm:$0xf] }
 0x4d0   :  { %3239 = vmatmul.bf16.vlgmr.msrb.gmra.mxu3 %v3065_v16  ;;  %3253 = vmatmul.bf16.vlgmr.msrb.gmra.mxu2 %v3066_v43  ;;  %v4009_v43 = vld [vmem:[#allocation2 + $0x48] sm:$0xff] }
 0x4d1   :  { %3521 = vmatpush.bf16.msrb.mxu3 %v4015_v20 }
 0x4d2   :  { %3515 = vmatpush.bf16.msrb.mxu1 %v4000_v52  ;;  %3640 = vmatpush.bf16.msra.mxu2 %v3943_v56  ;;  %v3928_v52 = vld [vmem:[#allocation4 + $0x38] sm:$0xf0] }
 0x4d5   :  { %3522 = vmatpush.bf16.msrb.mxu3 %v4014_v45 }
 0x4d6   :  { %3651 = vmatpush.bf16.msra.mxu1 %v3963_v63 }
 0x4d9   :  { %3523 = vmatpush.bf16.msrb.mxu3 %v4013_v57 }
 0x4da   :  { %3652 = vmatpush.bf16.msra.mxu1 %v3955_v27 }
 0x4dd   :  { %3524 = vmatpush.bf16.msrb.mxu3 %v4012_v29 }
 0x4de   :  { %3653 = vmatpush.bf16.msra.mxu1 %v3947_v13 }
 0x4e0   :  { %3835 = vmatmul.msk.bf16.vlgmr.msra.gmra.mxu3 %vm2045_vm14, %v3067_v31  ;;  %v3934_v31 = vld [vmem:[#allocation4 + $0x40] sm:$0xf] }
 0x4e1   :  { %3525 = vmatpush.bf16.msrb.mxu3 %v4011_v42  ;;  %v3935_v26 = vor.u32 %v4025_v18, %v3934_v31 }
 0x4e3   :  { %3641 = vmatpush.bf16.msra.mxu2 %v3935_v26 }
 0x4e5   :  { %3526 = vmatpush.bf16.msrb.mxu3 %v4010_v50 }
 0x4e9   :  { %3527 = vmatpush.bf16.msrb.mxu3 %v4009_v43 }
 0x4ed   :  { %3528 = vmatpush.bf16.msrb.mxu3 %v4008_v34  ;;  %v4021_v34 = vld [vmem:[#allocation4 + $0x24] sm:$0xf0] }
 0x553   :  { %v3240_v14 = vpop.f32.mrf.mxu3  ;;  %v3254_v53 = vpop.f32.mrf.mxu2 }
 0x554   :  { %v3255_v11 = vadd.f32 %v3254_v53, %v3240_v14  ;;  %v4024_v14 = vld [vmem:[#allocation4 + $0x44] sm:$0xf] }
 0x555   :  { %v3939_v29 = vor.u32 %v4024_v14, %v3936_v9 }
 0x557   :  { %3654 = vmatpush.bf16.msra.mxu1 %v3939_v29 }
 0x55b   :  { %v3242_v1 = vpop.f32.mrf.mxu3  ;;  %v3256_v37 = vpop.f32.mrf.mxu2 }
 0x55c   :  { %v3257_v3 = vadd.f32 %v3256_v37, %v3242_v1 }
 0x563   :  { %v3268_v48 = vpop.f32.mrf.mxu3 }
 0x564   :  { %v3269_v55 = vadd.f32 %v3268_v48, %v3255_v11  ;;  %v3926_v11 = vld [vmem:[#allocation4 + $0x30] sm:$0xf] }
 0x566   :  { %v3277_v12 = vmul.f32 %v4333_v35, %v3269_v55 }
 0x568   :  { %v3283_v8 = vadd.f32 %v4334_v38, %v3277_v12 }
 0x56a   :  { %v3285_v46 = vmax.f32 %v3283_v8, 0.0 }
 0x56b   :  { %v3270_v44 = vpop.f32.mrf.mxu3 }
 0x56c   :  { %v3289_v17 = vrot.slane %v3285_v46, 2  ;;  %v3290_v40 = vrot.slane %v3285_v46, 4  ;;  %v3291_v61 = vrot.slane %v3285_v46, 6  ;;  %v3302_v23 = vsel %vm3301_vm3, %v3285_v46, -inf }
 0x56d   :  { %v3303_v32 = vrot.slane %v3302_v23, 4  ;;  %v3271_v0 = vadd.f32 %v3270_v44, %v3257_v3  ;;  %v3931_v44 = vor.u32 %v4022_v47, %v3928_v52  ;;  %v3912_v47 = vld [vmem:[#allocation4 + $0x18] sm:$0xf0]  ;;  %v3904_v52 = vld [vmem:[#allocation4 + $0x8] sm:$0xf0] }
 0x56e   :  { %v3309_v30 = vsel %vm3301_vm3, %v3289_v17, -inf  ;;  %v3316_v25 = vsel %vm3301_vm3, %v3290_v40, -inf  ;;  %v3323_v6 = vsel %vm3301_vm3, %v3291_v61, -inf }
 0x56f   :  { %v3304_v24 = vmax.f32 %v3302_v23, %v3303_v32  ;;  %v3310_v2 = vrot.slane %v3309_v30, 4  ;;  %v3317_v58 = vrot.slane %v3316_v25, 4  ;;  %v3324_v16 = vrot.slane %v3323_v6, 4  ;;  %3655 = vmatpush.bf16.msra.mxu1 %v3931_v44  ;;  %v3552_v44 = vld [vmem:[%s6059_s16] sm:$0x3] }
 0x570   :  { %v3278_v36 = vmul.f32 %v4333_v35, %v3271_v0  ;;  %v4023_v35 = vld [vmem:[#allocation4 + $0x34] sm:$0xf0] }
 0x571   :  { %v3311_v4 = vmax.f32 %v3309_v30, %v3310_v2  ;;  %v3318_v41 = vmax.f32 %v3316_v25, %v3317_v58  ;;  %v3325_v51 = vmax.f32 %v3323_v6, %v3324_v16  ;;  %v3305_v20 = vrot.slane %v3304_v24, 2 }
 0x572   :  { %v3284_v59 = vadd.f32 %v4334_v38, %v3278_v36  ;;  %v3927_v10 = vor.u32 %v4023_v35, %v3926_v11  ;;  %v3910_v11 = vld [vmem:[#allocation4 + $0x10] sm:$0xf]  ;;  %v4019_v35 = vld [vmem:[#allocation4 + $0x14] sm:$0xf0] }
 0x573   :  { %v3312_v1 = vrot.slane %v3311_v4, 2  ;;  %v3319_v45 = vrot.slane %v3318_v41, 2  ;;  %v3326_v53 = vrot.slane %v3325_v51, 2  ;;  %v3306_v33 = vmax.f32 %v3304_v24, %v3305_v20 }
 0x574   :  { %v3286_v57 = vmax.f32 %v3284_v59, 0.0  ;;  %3642 = vmatpush.bf16.msra.mxu2 %v3927_v10  ;;  %v3911_v29 = vor.u32 %v4019_v35, %v3910_v11  ;;  %v4335_v10 = vld [vmem:[%s6057_s14] ss:$0 sm:$0xff] }
 0x575   :  { %v3320_v48 = vmax.f32 %v3318_v41, %v3319_v45  ;;  %v3313_v37 = vmax.f32 %v3311_v4, %v3312_v1  ;;  %v3327_v60 = vmax.f32 %v3325_v51, %v3326_v53  ;;  %v3307_v40 = vrot.slane %v3306_v33, 1  ;;  %v3918_v1 = vld [vmem:[#allocation4 + $0x20] sm:$0xf]  ;;  %v4020_v45 = vld [vmem:[#allocation4 + $0x24] sm:$0xf] }
 0x576   :  { %v3292_v55 = vrot.slane %v3286_v57, 2  ;;  %v3293_v12 = vrot.slane %v3286_v57, 4  ;;  %v3294_v38 = vrot.slane %v3286_v57, 6  ;;  %v3330_v42 = vsel %vm3301_vm3, %v3286_v57, -inf  ;;  %v3920_v57 = vld [vmem:[#allocation4 + $0x28] sm:$0xf0] }
 0x577   :  { %v3331_v8 = vrot.slane %v3330_v42, 4  ;;  %v3321_v63 = vrot.slane %v3320_v48, 1  ;;  %v3314_v23 = vrot.slane %v3313_v37, 1  ;;  %v3328_v5 = vrot.slane %v3327_v60, 1 }
 0x578   :  { %v3337_v46 = vsel %vm3301_vm3, %v3292_v55, -inf  ;;  %v3351_v50 = vsel %vm3301_vm3, %v3294_v38, -inf  ;;  %v3344_v28 = vsel %vm3301_vm3, %v3293_v12, -inf  ;;  %v3308_v6 = vmax.f32 %v3306_v33, %v3307_v40  ;;  %v3902_v55 = vld [vmem:[#allocation4] sm:$0xf] }
 0x579   :  { %v3332_v54 = vmax.f32 %v3330_v42, %v3331_v8  ;;  %v3338_v21 = vrot.slane %v3337_v46, 4  ;;  %v3352_v3 = vrot.slane %v3351_v50, 4  ;;  %v3345_v39 = vrot.slane %v3344_v28, 4  ;;  %v4017_v12 = vld [vmem:[#allocation4 + $0x4] sm:$0xf0] }
 0x57a   :  { %v3322_v27 = vmax.f32 %v3320_v48, %v3321_v63  ;;  %v3315_v24 = vmax.f32 %v3313_v37, %v3314_v23  ;;  %v3329_v2 = vmax.f32 %v3327_v60, %v3328_v5  ;;  %v3919_v53 = vor.u32 %v4021_v34, %v3918_v1  ;;  %v4018_v48 = vld [vmem:[#allocation4 + $0x14] sm:$0xf]  ;;  %v4016_v42 = vld [vmem:[#allocation4 + $0x4] sm:$0xf] }
 0x57b   :  { %v3339_v7 = vmax.f32 %v3337_v46, %v3338_v21  ;;  %v3353_v62 = vmax.f32 %v3351_v50, %v3352_v3  ;;  %v3333_v17 = vrot.slane %v3332_v54, 2  ;;  %v3346_v61 = vmax.f32 %v3344_v28, %v3345_v39 }
 0x57c   :  { %v3362_v56 = vsel %vm1635_vm15, %v3322_v27, %v3308_v6  ;;  %v3370_v31 = vsel %vm1635_vm15, %v3329_v2, %v3315_v24  ;;  %v3923_v26 = vor.u32 %v4020_v45, %v3920_v57  ;;  %3643 = vmatpush.bf16.msra.mxu2 %v3919_v53  ;;  %v3915_v38 = vor.u32 %v4018_v48, %v3912_v47 }
 0x57d   :  { %v3340_v32 = vrot.slane %v3339_v7, 2  ;;  %v3334_v0 = vmax.f32 %v3332_v54, %v3333_v17  ;;  %v3354_v19 = vrot.slane %v3353_v62, 2  ;;  %v3347_v22 = vrot.slane %v3346_v61, 2 }
 0x57e   :  { %3656 = vmatpush.bf16.msra.mxu1 %v3923_v26  ;;  %v3903_v37 = vor.u32 %v4017_v12, %v3902_v55  ;;  %v3907_v8 = vor.u32 %v4016_v42, %v3904_v52  ;;  %v3555_v63 = vperm.slane %v3552_v44, 1  ;;  %vm3667_vm15 = vcmask 1043456  }
 0x57f   :  { %v3335_v49 = vrot.slane %v3334_v0, 1  ;;  %v3341_v30 = vmax.f32 %v3339_v7, %v3340_v32  ;;  %v3355_v25 = vmax.f32 %v3353_v62, %v3354_v19  ;;  %v3348_v15 = vmax.f32 %v3346_v61, %v3347_v22 }
 0x580   :  { %3644 = vmatpush.bf16.msra.mxu2 %v3911_v29  ;;  %v3554_v62 = vperm.slane %v3552_v44, 0 }
 0x581   :  { %v3336_v58 = vmax.f32 %v3334_v0, %v3335_v49  ;;  %v3342_v16 = vrot.slane %v3341_v30, 1  ;;  %v3356_v43 = vrot.slane %v3355_v25, 1  ;;  %v3349_v36 = vrot.slane %v3348_v15, 1 }
 0x582   :  { %3657 = vmatpush.bf16.msra.mxu1 %v3915_v38 }
 0x583   :  { %v3363_v4 = vsel %vm1637_vm1, %v3336_v58, %v3362_v56  ;;  %v3343_v41 = vmax.f32 %v3341_v30, %v3342_v16  ;;  %v3357_v51 = vmax.f32 %v3355_v25, %v3356_v43  ;;  %v3350_v13 = vmax.f32 %v3348_v15, %v3349_v36 }
 0x584   :  { %3645 = vmatpush.bf16.msra.mxu2 %v3903_v37 }
 0x585   :  { %v3371_v18 = vsel %vm1637_vm1, %v3343_v41, %v3370_v31  ;;  %v3364_v59 = vsel %vm1639_vm5, %v3350_v13, %v3363_v4 }
 0x586   :  { %v3372_v14 = vsel %vm1639_vm5, %v3357_v51, %v3371_v18  ;;  %v3374_v9 = vpack.c.bf16 %v3364_v59, %v3364_v59  ;;  %3658 = vmatpush.bf16.msra.mxu1 %v3907_v8 }
 0x587   :  { %v3375_v20 = vpack.c.bf16 %v3372_v14, %v3372_v14 }
 0x588   :  { %3516 = vmatmul.bf16.vlgmr.msrb.gmra.mxu1 %v3374_v9 }
 0x589   :  { %3529 = vmatmul.bf16.vlgmr.msrb.gmra.mxu3 %v3375_v20 }
 0x605   :  { %v3517_v33 = vpop.f32.mrf.mxu1 }
 0x606   :  { %v3518_v60 = vadd.f32 %v4335_v10, %v3517_v33 }
 0x60c   :  { %v3530_v46 = vpop.f32.mrf.mxu3 }
 0x60d   :  { %v3531_v50 = vadd.f32 %v3530_v46, %v3518_v60  ;;  %v3519_v28 = vpop.f32.mrf.mxu1 }
 0x60f   :  { %v3534_v54 = vmax.f32 %v3531_v50, 0.0 }
 0x611   :  { %v3535_v21 = vpack.c.bf16 %v3534_v54, %v3534_v54 }
 0x613   :  { %3646 = vmatmul.bf16.vlgmr.msra.gmra.mxu2 %v3535_v21  ;;  %3659 = vmatmul.bf16.vlgmr.msra.gmra.mxu1 %v3535_v21 }
 0x614   :  { %v3532_v3 = vpop.f32.mrf.mxu3 }
 0x690   :  { %v3660_v39 = vpop.f32.mrf.mxu1 }
 0x691   :  { %v3661_v7 = vadd.f32 %v3660_v39, %v3555_v63 }
 0x693   :  { %v3666_v40 = vrot.slane %v3661_v7, 4 }
 0x696   :  { %v3647_v17 = vpop.f32.mrf.mxu2 }
 0x697   :  { %v3648_v61 = vadd.f32 %v3647_v17, %v3554_v62 }
 0x698   :  { %v3662_v23 = vpop.f32.mrf.mxu1 }
 0x699   :  { %v3668_v5 = vsel %vm3667_vm15, %v3648_v61, %v3666_v40 }
 0x69a   :  { %3670 = vst [vmem:[%s6060_s17] sm:$0xff] %v3668_v5 }
 0x69e   :  { %v3649_v32 = vpop.f32.mrf.mxu2 }
 0x69f   :  { %3675 = vsyncpa [#allocation3], 1 }
 0x6a0   :  { %3676 = vsyncpa [#allocation5], 1 }

</bundles_post_ra>
